<compile_context>
chip_gen: v5e
topology: v5e:2x2
jax: 0.10.0
libtpu: 0.0.40
codegen_flags: <defaults>
</compile_context>

<pallas_src>
import numpy as np
import jax
import jax.numpy as jnp
from jax import lax
from jax.experimental import pallas as pl
from jax.experimental.pallas import tpu as pltpu

# ------------------------- deterministic configuration -------------------------
X = 16
Y = 16
C = 3
P = X * Y
DT = 0.2
DD = 2              # ReintegrationTracker dd
SIGMA = 0.95        # ReintegrationTracker sigma
THETA_X = 2.0
N_EXP = 2.0
K_SIZE = 10
HAS_FOOD = False    # TODO(synk): has_food=True branch of forward() not implemented.

assert Y & (Y - 1) == 0, "flat-layout index math assumes Y is a power of two"

# Deterministic synthetic kernel set (plays the role of `kernels` + m/s/h params).
KERNELS = [
    dict(r=1.00, b=[1.0],      a=[0.30],       w=[0.06],       m=0.15, s=0.015, h=1.00, c0=0, c1=0),
    dict(r=0.90, b=[1.0, 0.5], a=[0.20, 0.35], w=[0.05, 0.08], m=0.22, s=0.030, h=0.70, c0=0, c1=1),
    dict(r=1.10, b=[0.8],      a=[0.25],       w=[0.07],       m=0.18, s=0.025, h=0.90, c0=1, c1=1),
    dict(r=0.80, b=[1.0],      a=[0.15],       w=[0.04],       m=0.30, s=0.060, h=0.60, c0=1, c1=2),
    dict(r=1.00, b=[0.6, 1.0], a=[0.10, 0.30], w=[0.03, 0.06], m=0.12, s=0.020, h=0.80, c0=2, c1=2),
    dict(r=0.95, b=[1.0],      a=[0.28],       w=[0.05],       m=0.25, s=0.040, h=0.50, c0=2, c1=0),
]
NK = len(KERNELS)
M_PARAM = tuple(k['m'] for k in KERNELS)   # self.m
S_PARAM = tuple(k['s'] for k in KERNELS)   # self.s
H_PARAM = tuple(k['h'] for k in KERNELS)   # self.h (per-kernel heights)
C0 = tuple(k['c0'] for k in KERNELS)
C1 = tuple(k['c1'] for k in KERNELS)


# -------------- construct_kernels glue (parameter setup, plain numpy) --------------
def _construct_conv_weights():
    """Equivalent of Lenia_Flow.construct_kernels: instead of fft2(fftshift(K/K.sum))
    we build the exact circulant matrices of the circular convolution and concatenate
    them into one (P, NK*P) slab W, so that for row-vector x_flat:
        (x_flat @ W)[k*P:(k+1)*P] == ifft2(fkernels[...,k] * fft2(x)).real  (flattened).
    Stored in bfloat16 (MXU-native, f32 accumulation in the kernel)."""
    mid = X // 2
    dist = np.linalg.norm(np.mgrid[-mid:mid, -mid:mid], axis=0)   # (X, Y)
    Ks = []
    for k in KERNELS:
        D = dist / ((K_SIZE + 15) * k['r'])                       # pk is None branch
        sig = 0.5 * (np.tanh(-(D - 1.0) * 10.0 / 2.0) + 1.0)      # self.sigmoid(-(D-1)*10)
        a = np.asarray(k['a'], np.float64)
        w = np.asarray(k['w'], np.float64)
        b = np.asarray(k['b'], np.float64)
        bell = (b * np.exp(-(D[..., None] - a) ** 2 / w)).sum(-1)  # bell_kernel
        Ks.append(sig * bell)
    Ks = np.stack(Ks, axis=-1)                                    # (X, Y, NK)
    Knorm = Ks / Ks.sum(axis=(0, 1), keepdims=True)
    Kshift = np.fft.fftshift(Knorm, axes=(0, 1))
    # Circular convolution: U[i,j] = sum_{p,q} Kshift[(i-p)%X, (j-q)%Y] * x[p,q]
    ii = (np.arange(X)[:, None] - np.arange(X)[None, :]) % X      # [i, p]
    jj = (np.arange(Y)[:, None] - np.arange(Y)[None, :]) % Y      # [j, q]
    blocks = []
    for k in range(NK):
        Mk = Kshift[:, :, k][ii[:, None, :, None], jj[None, :, None, :]]  # (X, Y, X, Y)
        blocks.append(Mk.reshape(P, P).T)                          # (P, P): row-vector form
    Wnp = np.concatenate(blocks, axis=1)                           # (P, NK*P)
    return jnp.asarray(Wnp, jnp.bfloat16)


# ---------------------------- fused Lenia step kernel ----------------------------
def _lenia_step_kernel(w_ref, x_ref, out_ref):
    # w_ref  : (P, NK*P) bf16 -- concatenated circulant conv matrices (VMEM-resident)
    # x_ref  : (C, P)     f32 -- initial state, flat row-major spatial (p = i*Y + j)
    # out_ref: (C, P)     f32 -- evolving state / final output (VMEM-resident)
    @pl.when(pl.program_id(0) == 0)
    def _init():
        out_ref[...] = x_ref[...]

    cur = out_ref[...]                                             # (C, P) current state

    # ---- flat-layout index helpers -------------------------------------------------
    p_iota = lax.broadcasted_iota(jnp.int32, (1, P), 1)
    i_idx = jnp.right_shift(p_iota, 4)                             # p // Y   (Y == 16)
    j_idx = jnp.bitwise_and(p_iota, Y - 1)                         # p %  Y
    pos0 = i_idx.astype(jnp.float32) + 0.5                         # mesh-grid rows
    pos1 = j_idx.astype(jnp.float32) + 0.5                         # mesh-grid cols

    def fmask(cond):
        return jnp.where(cond, 1.0, 0.0).astype(jnp.float32)

    # zero-padding validity masks for the 8 sobel taps (conv2d padding='same')
    shift_masks = {}
    for s0 in (-1, 0, 1):
        for s1 in (-1, 0, 1):
            if s0 == 0 and s1 == 0:
                continue
            shift_masks[(s0, s1)] = fmask((i_idx + s0 >= 0) & (i_idx + s0 < X) &
                                          (j_idx + s1 >= 0) & (j_idx + s1 < Y))

    def shifted(a, s0, s1):
        # a[i+s0, j+s1] with zero padding, on the flattened layout (one lane roll + mask)
        return jnp.roll(a, -(Y * s0 + s1), axis=1) * shift_masks[(s0, s1)]

    def sobel_flat(a):
        # cross-correlation with k_x = [[-1,0,1],[-2,0,2],[-1,0,1]] and its transpose
        s = {o: shifted(a, *o) for o in shift_masks}
        sx = (s[(-1, 1)] + 2.0 * s[(0, 1)] + s[(1, 1)]) \
           - (s[(-1, -1)] + 2.0 * s[(0, -1)] + s[(1, -1)])
        sy = (s[(1, -1)] + 2.0 * s[(1, 0)] + s[(1, 1)]) \
           - (s[(-1, -1)] + 2.0 * s[(-1, 0)] + s[(-1, 1)])
        return sy, sx

    # column-wrap selection masks for circular torch.roll along the flattened Y axis
    col_sel = {}
    for dy in range(-DD, DD + 1):
        if dy == 0:
            continue
        m = fmask((j_idx >= dy) & (j_idx < Y + dy))
        col_sel[dy] = (m, 1.0 - m)

    def roll_flat(a, dx, dy):
        # torch.roll(a_2d, (dx, dy), (0, 1)) on the flattened layout
        r = Y * dx + dy
        r1 = jnp.roll(a, r, axis=1) if r != 0 else a
        if dy == 0:
            return r1
        r2 = jnp.roll(a, r - Y if dy > 0 else r + Y, axis=1)
        m, mc = col_sel[dy]
        return r1 * m + r2 * mc

    # ---- spectral convolution: ONE wide bf16 MXU matmul (circulant form) -----------
    v = jnp.dot(cur.astype(jnp.bfloat16), w_ref[...],
                preferred_element_type=jnp.float32)                # (C, NK*P)
    acc_h = [jnp.zeros((1, P), jnp.float32) for _ in range(C)]
    for k in range(NK):
        u = v[C0[k]:C0[k] + 1, k * P:(k + 1) * P]                  # Us[..., k] (source chan c0)
        t = (u - M_PARAM[k]) * (1.0 / S_PARAM[k])
        g = (jnp.exp(-0.5 * t * t) * 2.0 - 1.0) * H_PARAM[k]       # growth(U,m,s) * h  (torch Gs)
        # NOTE: the reference's c1-is-None branch multiplies by k['h'] AGAIN when mixing.
        acc_h[C1[k]] = acc_h[C1[k]] + H_PARAM[k] * g               # Hs[..., c1]

    # ---- sobel gradients, vectorized over [Hs_0..Hs_{C-1}, sum_c x_c] --------------
    xsum = cur[0:1] + cur[1:2] + cur[2:3]
    stack = jnp.concatenate(acc_h + [xsum], axis=0)                # (C+1, P)
    sy, sx = sobel_flat(stack)
    guy, gux = sy[0:C], sx[0:C]                                    # grad_u (per channel)
    gxy, gxx = sy[C:C + 1], sx[C:C + 1]                            # grad_x (broadcast)

    # ---- flow field -----------------------------------------------------------------
    # TODO(synk): general non-integer exponent n; here n == 2.0 so x**n == x*x exactly.
    tx = cur * (1.0 / THETA_X)
    alpha = jnp.clip(tx * tx, 0.0, 1.0)
    f0 = guy * (1.0 - alpha) - gxy * alpha                         # F[..., 0, c]
    f1 = gux * (1.0 - alpha) - gxx * alpha                         # F[..., 1, c]
    ma = DD - SIGMA
    # (the torch reference clips both mu components with X - sigma; X == Y here)
    mu0 = jnp.clip(pos0 + jnp.clip(DT * f0, -ma, ma), SIGMA, X - SIGMA)
    mu1 = jnp.clip(pos1 + jnp.clip(DT * f1, -ma, ma), SIGMA, X - SIGMA)

    # ---- reintegration tracking: scatter form, one rolled array per (dx, dy) --------
    cap = min(1.0, 2.0 * SIGMA)
    inv_norm = 1.0 / (4.0 * SIGMA * SIGMA)
    area_x = {dx: jnp.clip(0.5 - jnp.abs(pos0 + float(dx) - mu0) + SIGMA, 0.0, cap)
              for dx in range(-DD, DD + 1)}
    area_y = {dy: jnp.clip(0.5 - jnp.abs(pos1 + float(dy) - mu1) + SIGMA, 0.0, cap)
              for dy in range(-DD, DD + 1)}
    acc = jnp.zeros((C, P), jnp.float32)
    for dx in range(-DD, DD + 1):
        gdx = cur * area_x[dx]                                     # hoisted out of the dy loop
        for dy in range(-DD, DD + 1):
            acc = acc + roll_flat(gdx * area_y[dy], dx, dy)

    out_ref[...] = acc * inv_norm


# --------------------------------------- wrapper ---------------------------------------
def make_lenia_flow(steps=1):
    """forward(x_hwc) applying `steps` iterations of Lenia_Flow.forward.
    steps=1 matches one torch forward() call; steps>1 keeps the bf16 circulant
    weight slab and the evolving state VMEM-resident across the in-kernel grid loop
    (no per-step weight re-DMA)."""
    assert steps >= 1
    w = _construct_conv_weights()                                   # (P, NK*P) bf16

    call = pl.pallas_call(
        _lenia_step_kernel,
        out_shape=jax.ShapeDtypeStruct((C, P), jnp.float32),
        grid_spec=pltpu.PrefetchScalarGridSpec(
            num_scalar_prefetch=0,
            grid=(steps,),
            in_specs=[
                pl.BlockSpec((P, NK * P), lambda s: (0, 0)),        # weights: resident block
                pl.BlockSpec((C, P), lambda s: (0, 0)),             # initial state
            ],
            out_specs=pl.BlockSpec((C, P), lambda s: (0, 0)),       # evolving state (lane-dense)
        ),
        compiler_params=pltpu.CompilerParams(
            dimension_semantics=("arbitrary",)),
    )

    @jax.jit
    def forward(x_hwc):
        # x_hwc: (X, Y, C) float32 -- same layout the torch module consumes.
        x_cp = jnp.transpose(x_hwc.astype(jnp.float32), (2, 0, 1)).reshape(C, P)
        out_cp = call(w, x_cp)                                      # (C, P)
        return jnp.transpose(out_cp.reshape(C, X, Y), (1, 2, 0))    # back to (X, Y, C)

    return forward


if __name__ == "__main__":
    key = jax.random.PRNGKey(0)
    x = jax.random.uniform(key, (X, Y, C), dtype=jnp.float32)       # non-negative Lenia state

    fwd = make_lenia_flow(steps=1)                                  # == one torch forward()
    out = jax.block_until_ready(fwd(x))
    assert out.shape == (X, Y, C)
    assert bool(jnp.all(jnp.isfinite(out)))

    # Multi-step simulation path: weights stay VMEM-resident across the grid loop.
    fwd8 = make_lenia_flow(steps=8)
    out8 = jax.block_until_ready(fwd8(x))
    assert out8.shape == (X, Y, C)
    assert bool(jnp.all(jnp.isfinite(out8)))

    print("KERNEL_OK")
</pallas_src>

<mosaic_0001>
module attributes {stable_mosaic.version = 11 : i64} {
  func.func @_lenia_step_kernel(%arg0: i32, %arg1: memref<256x1536xbf16, #tpu.memory_space<vmem>>, %arg2: memref<3x256xf32, #tpu.memory_space<vmem>>, %arg3: memref<3x256xf32, #tpu.memory_space<vmem>>) attributes {dimension_semantics = [#tpu.dimension_semantics<arbitrary>], iteration_bounds = array<i64: 1>, scalar_prefetch = 0 : i64, scratch_operands = 0 : i64, tpu.core_type = #tpu.core_type<tc>, window_params = [{pipeline_mode = #tpu.pipeline_mode<synchronous>, transform_indices = @transform_0, window_bounds = array<i64: 256, 1536>}, {pipeline_mode = #tpu.pipeline_mode<synchronous>, transform_indices = @transform_1, window_bounds = array<i64: 3, 256>}, {pipeline_mode = #tpu.pipeline_mode<synchronous>, transform_indices = @transform_2, window_bounds = array<i64: 3, 256>}]} {
    %c0_i32 = arith.constant 0 : i32
    %0 = arith.cmpi eq, %arg0, %c0_i32 : i32
    %1 = arith.extui %0 : i1 to i32
    %c0_i32_0 = arith.constant 0 : i32
    %2 = arith.cmpi ne, %1, %c0_i32_0 : i32
    scf.if %2 {
      %c0_216 = arith.constant 0 : index
      %c0_217 = arith.constant 0 : index
      %877 = vector.load %arg2[%c0_216, %c0_217] : memref<3x256xf32, #tpu.memory_space<vmem>>, vector<3x256xf32>
      %c0_218 = arith.constant 0 : index
      %c0_219 = arith.constant 0 : index
      %878 = vector.load %arg3[%c0_218, %c0_219] : memref<3x256xf32, #tpu.memory_space<vmem>>, vector<3x256xf32>
      tpu.vector_store %arg3[%c0_218, %c0_219], %877 {strides = array<i32>} : memref<3x256xf32, #tpu.memory_space<vmem>>, vector<3x256xf32>,
    } else {
    }
    %c0 = arith.constant 0 : index
    %c0_1 = arith.constant 0 : index
    %3 = vector.load %arg3[%c0, %c0_1] : memref<3x256xf32, #tpu.memory_space<vmem>>, vector<3x256xf32>
    %4 = tpu.iota {dimensions = array<i32: 1>} : vector<1x256xi32>
    %c4_i32 = arith.constant 4 : i32
    %5 = vector.broadcast %c4_i32 : i32 to vector<1x256xi32>
    %6 = arith.shrsi %4, %5 : vector<1x256xi32>
    %c15_i32 = arith.constant 15 : i32
    %7 = vector.broadcast %c15_i32 : i32 to vector<1x256xi32>
    %8 = arith.andi %4, %7 : vector<1x256xi32>
    %9 = arith.sitofp %6 : vector<1x256xi32> to vector<1x256xf32>
    %cst = arith.constant 5.000000e-01 : f32
    %10 = vector.broadcast %cst : f32 to vector<1x256xf32>
    %11 = arith.addf %9, %10 : vector<1x256xf32>
    %12 = arith.sitofp %8 : vector<1x256xi32> to vector<1x256xf32>
    %cst_2 = arith.constant 5.000000e-01 : f32
    %13 = vector.broadcast %cst_2 : f32 to vector<1x256xf32>
    %14 = arith.addf %12, %13 : vector<1x256xf32>
    %c-1_i32 = arith.constant -1 : i32
    %15 = vector.broadcast %c-1_i32 : i32 to vector<1x256xi32>
    %16 = arith.addi %6, %15 : vector<1x256xi32>
    %c0_i32_3 = arith.constant 0 : i32
    %17 = vector.broadcast %c0_i32_3 : i32 to vector<1x256xi32>
    %18 = arith.cmpi sge, %16, %17 : vector<1x256xi32>
    %c-1_i32_4 = arith.constant -1 : i32
    %19 = vector.broadcast %c-1_i32_4 : i32 to vector<1x256xi32>
    %20 = arith.addi %6, %19 : vector<1x256xi32>
    %c16_i32 = arith.constant 16 : i32
    %21 = vector.broadcast %c16_i32 : i32 to vector<1x256xi32>
    %22 = arith.cmpi slt, %20, %21 : vector<1x256xi32>
    %23 = arith.andi %18, %22 : vector<1x256xi1>
    %c-1_i32_5 = arith.constant -1 : i32
    %24 = vector.broadcast %c-1_i32_5 : i32 to vector<1x256xi32>
    %25 = arith.addi %8, %24 : vector<1x256xi32>
    %c0_i32_6 = arith.constant 0 : i32
    %26 = vector.broadcast %c0_i32_6 : i32 to vector<1x256xi32>
    %27 = arith.cmpi sge, %25, %26 : vector<1x256xi32>
    %28 = arith.andi %23, %27 : vector<1x256xi1>
    %c-1_i32_7 = arith.constant -1 : i32
    %29 = vector.broadcast %c-1_i32_7 : i32 to vector<1x256xi32>
    %30 = arith.addi %8, %29 : vector<1x256xi32>
    %c16_i32_8 = arith.constant 16 : i32
    %31 = vector.broadcast %c16_i32_8 : i32 to vector<1x256xi32>
    %32 = arith.cmpi slt, %30, %31 : vector<1x256xi32>
    %33 = arith.andi %28, %32 : vector<1x256xi1>
    %cst_9 = arith.constant 1.000000e+00 : f32
    %cst_10 = arith.constant 0.000000e+00 : f32
    %34 = vector.broadcast %cst_9 : f32 to vector<1x256xf32>
    %35 = vector.broadcast %cst_10 : f32 to vector<1x256xf32>
    %36 = arith.select %33, %34, %35 : vector<1x256xi1>, vector<1x256xf32>
    %c-1_i32_11 = arith.constant -1 : i32
    %37 = vector.broadcast %c-1_i32_11 : i32 to vector<1x256xi32>
    %38 = arith.addi %6, %37 : vector<1x256xi32>
    %c0_i32_12 = arith.constant 0 : i32
    %39 = vector.broadcast %c0_i32_12 : i32 to vector<1x256xi32>
    %40 = arith.cmpi sge, %38, %39 : vector<1x256xi32>
    %c-1_i32_13 = arith.constant -1 : i32
    %41 = vector.broadcast %c-1_i32_13 : i32 to vector<1x256xi32>
    %42 = arith.addi %6, %41 : vector<1x256xi32>
    %c16_i32_14 = arith.constant 16 : i32
    %43 = vector.broadcast %c16_i32_14 : i32 to vector<1x256xi32>
    %44 = arith.cmpi slt, %42, %43 : vector<1x256xi32>
    %45 = arith.andi %40, %44 : vector<1x256xi1>
    %c0_i32_15 = arith.constant 0 : i32
    %46 = vector.broadcast %c0_i32_15 : i32 to vector<1x256xi32>
    %47 = arith.addi %8, %46 : vector<1x256xi32>
    %c0_i32_16 = arith.constant 0 : i32
    %48 = vector.broadcast %c0_i32_16 : i32 to vector<1x256xi32>
    %49 = arith.cmpi sge, %47, %48 : vector<1x256xi32>
    %50 = arith.andi %45, %49 : vector<1x256xi1>
    %c0_i32_17 = arith.constant 0 : i32
    %51 = vector.broadcast %c0_i32_17 : i32 to vector<1x256xi32>
    %52 = arith.addi %8, %51 : vector<1x256xi32>
    %c16_i32_18 = arith.constant 16 : i32
    %53 = vector.broadcast %c16_i32_18 : i32 to vector<1x256xi32>
    %54 = arith.cmpi slt, %52, %53 : vector<1x256xi32>
    %55 = arith.andi %50, %54 : vector<1x256xi1>
    %cst_19 = arith.constant 1.000000e+00 : f32
    %cst_20 = arith.constant 0.000000e+00 : f32
    %56 = vector.broadcast %cst_19 : f32 to vector<1x256xf32>
    %57 = vector.broadcast %cst_20 : f32 to vector<1x256xf32>
    %58 = arith.select %55, %56, %57 : vector<1x256xi1>, vector<1x256xf32>
    %c-1_i32_21 = arith.constant -1 : i32
    %59 = vector.broadcast %c-1_i32_21 : i32 to vector<1x256xi32>
    %60 = arith.addi %6, %59 : vector<1x256xi32>
    %c0_i32_22 = arith.constant 0 : i32
    %61 = vector.broadcast %c0_i32_22 : i32 to vector<1x256xi32>
    %62 = arith.cmpi sge, %60, %61 : vector<1x256xi32>
    %c-1_i32_23 = arith.constant -1 : i32
    %63 = vector.broadcast %c-1_i32_23 : i32 to vector<1x256xi32>
    %64 = arith.addi %6, %63 : vector<1x256xi32>
    %c16_i32_24 = arith.constant 16 : i32
    %65 = vector.broadcast %c16_i32_24 : i32 to vector<1x256xi32>
    %66 = arith.cmpi slt, %64, %65 : vector<1x256xi32>
    %67 = arith.andi %62, %66 : vector<1x256xi1>
    %c1_i32 = arith.constant 1 : i32
    %68 = vector.broadcast %c1_i32 : i32 to vector<1x256xi32>
    %69 = arith.addi %8, %68 : vector<1x256xi32>
    %c0_i32_25 = arith.constant 0 : i32
    %70 = vector.broadcast %c0_i32_25 : i32 to vector<1x256xi32>
    %71 = arith.cmpi sge, %69, %70 : vector<1x256xi32>
    %72 = arith.andi %67, %71 : vector<1x256xi1>
    %c1_i32_26 = arith.constant 1 : i32
    %73 = vector.broadcast %c1_i32_26 : i32 to vector<1x256xi32>
    %74 = arith.addi %8, %73 : vector<1x256xi32>
    %c16_i32_27 = arith.constant 16 : i32
    %75 = vector.broadcast %c16_i32_27 : i32 to vector<1x256xi32>
    %76 = arith.cmpi slt, %74, %75 : vector<1x256xi32>
    %77 = arith.andi %72, %76 : vector<1x256xi1>
    %cst_28 = arith.constant 1.000000e+00 : f32
    %cst_29 = arith.constant 0.000000e+00 : f32
    %78 = vector.broadcast %cst_28 : f32 to vector<1x256xf32>
    %79 = vector.broadcast %cst_29 : f32 to vector<1x256xf32>
    %80 = arith.select %77, %78, %79 : vector<1x256xi1>, vector<1x256xf32>
    %c0_i32_30 = arith.constant 0 : i32
    %81 = vector.broadcast %c0_i32_30 : i32 to vector<1x256xi32>
    %82 = arith.addi %6, %81 : vector<1x256xi32>
    %c0_i32_31 = arith.constant 0 : i32
    %83 = vector.broadcast %c0_i32_31 : i32 to vector<1x256xi32>
    %84 = arith.cmpi sge, %82, %83 : vector<1x256xi32>
    %c0_i32_32 = arith.constant 0 : i32
    %85 = vector.broadcast %c0_i32_32 : i32 to vector<1x256xi32>
    %86 = arith.addi %6, %85 : vector<1x256xi32>
    %c16_i32_33 = arith.constant 16 : i32
    %87 = vector.broadcast %c16_i32_33 : i32 to vector<1x256xi32>
    %88 = arith.cmpi slt, %86, %87 : vector<1x256xi32>
    %89 = arith.andi %84, %88 : vector<1x256xi1>
    %c-1_i32_34 = arith.constant -1 : i32
    %90 = vector.broadcast %c-1_i32_34 : i32 to vector<1x256xi32>
    %91 = arith.addi %8, %90 : vector<1x256xi32>
    %c0_i32_35 = arith.constant 0 : i32
    %92 = vector.broadcast %c0_i32_35 : i32 to vector<1x256xi32>
    %93 = arith.cmpi sge, %91, %92 : vector<1x256xi32>
    %94 = arith.andi %89, %93 : vector<1x256xi1>
    %c-1_i32_36 = arith.constant -1 : i32
    %95 = vector.broadcast %c-1_i32_36 : i32 to vector<1x256xi32>
    %96 = arith.addi %8, %95 : vector<1x256xi32>
    %c16_i32_37 = arith.constant 16 : i32
    %97 = vector.broadcast %c16_i32_37 : i32 to vector<1x256xi32>
    %98 = arith.cmpi slt, %96, %97 : vector<1x256xi32>
    %99 = arith.andi %94, %98 : vector<1x256xi1>
    %cst_38 = arith.constant 1.000000e+00 : f32
    %cst_39 = arith.constant 0.000000e+00 : f32
    %100 = vector.broadcast %cst_38 : f32 to vector<1x256xf32>
    %101 = vector.broadcast %cst_39 : f32 to vector<1x256xf32>
    %102 = arith.select %99, %100, %101 : vector<1x256xi1>, vector<1x256xf32>
    %c0_i32_40 = arith.constant 0 : i32
    %103 = vector.broadcast %c0_i32_40 : i32 to vector<1x256xi32>
    %104 = arith.addi %6, %103 : vector<1x256xi32>
    %c0_i32_41 = arith.constant 0 : i32
    %105 = vector.broadcast %c0_i32_41 : i32 to vector<1x256xi32>
    %106 = arith.cmpi sge, %104, %105 : vector<1x256xi32>
    %c0_i32_42 = arith.constant 0 : i32
    %107 = vector.broadcast %c0_i32_42 : i32 to vector<1x256xi32>
    %108 = arith.addi %6, %107 : vector<1x256xi32>
    %c16_i32_43 = arith.constant 16 : i32
    %109 = vector.broadcast %c16_i32_43 : i32 to vector<1x256xi32>
    %110 = arith.cmpi slt, %108, %109 : vector<1x256xi32>
    %111 = arith.andi %106, %110 : vector<1x256xi1>
    %c1_i32_44 = arith.constant 1 : i32
    %112 = vector.broadcast %c1_i32_44 : i32 to vector<1x256xi32>
    %113 = arith.addi %8, %112 : vector<1x256xi32>
    %c0_i32_45 = arith.constant 0 : i32
    %114 = vector.broadcast %c0_i32_45 : i32 to vector<1x256xi32>
    %115 = arith.cmpi sge, %113, %114 : vector<1x256xi32>
    %116 = arith.andi %111, %115 : vector<1x256xi1>
    %c1_i32_46 = arith.constant 1 : i32
    %117 = vector.broadcast %c1_i32_46 : i32 to vector<1x256xi32>
    %118 = arith.addi %8, %117 : vector<1x256xi32>
    %c16_i32_47 = arith.constant 16 : i32
    %119 = vector.broadcast %c16_i32_47 : i32 to vector<1x256xi32>
    %120 = arith.cmpi slt, %118, %119 : vector<1x256xi32>
    %121 = arith.andi %116, %120 : vector<1x256xi1>
    %cst_48 = arith.constant 1.000000e+00 : f32
    %cst_49 = arith.constant 0.000000e+00 : f32
    %122 = vector.broadcast %cst_48 : f32 to vector<1x256xf32>
    %123 = vector.broadcast %cst_49 : f32 to vector<1x256xf32>
    %124 = arith.select %121, %122, %123 : vector<1x256xi1>, vector<1x256xf32>
    %c1_i32_50 = arith.constant 1 : i32
    %125 = vector.broadcast %c1_i32_50 : i32 to vector<1x256xi32>
    %126 = arith.addi %6, %125 : vector<1x256xi32>
    %c0_i32_51 = arith.constant 0 : i32
    %127 = vector.broadcast %c0_i32_51 : i32 to vector<1x256xi32>
    %128 = arith.cmpi sge, %126, %127 : vector<1x256xi32>
    %c1_i32_52 = arith.constant 1 : i32
    %129 = vector.broadcast %c1_i32_52 : i32 to vector<1x256xi32>
    %130 = arith.addi %6, %129 : vector<1x256xi32>
    %c16_i32_53 = arith.constant 16 : i32
    %131 = vector.broadcast %c16_i32_53 : i32 to vector<1x256xi32>
    %132 = arith.cmpi slt, %130, %131 : vector<1x256xi32>
    %133 = arith.andi %128, %132 : vector<1x256xi1>
    %c-1_i32_54 = arith.constant -1 : i32
    %134 = vector.broadcast %c-1_i32_54 : i32 to vector<1x256xi32>
    %135 = arith.addi %8, %134 : vector<1x256xi32>
    %c0_i32_55 = arith.constant 0 : i32
    %136 = vector.broadcast %c0_i32_55 : i32 to vector<1x256xi32>
    %137 = arith.cmpi sge, %135, %136 : vector<1x256xi32>
    %138 = arith.andi %133, %137 : vector<1x256xi1>
    %c-1_i32_56 = arith.constant -1 : i32
    %139 = vector.broadcast %c-1_i32_56 : i32 to vector<1x256xi32>
    %140 = arith.addi %8, %139 : vector<1x256xi32>
    %c16_i32_57 = arith.constant 16 : i32
    %141 = vector.broadcast %c16_i32_57 : i32 to vector<1x256xi32>
    %142 = arith.cmpi slt, %140, %141 : vector<1x256xi32>
    %143 = arith.andi %138, %142 : vector<1x256xi1>
    %cst_58 = arith.constant 1.000000e+00 : f32
    %cst_59 = arith.constant 0.000000e+00 : f32
    %144 = vector.broadcast %cst_58 : f32 to vector<1x256xf32>
    %145 = vector.broadcast %cst_59 : f32 to vector<1x256xf32>
    %146 = arith.select %143, %144, %145 : vector<1x256xi1>, vector<1x256xf32>
    %c1_i32_60 = arith.constant 1 : i32
    %147 = vector.broadcast %c1_i32_60 : i32 to vector<1x256xi32>
    %148 = arith.addi %6, %147 : vector<1x256xi32>
    %c0_i32_61 = arith.constant 0 : i32
    %149 = vector.broadcast %c0_i32_61 : i32 to vector<1x256xi32>
    %150 = arith.cmpi sge, %148, %149 : vector<1x256xi32>
    %c1_i32_62 = arith.constant 1 : i32
    %151 = vector.broadcast %c1_i32_62 : i32 to vector<1x256xi32>
    %152 = arith.addi %6, %151 : vector<1x256xi32>
    %c16_i32_63 = arith.constant 16 : i32
    %153 = vector.broadcast %c16_i32_63 : i32 to vector<1x256xi32>
    %154 = arith.cmpi slt, %152, %153 : vector<1x256xi32>
    %155 = arith.andi %150, %154 : vector<1x256xi1>
    %c0_i32_64 = arith.constant 0 : i32
    %156 = vector.broadcast %c0_i32_64 : i32 to vector<1x256xi32>
    %157 = arith.addi %8, %156 : vector<1x256xi32>
    %c0_i32_65 = arith.constant 0 : i32
    %158 = vector.broadcast %c0_i32_65 : i32 to vector<1x256xi32>
    %159 = arith.cmpi sge, %157, %158 : vector<1x256xi32>
    %160 = arith.andi %155, %159 : vector<1x256xi1>
    %c0_i32_66 = arith.constant 0 : i32
    %161 = vector.broadcast %c0_i32_66 : i32 to vector<1x256xi32>
    %162 = arith.addi %8, %161 : vector<1x256xi32>
    %c16_i32_67 = arith.constant 16 : i32
    %163 = vector.broadcast %c16_i32_67 : i32 to vector<1x256xi32>
    %164 = arith.cmpi slt, %162, %163 : vector<1x256xi32>
    %165 = arith.andi %160, %164 : vector<1x256xi1>
    %cst_68 = arith.constant 1.000000e+00 : f32
    %cst_69 = arith.constant 0.000000e+00 : f32
    %166 = vector.broadcast %cst_68 : f32 to vector<1x256xf32>
    %167 = vector.broadcast %cst_69 : f32 to vector<1x256xf32>
    %168 = arith.select %165, %166, %167 : vector<1x256xi1>, vector<1x256xf32>
    %c1_i32_70 = arith.constant 1 : i32
    %169 = vector.broadcast %c1_i32_70 : i32 to vector<1x256xi32>
    %170 = arith.addi %6, %169 : vector<1x256xi32>
    %c0_i32_71 = arith.constant 0 : i32
    %171 = vector.broadcast %c0_i32_71 : i32 to vector<1x256xi32>
    %172 = arith.cmpi sge, %170, %171 : vector<1x256xi32>
    %c1_i32_72 = arith.constant 1 : i32
    %173 = vector.broadcast %c1_i32_72 : i32 to vector<1x256xi32>
    %174 = arith.addi %6, %173 : vector<1x256xi32>
    %c16_i32_73 = arith.constant 16 : i32
    %175 = vector.broadcast %c16_i32_73 : i32 to vector<1x256xi32>
    %176 = arith.cmpi slt, %174, %175 : vector<1x256xi32>
    %177 = arith.andi %172, %176 : vector<1x256xi1>
    %c1_i32_74 = arith.constant 1 : i32
    %178 = vector.broadcast %c1_i32_74 : i32 to vector<1x256xi32>
    %179 = arith.addi %8, %178 : vector<1x256xi32>
    %c0_i32_75 = arith.constant 0 : i32
    %180 = vector.broadcast %c0_i32_75 : i32 to vector<1x256xi32>
    %181 = arith.cmpi sge, %179, %180 : vector<1x256xi32>
    %182 = arith.andi %177, %181 : vector<1x256xi1>
    %c1_i32_76 = arith.constant 1 : i32
    %183 = vector.broadcast %c1_i32_76 : i32 to vector<1x256xi32>
    %184 = arith.addi %8, %183 : vector<1x256xi32>
    %c16_i32_77 = arith.constant 16 : i32
    %185 = vector.broadcast %c16_i32_77 : i32 to vector<1x256xi32>
    %186 = arith.cmpi slt, %184, %185 : vector<1x256xi32>
    %187 = arith.andi %182, %186 : vector<1x256xi1>
    %cst_78 = arith.constant 1.000000e+00 : f32
    %cst_79 = arith.constant 0.000000e+00 : f32
    %188 = vector.broadcast %cst_78 : f32 to vector<1x256xf32>
    %189 = vector.broadcast %cst_79 : f32 to vector<1x256xf32>
    %190 = arith.select %187, %188, %189 : vector<1x256xi1>, vector<1x256xf32>
    %c-2_i32 = arith.constant -2 : i32
    %191 = vector.broadcast %c-2_i32 : i32 to vector<1x256xi32>
    %192 = arith.cmpi sge, %8, %191 : vector<1x256xi32>
    %c14_i32 = arith.constant 14 : i32
    %193 = vector.broadcast %c14_i32 : i32 to vector<1x256xi32>
    %194 = arith.cmpi slt, %8, %193 : vector<1x256xi32>
    %195 = arith.andi %192, %194 : vector<1x256xi1>
    %cst_80 = arith.constant 1.000000e+00 : f32
    %cst_81 = arith.constant 0.000000e+00 : f32
    %196 = vector.broadcast %cst_80 : f32 to vector<1x256xf32>
    %197 = vector.broadcast %cst_81 : f32 to vector<1x256xf32>
    %198 = arith.select %195, %196, %197 : vector<1x256xi1>, vector<1x256xf32>
    %cst_82 = arith.constant 1.000000e+00 : f32
    %199 = vector.broadcast %cst_82 : f32 to vector<1x256xf32>
    %200 = arith.subf %199, %198 : vector<1x256xf32>
    %c-1_i32_83 = arith.constant -1 : i32
    %201 = vector.broadcast %c-1_i32_83 : i32 to vector<1x256xi32>
    %202 = arith.cmpi sge, %8, %201 : vector<1x256xi32>
    %c15_i32_84 = arith.constant 15 : i32
    %203 = vector.broadcast %c15_i32_84 : i32 to vector<1x256xi32>
    %204 = arith.cmpi slt, %8, %203 : vector<1x256xi32>
    %205 = arith.andi %202, %204 : vector<1x256xi1>
    %cst_85 = arith.constant 1.000000e+00 : f32
    %cst_86 = arith.constant 0.000000e+00 : f32
    %206 = vector.broadcast %cst_85 : f32 to vector<1x256xf32>
    %207 = vector.broadcast %cst_86 : f32 to vector<1x256xf32>
    %208 = arith.select %205, %206, %207 : vector<1x256xi1>, vector<1x256xf32>
    %cst_87 = arith.constant 1.000000e+00 : f32
    %209 = vector.broadcast %cst_87 : f32 to vector<1x256xf32>
    %210 = arith.subf %209, %208 : vector<1x256xf32>
    %c1_i32_88 = arith.constant 1 : i32
    %211 = vector.broadcast %c1_i32_88 : i32 to vector<1x256xi32>
    %212 = arith.cmpi sge, %8, %211 : vector<1x256xi32>
    %c17_i32 = arith.constant 17 : i32
    %213 = vector.broadcast %c17_i32 : i32 to vector<1x256xi32>
    %214 = arith.cmpi slt, %8, %213 : vector<1x256xi32>
    %215 = arith.andi %212, %214 : vector<1x256xi1>
    %cst_89 = arith.constant 1.000000e+00 : f32
    %cst_90 = arith.constant 0.000000e+00 : f32
    %216 = vector.broadcast %cst_89 : f32 to vector<1x256xf32>
    %217 = vector.broadcast %cst_90 : f32 to vector<1x256xf32>
    %218 = arith.select %215, %216, %217 : vector<1x256xi1>, vector<1x256xf32>
    %cst_91 = arith.constant 1.000000e+00 : f32
    %219 = vector.broadcast %cst_91 : f32 to vector<1x256xf32>
    %220 = arith.subf %219, %218 : vector<1x256xf32>
    %c2_i32 = arith.constant 2 : i32
    %221 = vector.broadcast %c2_i32 : i32 to vector<1x256xi32>
    %222 = arith.cmpi sge, %8, %221 : vector<1x256xi32>
    %c18_i32 = arith.constant 18 : i32
    %223 = vector.broadcast %c18_i32 : i32 to vector<1x256xi32>
    %224 = arith.cmpi slt, %8, %223 : vector<1x256xi32>
    %225 = arith.andi %222, %224 : vector<1x256xi1>
    %cst_92 = arith.constant 1.000000e+00 : f32
    %cst_93 = arith.constant 0.000000e+00 : f32
    %226 = vector.broadcast %cst_92 : f32 to vector<1x256xf32>
    %227 = vector.broadcast %cst_93 : f32 to vector<1x256xf32>
    %228 = arith.select %225, %226, %227 : vector<1x256xi1>, vector<1x256xf32>
    %cst_94 = arith.constant 1.000000e+00 : f32
    %229 = vector.broadcast %cst_94 : f32 to vector<1x256xf32>
    %230 = arith.subf %229, %228 : vector<1x256xf32>
    %231 = arith.truncf %3 : vector<3x256xf32> to vector<3x256xbf16>
    %c0_95 = arith.constant 0 : index
    %c0_96 = arith.constant 0 : index
    %232 = vector.load %arg1[%c0_95, %c0_96] : memref<256x1536xbf16, #tpu.memory_space<vmem>>, vector<256x1536xbf16>
    %cst_97 = arith.constant dense<0.000000e+00> : vector<3x1536xf32>
    %233 = tpu.matmul %231, %232, %cst_97 {dimension_numbers = #tpu.dot_dimension_numbers<[1], [0], [0], [1], [0, 0, 1, 1], [], []>} : vector<3x256xbf16>, vector<256x1536xbf16>, vector<3x1536xf32> -> vector<3x1536xf32>
    %cst_98 = arith.constant 0.000000e+00 : f32
    %234 = vector.broadcast %cst_98 : f32 to vector<1x256xf32>
    %cst_99 = arith.constant 0.000000e+00 : f32
    %235 = vector.broadcast %cst_99 : f32 to vector<1x256xf32>
    %cst_100 = arith.constant 0.000000e+00 : f32
    %236 = vector.broadcast %cst_100 : f32 to vector<1x256xf32>
    %237 = vector.extract_strided_slice %233 {offsets = [0, 0], sizes = [1, 256], strides = [1, 1]} : vector<3x1536xf32> to vector<1x256xf32>
    %cst_101 = arith.constant 1.500000e-01 : f32
    %238 = vector.broadcast %cst_101 : f32 to vector<1x256xf32>
    %239 = arith.subf %237, %238 : vector<1x256xf32>
    %cst_102 = arith.constant 66.6666641 : f32
    %240 = vector.broadcast %cst_102 : f32 to vector<1x256xf32>
    %241 = arith.mulf %239, %240 : vector<1x256xf32>
    %cst_103 = arith.constant -5.000000e-01 : f32
    %242 = vector.broadcast %cst_103 : f32 to vector<1x256xf32>
    %243 = arith.mulf %242, %241 : vector<1x256xf32>
    %244 = arith.mulf %243, %241 : vector<1x256xf32>
    %245 = math.exp %244 : vector<1x256xf32>
    %cst_104 = arith.constant 2.000000e+00 : f32
    %246 = vector.broadcast %cst_104 : f32 to vector<1x256xf32>
    %247 = arith.mulf %245, %246 : vector<1x256xf32>
    %cst_105 = arith.constant 1.000000e+00 : f32
    %248 = vector.broadcast %cst_105 : f32 to vector<1x256xf32>
    %249 = arith.subf %247, %248 : vector<1x256xf32>
    %cst_106 = arith.constant 1.000000e+00 : f32
    %250 = vector.broadcast %cst_106 : f32 to vector<1x256xf32>
    %251 = arith.mulf %249, %250 : vector<1x256xf32>
    %cst_107 = arith.constant 1.000000e+00 : f32
    %252 = vector.broadcast %cst_107 : f32 to vector<1x256xf32>
    %253 = arith.mulf %252, %251 : vector<1x256xf32>
    %254 = arith.addf %234, %253 : vector<1x256xf32>
    %255 = vector.extract_strided_slice %233 {offsets = [0, 256], sizes = [1, 256], strides = [1, 1]} : vector<3x1536xf32> to vector<1x256xf32>
    %cst_108 = arith.constant 2.200000e-01 : f32
    %256 = vector.broadcast %cst_108 : f32 to vector<1x256xf32>
    %257 = arith.subf %255, %256 : vector<1x256xf32>
    %cst_109 = arith.constant 33.3333321 : f32
    %258 = vector.broadcast %cst_109 : f32 to vector<1x256xf32>
    %259 = arith.mulf %257, %258 : vector<1x256xf32>
    %cst_110 = arith.constant -5.000000e-01 : f32
    %260 = vector.broadcast %cst_110 : f32 to vector<1x256xf32>
    %261 = arith.mulf %260, %259 : vector<1x256xf32>
    %262 = arith.mulf %261, %259 : vector<1x256xf32>
    %263 = math.exp %262 : vector<1x256xf32>
    %cst_111 = arith.constant 2.000000e+00 : f32
    %264 = vector.broadcast %cst_111 : f32 to vector<1x256xf32>
    %265 = arith.mulf %263, %264 : vector<1x256xf32>
    %cst_112 = arith.constant 1.000000e+00 : f32
    %266 = vector.broadcast %cst_112 : f32 to vector<1x256xf32>
    %267 = arith.subf %265, %266 : vector<1x256xf32>
    %cst_113 = arith.constant 0.699999988 : f32
    %268 = vector.broadcast %cst_113 : f32 to vector<1x256xf32>
    %269 = arith.mulf %267, %268 : vector<1x256xf32>
    %cst_114 = arith.constant 0.699999988 : f32
    %270 = vector.broadcast %cst_114 : f32 to vector<1x256xf32>
    %271 = arith.mulf %270, %269 : vector<1x256xf32>
    %272 = arith.addf %235, %271 : vector<1x256xf32>
    %273 = vector.extract_strided_slice %233 {offsets = [1, 512], sizes = [1, 256], strides = [1, 1]} : vector<3x1536xf32> to vector<1x256xf32>
    %cst_115 = arith.constant 1.800000e-01 : f32
    %274 = vector.broadcast %cst_115 : f32 to vector<1x256xf32>
    %275 = arith.subf %273, %274 : vector<1x256xf32>
    %cst_116 = arith.constant 4.000000e+01 : f32
    %276 = vector.broadcast %cst_116 : f32 to vector<1x256xf32>
    %277 = arith.mulf %275, %276 : vector<1x256xf32>
    %cst_117 = arith.constant -5.000000e-01 : f32
    %278 = vector.broadcast %cst_117 : f32 to vector<1x256xf32>
    %279 = arith.mulf %278, %277 : vector<1x256xf32>
    %280 = arith.mulf %279, %277 : vector<1x256xf32>
    %281 = math.exp %280 : vector<1x256xf32>
    %cst_118 = arith.constant 2.000000e+00 : f32
    %282 = vector.broadcast %cst_118 : f32 to vector<1x256xf32>
    %283 = arith.mulf %281, %282 : vector<1x256xf32>
    %cst_119 = arith.constant 1.000000e+00 : f32
    %284 = vector.broadcast %cst_119 : f32 to vector<1x256xf32>
    %285 = arith.subf %283, %284 : vector<1x256xf32>
    %cst_120 = arith.constant 0.899999976 : f32
    %286 = vector.broadcast %cst_120 : f32 to vector<1x256xf32>
    %287 = arith.mulf %285, %286 : vector<1x256xf32>
    %cst_121 = arith.constant 0.899999976 : f32
    %288 = vector.broadcast %cst_121 : f32 to vector<1x256xf32>
    %289 = arith.mulf %288, %287 : vector<1x256xf32>
    %290 = arith.addf %272, %289 : vector<1x256xf32>
    %291 = vector.extract_strided_slice %233 {offsets = [1, 768], sizes = [1, 256], strides = [1, 1]} : vector<3x1536xf32> to vector<1x256xf32>
    %cst_122 = arith.constant 3.000000e-01 : f32
    %292 = vector.broadcast %cst_122 : f32 to vector<1x256xf32>
    %293 = arith.subf %291, %292 : vector<1x256xf32>
    %cst_123 = arith.constant 16.666666 : f32
    %294 = vector.broadcast %cst_123 : f32 to vector<1x256xf32>
    %295 = arith.mulf %293, %294 : vector<1x256xf32>
    %cst_124 = arith.constant -5.000000e-01 : f32
    %296 = vector.broadcast %cst_124 : f32 to vector<1x256xf32>
    %297 = arith.mulf %296, %295 : vector<1x256xf32>
    %298 = arith.mulf %297, %295 : vector<1x256xf32>
    %299 = math.exp %298 : vector<1x256xf32>
    %cst_125 = arith.constant 2.000000e+00 : f32
    %300 = vector.broadcast %cst_125 : f32 to vector<1x256xf32>
    %301 = arith.mulf %299, %300 : vector<1x256xf32>
    %cst_126 = arith.constant 1.000000e+00 : f32
    %302 = vector.broadcast %cst_126 : f32 to vector<1x256xf32>
    %303 = arith.subf %301, %302 : vector<1x256xf32>
    %cst_127 = arith.constant 6.000000e-01 : f32
    %304 = vector.broadcast %cst_127 : f32 to vector<1x256xf32>
    %305 = arith.mulf %303, %304 : vector<1x256xf32>
    %cst_128 = arith.constant 6.000000e-01 : f32
    %306 = vector.broadcast %cst_128 : f32 to vector<1x256xf32>
    %307 = arith.mulf %306, %305 : vector<1x256xf32>
    %308 = arith.addf %236, %307 : vector<1x256xf32>
    %309 = vector.extract_strided_slice %233 {offsets = [2, 1024], sizes = [1, 256], strides = [1, 1]} : vector<3x1536xf32> to vector<1x256xf32>
    %cst_129 = arith.constant 1.200000e-01 : f32
    %310 = vector.broadcast %cst_129 : f32 to vector<1x256xf32>
    %311 = arith.subf %309, %310 : vector<1x256xf32>
    %cst_130 = arith.constant 5.000000e+01 : f32
    %312 = vector.broadcast %cst_130 : f32 to vector<1x256xf32>
    %313 = arith.mulf %311, %312 : vector<1x256xf32>
    %cst_131 = arith.constant -5.000000e-01 : f32
    %314 = vector.broadcast %cst_131 : f32 to vector<1x256xf32>
    %315 = arith.mulf %314, %313 : vector<1x256xf32>
    %316 = arith.mulf %315, %313 : vector<1x256xf32>
    %317 = math.exp %316 : vector<1x256xf32>
    %cst_132 = arith.constant 2.000000e+00 : f32
    %318 = vector.broadcast %cst_132 : f32 to vector<1x256xf32>
    %319 = arith.mulf %317, %318 : vector<1x256xf32>
    %cst_133 = arith.constant 1.000000e+00 : f32
    %320 = vector.broadcast %cst_133 : f32 to vector<1x256xf32>
    %321 = arith.subf %319, %320 : vector<1x256xf32>
    %cst_134 = arith.constant 8.000000e-01 : f32
    %322 = vector.broadcast %cst_134 : f32 to vector<1x256xf32>
    %323 = arith.mulf %321, %322 : vector<1x256xf32>
    %cst_135 = arith.constant 8.000000e-01 : f32
    %324 = vector.broadcast %cst_135 : f32 to vector<1x256xf32>
    %325 = arith.mulf %324, %323 : vector<1x256xf32>
    %326 = arith.addf %308, %325 : vector<1x256xf32>
    %327 = vector.extract_strided_slice %233 {offsets = [2, 1280], sizes = [1, 256], strides = [1, 1]} : vector<3x1536xf32> to vector<1x256xf32>
    %cst_136 = arith.constant 2.500000e-01 : f32
    %328 = vector.broadcast %cst_136 : f32 to vector<1x256xf32>
    %329 = arith.subf %327, %328 : vector<1x256xf32>
    %cst_137 = arith.constant 2.500000e+01 : f32
    %330 = vector.broadcast %cst_137 : f32 to vector<1x256xf32>
    %331 = arith.mulf %329, %330 : vector<1x256xf32>
    %cst_138 = arith.constant -5.000000e-01 : f32
    %332 = vector.broadcast %cst_138 : f32 to vector<1x256xf32>
    %333 = arith.mulf %332, %331 : vector<1x256xf32>
    %334 = arith.mulf %333, %331 : vector<1x256xf32>
    %335 = math.exp %334 : vector<1x256xf32>
    %cst_139 = arith.constant 2.000000e+00 : f32
    %336 = vector.broadcast %cst_139 : f32 to vector<1x256xf32>
    %337 = arith.mulf %335, %336 : vector<1x256xf32>
    %cst_140 = arith.constant 1.000000e+00 : f32
    %338 = vector.broadcast %cst_140 : f32 to vector<1x256xf32>
    %339 = arith.subf %337, %338 : vector<1x256xf32>
    %cst_141 = arith.constant 5.000000e-01 : f32
    %340 = vector.broadcast %cst_141 : f32 to vector<1x256xf32>
    %341 = arith.mulf %339, %340 : vector<1x256xf32>
    %cst_142 = arith.constant 5.000000e-01 : f32
    %342 = vector.broadcast %cst_142 : f32 to vector<1x256xf32>
    %343 = arith.mulf %342, %341 : vector<1x256xf32>
    %344 = arith.addf %254, %343 : vector<1x256xf32>
    %345 = vector.extract_strided_slice %3 {offsets = [0, 0], sizes = [1, 256], strides = [1, 1]} : vector<3x256xf32> to vector<1x256xf32>
    %346 = vector.extract_strided_slice %3 {offsets = [1, 0], sizes = [1, 256], strides = [1, 1]} : vector<3x256xf32> to vector<1x256xf32>
    %347 = arith.addf %345, %346 : vector<1x256xf32>
    %348 = vector.extract_strided_slice %3 {offsets = [2, 0], sizes = [1, 256], strides = [1, 1]} : vector<3x256xf32> to vector<1x256xf32>
    %349 = arith.addf %347, %348 : vector<1x256xf32>
    %350 = tpu.concatenate %344, %290, %326, %349 in 0 : vector<1x256xf32>, vector<1x256xf32>, vector<1x256xf32>, vector<1x256xf32> -> vector<4x256xf32>
    %351 = vector.extract_strided_slice %350 {offsets = [0, 239], sizes = [4, 17], strides = [1, 1]} : vector<4x256xf32> to vector<4x17xf32>
    %352 = vector.extract_strided_slice %350 {offsets = [0, 0], sizes = [4, 239], strides = [1, 1]} : vector<4x256xf32> to vector<4x239xf32>
    %353 = tpu.concatenate %351, %352 in 1 : vector<4x17xf32>, vector<4x239xf32> -> vector<4x256xf32>
    %354 = vector.broadcast %36 : vector<1x256xf32> to vector<4x256xf32>
    %355 = arith.mulf %353, %354 : vector<4x256xf32>
    %356 = vector.extract_strided_slice %350 {offsets = [0, 240], sizes = [4, 16], strides = [1, 1]} : vector<4x256xf32> to vector<4x16xf32>
    %357 = vector.extract_strided_slice %350 {offsets = [0, 0], sizes = [4, 240], strides = [1, 1]} : vector<4x256xf32> to vector<4x240xf32>
    %358 = tpu.concatenate %356, %357 in 1 : vector<4x16xf32>, vector<4x240xf32> -> vector<4x256xf32>
    %359 = vector.broadcast %58 : vector<1x256xf32> to vector<4x256xf32>
    %360 = arith.mulf %358, %359 : vector<4x256xf32>
    %361 = vector.extract_strided_slice %350 {offsets = [0, 241], sizes = [4, 15], strides = [1, 1]} : vector<4x256xf32> to vector<4x15xf32>
    %362 = vector.extract_strided_slice %350 {offsets = [0, 0], sizes = [4, 241], strides = [1, 1]} : vector<4x256xf32> to vector<4x241xf32>
    %363 = tpu.concatenate %361, %362 in 1 : vector<4x15xf32>, vector<4x241xf32> -> vector<4x256xf32>
    %364 = vector.broadcast %80 : vector<1x256xf32> to vector<4x256xf32>
    %365 = arith.mulf %363, %364 : vector<4x256xf32>
    %366 = vector.extract_strided_slice %350 {offsets = [0, 255], sizes = [4, 1], strides = [1, 1]} : vector<4x256xf32> to vector<4x1xf32>
    %367 = vector.extract_strided_slice %350 {offsets = [0, 0], sizes = [4, 255], strides = [1, 1]} : vector<4x256xf32> to vector<4x255xf32>
    %368 = tpu.concatenate %366, %367 in 1 : vector<4x1xf32>, vector<4x255xf32> -> vector<4x256xf32>
    %369 = vector.broadcast %102 : vector<1x256xf32> to vector<4x256xf32>
    %370 = arith.mulf %368, %369 : vector<4x256xf32>
    %371 = vector.extract_strided_slice %350 {offsets = [0, 1], sizes = [4, 255], strides = [1, 1]} : vector<4x256xf32> to vector<4x255xf32>
    %372 = vector.extract_strided_slice %350 {offsets = [0, 0], sizes = [4, 1], strides = [1, 1]} : vector<4x256xf32> to vector<4x1xf32>
    %373 = tpu.concatenate %371, %372 in 1 : vector<4x255xf32>, vector<4x1xf32> -> vector<4x256xf32>
    %374 = vector.broadcast %124 : vector<1x256xf32> to vector<4x256xf32>
    %375 = arith.mulf %373, %374 : vector<4x256xf32>
    %376 = vector.extract_strided_slice %350 {offsets = [0, 15], sizes = [4, 241], strides = [1, 1]} : vector<4x256xf32> to vector<4x241xf32>
    %377 = vector.extract_strided_slice %350 {offsets = [0, 0], sizes = [4, 15], strides = [1, 1]} : vector<4x256xf32> to vector<4x15xf32>
    %378 = tpu.concatenate %376, %377 in 1 : vector<4x241xf32>, vector<4x15xf32> -> vector<4x256xf32>
    %379 = vector.broadcast %146 : vector<1x256xf32> to vector<4x256xf32>
    %380 = arith.mulf %378, %379 : vector<4x256xf32>
    %381 = vector.extract_strided_slice %350 {offsets = [0, 16], sizes = [4, 240], strides = [1, 1]} : vector<4x256xf32> to vector<4x240xf32>
    %382 = vector.extract_strided_slice %350 {offsets = [0, 0], sizes = [4, 16], strides = [1, 1]} : vector<4x256xf32> to vector<4x16xf32>
    %383 = tpu.concatenate %381, %382 in 1 : vector<4x240xf32>, vector<4x16xf32> -> vector<4x256xf32>
    %384 = vector.broadcast %168 : vector<1x256xf32> to vector<4x256xf32>
    %385 = arith.mulf %383, %384 : vector<4x256xf32>
    %386 = vector.extract_strided_slice %350 {offsets = [0, 17], sizes = [4, 239], strides = [1, 1]} : vector<4x256xf32> to vector<4x239xf32>
    %387 = vector.extract_strided_slice %350 {offsets = [0, 0], sizes = [4, 17], strides = [1, 1]} : vector<4x256xf32> to vector<4x17xf32>
    %388 = tpu.concatenate %386, %387 in 1 : vector<4x239xf32>, vector<4x17xf32> -> vector<4x256xf32>
    %389 = vector.broadcast %190 : vector<1x256xf32> to vector<4x256xf32>
    %390 = arith.mulf %388, %389 : vector<4x256xf32>
    %cst_143 = arith.constant 2.000000e+00 : f32
    %391 = vector.broadcast %cst_143 : f32 to vector<4x256xf32>
    %392 = arith.mulf %391, %375 : vector<4x256xf32>
    %393 = arith.addf %365, %392 : vector<4x256xf32>
    %394 = arith.addf %393, %390 : vector<4x256xf32>
    %cst_144 = arith.constant 2.000000e+00 : f32
    %395 = vector.broadcast %cst_144 : f32 to vector<4x256xf32>
    %396 = arith.mulf %395, %370 : vector<4x256xf32>
    %397 = arith.addf %355, %396 : vector<4x256xf32>
    %398 = arith.addf %397, %380 : vector<4x256xf32>
    %399 = arith.subf %394, %398 : vector<4x256xf32>
    %cst_145 = arith.constant 2.000000e+00 : f32
    %400 = vector.broadcast %cst_145 : f32 to vector<4x256xf32>
    %401 = arith.mulf %400, %385 : vector<4x256xf32>
    %402 = arith.addf %380, %401 : vector<4x256xf32>
    %403 = arith.addf %402, %390 : vector<4x256xf32>
    %cst_146 = arith.constant 2.000000e+00 : f32
    %404 = vector.broadcast %cst_146 : f32 to vector<4x256xf32>
    %405 = arith.mulf %404, %360 : vector<4x256xf32>
    %406 = arith.addf %355, %405 : vector<4x256xf32>
    %407 = arith.addf %406, %365 : vector<4x256xf32>
    %408 = arith.subf %403, %407 : vector<4x256xf32>
    %409 = vector.extract_strided_slice %408 {offsets = [0, 0], sizes = [3, 256], strides = [1, 1]} : vector<4x256xf32> to vector<3x256xf32>
    %410 = vector.extract_strided_slice %399 {offsets = [0, 0], sizes = [3, 256], strides = [1, 1]} : vector<4x256xf32> to vector<3x256xf32>
    %411 = vector.extract_strided_slice %408 {offsets = [3, 0], sizes = [1, 256], strides = [1, 1]} : vector<4x256xf32> to vector<1x256xf32>
    %412 = vector.extract_strided_slice %399 {offsets = [3, 0], sizes = [1, 256], strides = [1, 1]} : vector<4x256xf32> to vector<1x256xf32>
    %cst_147 = arith.constant 5.000000e-01 : f32
    %413 = vector.broadcast %cst_147 : f32 to vector<3x256xf32>
    %414 = arith.mulf %3, %413 : vector<3x256xf32>
    %415 = arith.mulf %414, %414 : vector<3x256xf32>
    %cst_148 = arith.constant 0.000000e+00 : f32
    %cst_149 = arith.constant 1.000000e+00 : f32
    %416 = vector.broadcast %cst_148 : f32 to vector<3x256xf32>
    %417 = arith.maximumf %416, %415 : vector<3x256xf32>
    %418 = vector.broadcast %cst_149 : f32 to vector<3x256xf32>
    %419 = arith.minimumf %418, %417 : vector<3x256xf32>
    %cst_150 = arith.constant 1.000000e+00 : f32
    %420 = vector.broadcast %cst_150 : f32 to vector<3x256xf32>
    %421 = arith.subf %420, %419 : vector<3x256xf32>
    %422 = arith.mulf %409, %421 : vector<3x256xf32>
    %423 = vector.broadcast %411 : vector<1x256xf32> to vector<3x256xf32>
    %424 = arith.mulf %423, %419 : vector<3x256xf32>
    %425 = arith.subf %422, %424 : vector<3x256xf32>
    %cst_151 = arith.constant 1.000000e+00 : f32
    %426 = vector.broadcast %cst_151 : f32 to vector<3x256xf32>
    %427 = arith.subf %426, %419 : vector<3x256xf32>
    %428 = arith.mulf %410, %427 : vector<3x256xf32>
    %429 = vector.broadcast %412 : vector<1x256xf32> to vector<3x256xf32>
    %430 = arith.mulf %429, %419 : vector<3x256xf32>
    %431 = arith.subf %428, %430 : vector<3x256xf32>
    %cst_152 = arith.constant 2.000000e-01 : f32
    %432 = vector.broadcast %cst_152 : f32 to vector<3x256xf32>
    %433 = arith.mulf %432, %425 : vector<3x256xf32>
    %cst_153 = arith.constant -1.050000e+00 : f32
    %cst_154 = arith.constant 1.050000e+00 : f32
    %434 = vector.broadcast %cst_153 : f32 to vector<3x256xf32>
    %435 = arith.maximumf %434, %433 : vector<3x256xf32>
    %436 = vector.broadcast %cst_154 : f32 to vector<3x256xf32>
    %437 = arith.minimumf %436, %435 : vector<3x256xf32>
    %438 = vector.broadcast %11 : vector<1x256xf32> to vector<3x256xf32>
    %439 = arith.addf %438, %437 : vector<3x256xf32>
    %cst_155 = arith.constant 0.949999988 : f32
    %cst_156 = arith.constant 1.505000e+01 : f32
    %440 = vector.broadcast %cst_155 : f32 to vector<3x256xf32>
    %441 = arith.maximumf %440, %439 : vector<3x256xf32>
    %442 = vector.broadcast %cst_156 : f32 to vector<3x256xf32>
    %443 = arith.minimumf %442, %441 : vector<3x256xf32>
    %cst_157 = arith.constant 2.000000e-01 : f32
    %444 = vector.broadcast %cst_157 : f32 to vector<3x256xf32>
    %445 = arith.mulf %444, %431 : vector<3x256xf32>
    %cst_158 = arith.constant -1.050000e+00 : f32
    %cst_159 = arith.constant 1.050000e+00 : f32
    %446 = vector.broadcast %cst_158 : f32 to vector<3x256xf32>
    %447 = arith.maximumf %446, %445 : vector<3x256xf32>
    %448 = vector.broadcast %cst_159 : f32 to vector<3x256xf32>
    %449 = arith.minimumf %448, %447 : vector<3x256xf32>
    %450 = vector.broadcast %14 : vector<1x256xf32> to vector<3x256xf32>
    %451 = arith.addf %450, %449 : vector<3x256xf32>
    %cst_160 = arith.constant 0.949999988 : f32
    %cst_161 = arith.constant 1.505000e+01 : f32
    %452 = vector.broadcast %cst_160 : f32 to vector<3x256xf32>
    %453 = arith.maximumf %452, %451 : vector<3x256xf32>
    %454 = vector.broadcast %cst_161 : f32 to vector<3x256xf32>
    %455 = arith.minimumf %454, %453 : vector<3x256xf32>
    %cst_162 = arith.constant -2.000000e+00 : f32
    %456 = vector.broadcast %cst_162 : f32 to vector<1x256xf32>
    %457 = arith.addf %11, %456 : vector<1x256xf32>
    %458 = vector.broadcast %457 : vector<1x256xf32> to vector<3x256xf32>
    %459 = arith.subf %458, %443 : vector<3x256xf32>
    %460 = math.absf %459 : vector<3x256xf32>
    %cst_163 = arith.constant 5.000000e-01 : f32
    %461 = vector.broadcast %cst_163 : f32 to vector<3x256xf32>
    %462 = arith.subf %461, %460 : vector<3x256xf32>
    %cst_164 = arith.constant 0.949999988 : f32
    %463 = vector.broadcast %cst_164 : f32 to vector<3x256xf32>
    %464 = arith.addf %462, %463 : vector<3x256xf32>
    %cst_165 = arith.constant 0.000000e+00 : f32
    %cst_166 = arith.constant 1.000000e+00 : f32
    %465 = vector.broadcast %cst_165 : f32 to vector<3x256xf32>
    %466 = arith.maximumf %465, %464 : vector<3x256xf32>
    %467 = vector.broadcast %cst_166 : f32 to vector<3x256xf32>
    %468 = arith.minimumf %467, %466 : vector<3x256xf32>
    %cst_167 = arith.constant -1.000000e+00 : f32
    %469 = vector.broadcast %cst_167 : f32 to vector<1x256xf32>
    %470 = arith.addf %11, %469 : vector<1x256xf32>
    %471 = vector.broadcast %470 : vector<1x256xf32> to vector<3x256xf32>
    %472 = arith.subf %471, %443 : vector<3x256xf32>
    %473 = math.absf %472 : vector<3x256xf32>
    %cst_168 = arith.constant 5.000000e-01 : f32
    %474 = vector.broadcast %cst_168 : f32 to vector<3x256xf32>
    %475 = arith.subf %474, %473 : vector<3x256xf32>
    %cst_169 = arith.constant 0.949999988 : f32
    %476 = vector.broadcast %cst_169 : f32 to vector<3x256xf32>
    %477 = arith.addf %475, %476 : vector<3x256xf32>
    %cst_170 = arith.constant 0.000000e+00 : f32
    %cst_171 = arith.constant 1.000000e+00 : f32
    %478 = vector.broadcast %cst_170 : f32 to vector<3x256xf32>
    %479 = arith.maximumf %478, %477 : vector<3x256xf32>
    %480 = vector.broadcast %cst_171 : f32 to vector<3x256xf32>
    %481 = arith.minimumf %480, %479 : vector<3x256xf32>
    %cst_172 = arith.constant 0.000000e+00 : f32
    %482 = vector.broadcast %cst_172 : f32 to vector<1x256xf32>
    %483 = arith.addf %11, %482 : vector<1x256xf32>
    %484 = vector.broadcast %483 : vector<1x256xf32> to vector<3x256xf32>
    %485 = arith.subf %484, %443 : vector<3x256xf32>
    %486 = math.absf %485 : vector<3x256xf32>
    %cst_173 = arith.constant 5.000000e-01 : f32
    %487 = vector.broadcast %cst_173 : f32 to vector<3x256xf32>
    %488 = arith.subf %487, %486 : vector<3x256xf32>
    %cst_174 = arith.constant 0.949999988 : f32
    %489 = vector.broadcast %cst_174 : f32 to vector<3x256xf32>
    %490 = arith.addf %488, %489 : vector<3x256xf32>
    %cst_175 = arith.constant 0.000000e+00 : f32
    %cst_176 = arith.constant 1.000000e+00 : f32
    %491 = vector.broadcast %cst_175 : f32 to vector<3x256xf32>
    %492 = arith.maximumf %491, %490 : vector<3x256xf32>
    %493 = vector.broadcast %cst_176 : f32 to vector<3x256xf32>
    %494 = arith.minimumf %493, %492 : vector<3x256xf32>
    %cst_177 = arith.constant 1.000000e+00 : f32
    %495 = vector.broadcast %cst_177 : f32 to vector<1x256xf32>
    %496 = arith.addf %11, %495 : vector<1x256xf32>
    %497 = vector.broadcast %496 : vector<1x256xf32> to vector<3x256xf32>
    %498 = arith.subf %497, %443 : vector<3x256xf32>
    %499 = math.absf %498 : vector<3x256xf32>
    %cst_178 = arith.constant 5.000000e-01 : f32
    %500 = vector.broadcast %cst_178 : f32 to vector<3x256xf32>
    %501 = arith.subf %500, %499 : vector<3x256xf32>
    %cst_179 = arith.constant 0.949999988 : f32
    %502 = vector.broadcast %cst_179 : f32 to vector<3x256xf32>
    %503 = arith.addf %501, %502 : vector<3x256xf32>
    %cst_180 = arith.constant 0.000000e+00 : f32
    %cst_181 = arith.constant 1.000000e+00 : f32
    %504 = vector.broadcast %cst_180 : f32 to vector<3x256xf32>
    %505 = arith.maximumf %504, %503 : vector<3x256xf32>
    %506 = vector.broadcast %cst_181 : f32 to vector<3x256xf32>
    %507 = arith.minimumf %506, %505 : vector<3x256xf32>
    %cst_182 = arith.constant 2.000000e+00 : f32
    %508 = vector.broadcast %cst_182 : f32 to vector<1x256xf32>
    %509 = arith.addf %11, %508 : vector<1x256xf32>
    %510 = vector.broadcast %509 : vector<1x256xf32> to vector<3x256xf32>
    %511 = arith.subf %510, %443 : vector<3x256xf32>
    %512 = math.absf %511 : vector<3x256xf32>
    %cst_183 = arith.constant 5.000000e-01 : f32
    %513 = vector.broadcast %cst_183 : f32 to vector<3x256xf32>
    %514 = arith.subf %513, %512 : vector<3x256xf32>
    %cst_184 = arith.constant 0.949999988 : f32
    %515 = vector.broadcast %cst_184 : f32 to vector<3x256xf32>
    %516 = arith.addf %514, %515 : vector<3x256xf32>
    %cst_185 = arith.constant 0.000000e+00 : f32
    %cst_186 = arith.constant 1.000000e+00 : f32
    %517 = vector.broadcast %cst_185 : f32 to vector<3x256xf32>
    %518 = arith.maximumf %517, %516 : vector<3x256xf32>
    %519 = vector.broadcast %cst_186 : f32 to vector<3x256xf32>
    %520 = arith.minimumf %519, %518 : vector<3x256xf32>
    %cst_187 = arith.constant -2.000000e+00 : f32
    %521 = vector.broadcast %cst_187 : f32 to vector<1x256xf32>
    %522 = arith.addf %14, %521 : vector<1x256xf32>
    %523 = vector.broadcast %522 : vector<1x256xf32> to vector<3x256xf32>
    %524 = arith.subf %523, %455 : vector<3x256xf32>
    %525 = math.absf %524 : vector<3x256xf32>
    %cst_188 = arith.constant 5.000000e-01 : f32
    %526 = vector.broadcast %cst_188 : f32 to vector<3x256xf32>
    %527 = arith.subf %526, %525 : vector<3x256xf32>
    %cst_189 = arith.constant 0.949999988 : f32
    %528 = vector.broadcast %cst_189 : f32 to vector<3x256xf32>
    %529 = arith.addf %527, %528 : vector<3x256xf32>
    %cst_190 = arith.constant 0.000000e+00 : f32
    %cst_191 = arith.constant 1.000000e+00 : f32
    %530 = vector.broadcast %cst_190 : f32 to vector<3x256xf32>
    %531 = arith.maximumf %530, %529 : vector<3x256xf32>
    %532 = vector.broadcast %cst_191 : f32 to vector<3x256xf32>
    %533 = arith.minimumf %532, %531 : vector<3x256xf32>
    %cst_192 = arith.constant -1.000000e+00 : f32
    %534 = vector.broadcast %cst_192 : f32 to vector<1x256xf32>
    %535 = arith.addf %14, %534 : vector<1x256xf32>
    %536 = vector.broadcast %535 : vector<1x256xf32> to vector<3x256xf32>
    %537 = arith.subf %536, %455 : vector<3x256xf32>
    %538 = math.absf %537 : vector<3x256xf32>
    %cst_193 = arith.constant 5.000000e-01 : f32
    %539 = vector.broadcast %cst_193 : f32 to vector<3x256xf32>
    %540 = arith.subf %539, %538 : vector<3x256xf32>
    %cst_194 = arith.constant 0.949999988 : f32
    %541 = vector.broadcast %cst_194 : f32 to vector<3x256xf32>
    %542 = arith.addf %540, %541 : vector<3x256xf32>
    %cst_195 = arith.constant 0.000000e+00 : f32
    %cst_196 = arith.constant 1.000000e+00 : f32
    %543 = vector.broadcast %cst_195 : f32 to vector<3x256xf32>
    %544 = arith.maximumf %543, %542 : vector<3x256xf32>
    %545 = vector.broadcast %cst_196 : f32 to vector<3x256xf32>
    %546 = arith.minimumf %545, %544 : vector<3x256xf32>
    %cst_197 = arith.constant 0.000000e+00 : f32
    %547 = vector.broadcast %cst_197 : f32 to vector<1x256xf32>
    %548 = arith.addf %14, %547 : vector<1x256xf32>
    %549 = vector.broadcast %548 : vector<1x256xf32> to vector<3x256xf32>
    %550 = arith.subf %549, %455 : vector<3x256xf32>
    %551 = math.absf %550 : vector<3x256xf32>
    %cst_198 = arith.constant 5.000000e-01 : f32
    %552 = vector.broadcast %cst_198 : f32 to vector<3x256xf32>
    %553 = arith.subf %552, %551 : vector<3x256xf32>
    %cst_199 = arith.constant 0.949999988 : f32
    %554 = vector.broadcast %cst_199 : f32 to vector<3x256xf32>
    %555 = arith.addf %553, %554 : vector<3x256xf32>
    %cst_200 = arith.constant 0.000000e+00 : f32
    %cst_201 = arith.constant 1.000000e+00 : f32
    %556 = vector.broadcast %cst_200 : f32 to vector<3x256xf32>
    %557 = arith.maximumf %556, %555 : vector<3x256xf32>
    %558 = vector.broadcast %cst_201 : f32 to vector<3x256xf32>
    %559 = arith.minimumf %558, %557 : vector<3x256xf32>
    %cst_202 = arith.constant 1.000000e+00 : f32
    %560 = vector.broadcast %cst_202 : f32 to vector<1x256xf32>
    %561 = arith.addf %14, %560 : vector<1x256xf32>
    %562 = vector.broadcast %561 : vector<1x256xf32> to vector<3x256xf32>
    %563 = arith.subf %562, %455 : vector<3x256xf32>
    %564 = math.absf %563 : vector<3x256xf32>
    %cst_203 = arith.constant 5.000000e-01 : f32
    %565 = vector.broadcast %cst_203 : f32 to vector<3x256xf32>
    %566 = arith.subf %565, %564 : vector<3x256xf32>
    %cst_204 = arith.constant 0.949999988 : f32
    %567 = vector.broadcast %cst_204 : f32 to vector<3x256xf32>
    %568 = arith.addf %566, %567 : vector<3x256xf32>
    %cst_205 = arith.constant 0.000000e+00 : f32
    %cst_206 = arith.constant 1.000000e+00 : f32
    %569 = vector.broadcast %cst_205 : f32 to vector<3x256xf32>
    %570 = arith.maximumf %569, %568 : vector<3x256xf32>
    %571 = vector.broadcast %cst_206 : f32 to vector<3x256xf32>
    %572 = arith.minimumf %571, %570 : vector<3x256xf32>
    %cst_207 = arith.constant 2.000000e+00 : f32
    %573 = vector.broadcast %cst_207 : f32 to vector<1x256xf32>
    %574 = arith.addf %14, %573 : vector<1x256xf32>
    %575 = vector.broadcast %574 : vector<1x256xf32> to vector<3x256xf32>
    %576 = arith.subf %575, %455 : vector<3x256xf32>
    %577 = math.absf %576 : vector<3x256xf32>
    %cst_208 = arith.constant 5.000000e-01 : f32
    %578 = vector.broadcast %cst_208 : f32 to vector<3x256xf32>
    %579 = arith.subf %578, %577 : vector<3x256xf32>
    %cst_209 = arith.constant 0.949999988 : f32
    %580 = vector.broadcast %cst_209 : f32 to vector<3x256xf32>
    %581 = arith.addf %579, %580 : vector<3x256xf32>
    %cst_210 = arith.constant 0.000000e+00 : f32
    %cst_211 = arith.constant 1.000000e+00 : f32
    %582 = vector.broadcast %cst_210 : f32 to vector<3x256xf32>
    %583 = arith.maximumf %582, %581 : vector<3x256xf32>
    %584 = vector.broadcast %cst_211 : f32 to vector<3x256xf32>
    %585 = arith.minimumf %584, %583 : vector<3x256xf32>
    %cst_212 = arith.constant 0.000000e+00 : f32
    %586 = vector.broadcast %cst_212 : f32 to vector<3x256xf32>
    %587 = arith.mulf %3, %468 : vector<3x256xf32>
    %588 = arith.mulf %587, %533 : vector<3x256xf32>
    %589 = vector.extract_strided_slice %588 {offsets = [0, 34], sizes = [3, 222], strides = [1, 1]} : vector<3x256xf32> to vector<3x222xf32>
    %590 = vector.extract_strided_slice %588 {offsets = [0, 0], sizes = [3, 34], strides = [1, 1]} : vector<3x256xf32> to vector<3x34xf32>
    %591 = tpu.concatenate %589, %590 in 1 : vector<3x222xf32>, vector<3x34xf32> -> vector<3x256xf32>
    %592 = vector.extract_strided_slice %588 {offsets = [0, 18], sizes = [3, 238], strides = [1, 1]} : vector<3x256xf32> to vector<3x238xf32>
    %593 = vector.extract_strided_slice %588 {offsets = [0, 0], sizes = [3, 18], strides = [1, 1]} : vector<3x256xf32> to vector<3x18xf32>
    %594 = tpu.concatenate %592, %593 in 1 : vector<3x238xf32>, vector<3x18xf32> -> vector<3x256xf32>
    %595 = vector.broadcast %198 : vector<1x256xf32> to vector<3x256xf32>
    %596 = arith.mulf %591, %595 : vector<3x256xf32>
    %597 = vector.broadcast %200 : vector<1x256xf32> to vector<3x256xf32>
    %598 = arith.mulf %594, %597 : vector<3x256xf32>
    %599 = arith.addf %596, %598 : vector<3x256xf32>
    %600 = arith.addf %586, %599 : vector<3x256xf32>
    %601 = arith.mulf %587, %546 : vector<3x256xf32>
    %602 = vector.extract_strided_slice %601 {offsets = [0, 33], sizes = [3, 223], strides = [1, 1]} : vector<3x256xf32> to vector<3x223xf32>
    %603 = vector.extract_strided_slice %601 {offsets = [0, 0], sizes = [3, 33], strides = [1, 1]} : vector<3x256xf32> to vector<3x33xf32>
    %604 = tpu.concatenate %602, %603 in 1 : vector<3x223xf32>, vector<3x33xf32> -> vector<3x256xf32>
    %605 = vector.extract_strided_slice %601 {offsets = [0, 17], sizes = [3, 239], strides = [1, 1]} : vector<3x256xf32> to vector<3x239xf32>
    %606 = vector.extract_strided_slice %601 {offsets = [0, 0], sizes = [3, 17], strides = [1, 1]} : vector<3x256xf32> to vector<3x17xf32>
    %607 = tpu.concatenate %605, %606 in 1 : vector<3x239xf32>, vector<3x17xf32> -> vector<3x256xf32>
    %608 = vector.broadcast %208 : vector<1x256xf32> to vector<3x256xf32>
    %609 = arith.mulf %604, %608 : vector<3x256xf32>
    %610 = vector.broadcast %210 : vector<1x256xf32> to vector<3x256xf32>
    %611 = arith.mulf %607, %610 : vector<3x256xf32>
    %612 = arith.addf %609, %611 : vector<3x256xf32>
    %613 = arith.addf %600, %612 : vector<3x256xf32>
    %614 = arith.mulf %587, %559 : vector<3x256xf32>
    %615 = vector.extract_strided_slice %614 {offsets = [0, 32], sizes = [3, 224], strides = [1, 1]} : vector<3x256xf32> to vector<3x224xf32>
    %616 = vector.extract_strided_slice %614 {offsets = [0, 0], sizes = [3, 32], strides = [1, 1]} : vector<3x256xf32> to vector<3x32xf32>
    %617 = tpu.concatenate %615, %616 in 1 : vector<3x224xf32>, vector<3x32xf32> -> vector<3x256xf32>
    %618 = arith.addf %613, %617 : vector<3x256xf32>
    %619 = arith.mulf %587, %572 : vector<3x256xf32>
    %620 = vector.extract_strided_slice %619 {offsets = [0, 31], sizes = [3, 225], strides = [1, 1]} : vector<3x256xf32> to vector<3x225xf32>
    %621 = vector.extract_strided_slice %619 {offsets = [0, 0], sizes = [3, 31], strides = [1, 1]} : vector<3x256xf32> to vector<3x31xf32>
    %622 = tpu.concatenate %620, %621 in 1 : vector<3x225xf32>, vector<3x31xf32> -> vector<3x256xf32>
    %623 = vector.extract_strided_slice %619 {offsets = [0, 47], sizes = [3, 209], strides = [1, 1]} : vector<3x256xf32> to vector<3x209xf32>
    %624 = vector.extract_strided_slice %619 {offsets = [0, 0], sizes = [3, 47], strides = [1, 1]} : vector<3x256xf32> to vector<3x47xf32>
    %625 = tpu.concatenate %623, %624 in 1 : vector<3x209xf32>, vector<3x47xf32> -> vector<3x256xf32>
    %626 = vector.broadcast %218 : vector<1x256xf32> to vector<3x256xf32>
    %627 = arith.mulf %622, %626 : vector<3x256xf32>
    %628 = vector.broadcast %220 : vector<1x256xf32> to vector<3x256xf32>
    %629 = arith.mulf %625, %628 : vector<3x256xf32>
    %630 = arith.addf %627, %629 : vector<3x256xf32>
    %631 = arith.addf %618, %630 : vector<3x256xf32>
    %632 = arith.mulf %587, %585 : vector<3x256xf32>
    %633 = vector.extract_strided_slice %632 {offsets = [0, 30], sizes = [3, 226], strides = [1, 1]} : vector<3x256xf32> to vector<3x226xf32>
    %634 = vector.extract_strided_slice %632 {offsets = [0, 0], sizes = [3, 30], strides = [1, 1]} : vector<3x256xf32> to vector<3x30xf32>
    %635 = tpu.concatenate %633, %634 in 1 : vector<3x226xf32>, vector<3x30xf32> -> vector<3x256xf32>
    %636 = vector.extract_strided_slice %632 {offsets = [0, 46], sizes = [3, 210], strides = [1, 1]} : vector<3x256xf32> to vector<3x210xf32>
    %637 = vector.extract_strided_slice %632 {offsets = [0, 0], sizes = [3, 46], strides = [1, 1]} : vector<3x256xf32> to vector<3x46xf32>
    %638 = tpu.concatenate %636, %637 in 1 : vector<3x210xf32>, vector<3x46xf32> -> vector<3x256xf32>
    %639 = vector.broadcast %228 : vector<1x256xf32> to vector<3x256xf32>
    %640 = arith.mulf %635, %639 : vector<3x256xf32>
    %641 = vector.broadcast %230 : vector<1x256xf32> to vector<3x256xf32>
    %642 = arith.mulf %638, %641 : vector<3x256xf32>
    %643 = arith.addf %640, %642 : vector<3x256xf32>
    %644 = arith.addf %631, %643 : vector<3x256xf32>
    %645 = arith.mulf %3, %481 : vector<3x256xf32>
    %646 = arith.mulf %645, %533 : vector<3x256xf32>
    %647 = vector.extract_strided_slice %646 {offsets = [0, 18], sizes = [3, 238], strides = [1, 1]} : vector<3x256xf32> to vector<3x238xf32>
    %648 = vector.extract_strided_slice %646 {offsets = [0, 0], sizes = [3, 18], strides = [1, 1]} : vector<3x256xf32> to vector<3x18xf32>
    %649 = tpu.concatenate %647, %648 in 1 : vector<3x238xf32>, vector<3x18xf32> -> vector<3x256xf32>
    %650 = vector.extract_strided_slice %646 {offsets = [0, 2], sizes = [3, 254], strides = [1, 1]} : vector<3x256xf32> to vector<3x254xf32>
    %651 = vector.extract_strided_slice %646 {offsets = [0, 0], sizes = [3, 2], strides = [1, 1]} : vector<3x256xf32> to vector<3x2xf32>
    %652 = tpu.concatenate %650, %651 in 1 : vector<3x254xf32>, vector<3x2xf32> -> vector<3x256xf32>
    %653 = vector.broadcast %198 : vector<1x256xf32> to vector<3x256xf32>
    %654 = arith.mulf %649, %653 : vector<3x256xf32>
    %655 = vector.broadcast %200 : vector<1x256xf32> to vector<3x256xf32>
    %656 = arith.mulf %652, %655 : vector<3x256xf32>
    %657 = arith.addf %654, %656 : vector<3x256xf32>
    %658 = arith.addf %644, %657 : vector<3x256xf32>
    %659 = arith.mulf %645, %546 : vector<3x256xf32>
    %660 = vector.extract_strided_slice %659 {offsets = [0, 17], sizes = [3, 239], strides = [1, 1]} : vector<3x256xf32> to vector<3x239xf32>
    %661 = vector.extract_strided_slice %659 {offsets = [0, 0], sizes = [3, 17], strides = [1, 1]} : vector<3x256xf32> to vector<3x17xf32>
    %662 = tpu.concatenate %660, %661 in 1 : vector<3x239xf32>, vector<3x17xf32> -> vector<3x256xf32>
    %663 = vector.extract_strided_slice %659 {offsets = [0, 1], sizes = [3, 255], strides = [1, 1]} : vector<3x256xf32> to vector<3x255xf32>
    %664 = vector.extract_strided_slice %659 {offsets = [0, 0], sizes = [3, 1], strides = [1, 1]} : vector<3x256xf32> to vector<3x1xf32>
    %665 = tpu.concatenate %663, %664 in 1 : vector<3x255xf32>, vector<3x1xf32> -> vector<3x256xf32>
    %666 = vector.broadcast %208 : vector<1x256xf32> to vector<3x256xf32>
    %667 = arith.mulf %662, %666 : vector<3x256xf32>
    %668 = vector.broadcast %210 : vector<1x256xf32> to vector<3x256xf32>
    %669 = arith.mulf %665, %668 : vector<3x256xf32>
    %670 = arith.addf %667, %669 : vector<3x256xf32>
    %671 = arith.addf %658, %670 : vector<3x256xf32>
    %672 = arith.mulf %645, %559 : vector<3x256xf32>
    %673 = vector.extract_strided_slice %672 {offsets = [0, 16], sizes = [3, 240], strides = [1, 1]} : vector<3x256xf32> to vector<3x240xf32>
    %674 = vector.extract_strided_slice %672 {offsets = [0, 0], sizes = [3, 16], strides = [1, 1]} : vector<3x256xf32> to vector<3x16xf32>
    %675 = tpu.concatenate %673, %674 in 1 : vector<3x240xf32>, vector<3x16xf32> -> vector<3x256xf32>
    %676 = arith.addf %671, %675 : vector<3x256xf32>
    %677 = arith.mulf %645, %572 : vector<3x256xf32>
    %678 = vector.extract_strided_slice %677 {offsets = [0, 15], sizes = [3, 241], strides = [1, 1]} : vector<3x256xf32> to vector<3x241xf32>
    %679 = vector.extract_strided_slice %677 {offsets = [0, 0], sizes = [3, 15], strides = [1, 1]} : vector<3x256xf32> to vector<3x15xf32>
    %680 = tpu.concatenate %678, %679 in 1 : vector<3x241xf32>, vector<3x15xf32> -> vector<3x256xf32>
    %681 = vector.extract_strided_slice %677 {offsets = [0, 31], sizes = [3, 225], strides = [1, 1]} : vector<3x256xf32> to vector<3x225xf32>
    %682 = vector.extract_strided_slice %677 {offsets = [0, 0], sizes = [3, 31], strides = [1, 1]} : vector<3x256xf32> to vector<3x31xf32>
    %683 = tpu.concatenate %681, %682 in 1 : vector<3x225xf32>, vector<3x31xf32> -> vector<3x256xf32>
    %684 = vector.broadcast %218 : vector<1x256xf32> to vector<3x256xf32>
    %685 = arith.mulf %680, %684 : vector<3x256xf32>
    %686 = vector.broadcast %220 : vector<1x256xf32> to vector<3x256xf32>
    %687 = arith.mulf %683, %686 : vector<3x256xf32>
    %688 = arith.addf %685, %687 : vector<3x256xf32>
    %689 = arith.addf %676, %688 : vector<3x256xf32>
    %690 = arith.mulf %645, %585 : vector<3x256xf32>
    %691 = vector.extract_strided_slice %690 {offsets = [0, 14], sizes = [3, 242], strides = [1, 1]} : vector<3x256xf32> to vector<3x242xf32>
    %692 = vector.extract_strided_slice %690 {offsets = [0, 0], sizes = [3, 14], strides = [1, 1]} : vector<3x256xf32> to vector<3x14xf32>
    %693 = tpu.concatenate %691, %692 in 1 : vector<3x242xf32>, vector<3x14xf32> -> vector<3x256xf32>
    %694 = vector.extract_strided_slice %690 {offsets = [0, 30], sizes = [3, 226], strides = [1, 1]} : vector<3x256xf32> to vector<3x226xf32>
    %695 = vector.extract_strided_slice %690 {offsets = [0, 0], sizes = [3, 30], strides = [1, 1]} : vector<3x256xf32> to vector<3x30xf32>
    %696 = tpu.concatenate %694, %695 in 1 : vector<3x226xf32>, vector<3x30xf32> -> vector<3x256xf32>
    %697 = vector.broadcast %228 : vector<1x256xf32> to vector<3x256xf32>
    %698 = arith.mulf %693, %697 : vector<3x256xf32>
    %699 = vector.broadcast %230 : vector<1x256xf32> to vector<3x256xf32>
    %700 = arith.mulf %696, %699 : vector<3x256xf32>
    %701 = arith.addf %698, %700 : vector<3x256xf32>
    %702 = arith.addf %689, %701 : vector<3x256xf32>
    %703 = arith.mulf %3, %494 : vector<3x256xf32>
    %704 = arith.mulf %703, %533 : vector<3x256xf32>
    %705 = vector.extract_strided_slice %704 {offsets = [0, 2], sizes = [3, 254], strides = [1, 1]} : vector<3x256xf32> to vector<3x254xf32>
    %706 = vector.extract_strided_slice %704 {offsets = [0, 0], sizes = [3, 2], strides = [1, 1]} : vector<3x256xf32> to vector<3x2xf32>
    %707 = tpu.concatenate %705, %706 in 1 : vector<3x254xf32>, vector<3x2xf32> -> vector<3x256xf32>
    %708 = vector.extract_strided_slice %704 {offsets = [0, 242], sizes = [3, 14], strides = [1, 1]} : vector<3x256xf32> to vector<3x14xf32>
    %709 = vector.extract_strided_slice %704 {offsets = [0, 0], sizes = [3, 242], strides = [1, 1]} : vector<3x256xf32> to vector<3x242xf32>
    %710 = tpu.concatenate %708, %709 in 1 : vector<3x14xf32>, vector<3x242xf32> -> vector<3x256xf32>
    %711 = vector.broadcast %198 : vector<1x256xf32> to vector<3x256xf32>
    %712 = arith.mulf %707, %711 : vector<3x256xf32>
    %713 = vector.broadcast %200 : vector<1x256xf32> to vector<3x256xf32>
    %714 = arith.mulf %710, %713 : vector<3x256xf32>
    %715 = arith.addf %712, %714 : vector<3x256xf32>
    %716 = arith.addf %702, %715 : vector<3x256xf32>
    %717 = arith.mulf %703, %546 : vector<3x256xf32>
    %718 = vector.extract_strided_slice %717 {offsets = [0, 1], sizes = [3, 255], strides = [1, 1]} : vector<3x256xf32> to vector<3x255xf32>
    %719 = vector.extract_strided_slice %717 {offsets = [0, 0], sizes = [3, 1], strides = [1, 1]} : vector<3x256xf32> to vector<3x1xf32>
    %720 = tpu.concatenate %718, %719 in 1 : vector<3x255xf32>, vector<3x1xf32> -> vector<3x256xf32>
    %721 = vector.extract_strided_slice %717 {offsets = [0, 241], sizes = [3, 15], strides = [1, 1]} : vector<3x256xf32> to vector<3x15xf32>
    %722 = vector.extract_strided_slice %717 {offsets = [0, 0], sizes = [3, 241], strides = [1, 1]} : vector<3x256xf32> to vector<3x241xf32>
    %723 = tpu.concatenate %721, %722 in 1 : vector<3x15xf32>, vector<3x241xf32> -> vector<3x256xf32>
    %724 = vector.broadcast %208 : vector<1x256xf32> to vector<3x256xf32>
    %725 = arith.mulf %720, %724 : vector<3x256xf32>
    %726 = vector.broadcast %210 : vector<1x256xf32> to vector<3x256xf32>
    %727 = arith.mulf %723, %726 : vector<3x256xf32>
    %728 = arith.addf %725, %727 : vector<3x256xf32>
    %729 = arith.addf %716, %728 : vector<3x256xf32>
    %730 = arith.mulf %703, %559 : vector<3x256xf32>
    %731 = arith.addf %729, %730 : vector<3x256xf32>
    %732 = arith.mulf %703, %572 : vector<3x256xf32>
    %733 = vector.extract_strided_slice %732 {offsets = [0, 255], sizes = [3, 1], strides = [1, 1]} : vector<3x256xf32> to vector<3x1xf32>
    %734 = vector.extract_strided_slice %732 {offsets = [0, 0], sizes = [3, 255], strides = [1, 1]} : vector<3x256xf32> to vector<3x255xf32>
    %735 = tpu.concatenate %733, %734 in 1 : vector<3x1xf32>, vector<3x255xf32> -> vector<3x256xf32>
    %736 = vector.extract_strided_slice %732 {offsets = [0, 15], sizes = [3, 241], strides = [1, 1]} : vector<3x256xf32> to vector<3x241xf32>
    %737 = vector.extract_strided_slice %732 {offsets = [0, 0], sizes = [3, 15], strides = [1, 1]} : vector<3x256xf32> to vector<3x15xf32>
    %738 = tpu.concatenate %736, %737 in 1 : vector<3x241xf32>, vector<3x15xf32> -> vector<3x256xf32>
    %739 = vector.broadcast %218 : vector<1x256xf32> to vector<3x256xf32>
    %740 = arith.mulf %735, %739 : vector<3x256xf32>
    %741 = vector.broadcast %220 : vector<1x256xf32> to vector<3x256xf32>
    %742 = arith.mulf %738, %741 : vector<3x256xf32>
    %743 = arith.addf %740, %742 : vector<3x256xf32>
    %744 = arith.addf %731, %743 : vector<3x256xf32>
    %745 = arith.mulf %703, %585 : vector<3x256xf32>
    %746 = vector.extract_strided_slice %745 {offsets = [0, 254], sizes = [3, 2], strides = [1, 1]} : vector<3x256xf32> to vector<3x2xf32>
    %747 = vector.extract_strided_slice %745 {offsets = [0, 0], sizes = [3, 254], strides = [1, 1]} : vector<3x256xf32> to vector<3x254xf32>
    %748 = tpu.concatenate %746, %747 in 1 : vector<3x2xf32>, vector<3x254xf32> -> vector<3x256xf32>
    %749 = vector.extract_strided_slice %745 {offsets = [0, 14], sizes = [3, 242], strides = [1, 1]} : vector<3x256xf32> to vector<3x242xf32>
    %750 = vector.extract_strided_slice %745 {offsets = [0, 0], sizes = [3, 14], strides = [1, 1]} : vector<3x256xf32> to vector<3x14xf32>
    %751 = tpu.concatenate %749, %750 in 1 : vector<3x242xf32>, vector<3x14xf32> -> vector<3x256xf32>
    %752 = vector.broadcast %228 : vector<1x256xf32> to vector<3x256xf32>
    %753 = arith.mulf %748, %752 : vector<3x256xf32>
    %754 = vector.broadcast %230 : vector<1x256xf32> to vector<3x256xf32>
    %755 = arith.mulf %751, %754 : vector<3x256xf32>
    %756 = arith.addf %753, %755 : vector<3x256xf32>
    %757 = arith.addf %744, %756 : vector<3x256xf32>
    %758 = arith.mulf %3, %507 : vector<3x256xf32>
    %759 = arith.mulf %758, %533 : vector<3x256xf32>
    %760 = vector.extract_strided_slice %759 {offsets = [0, 242], sizes = [3, 14], strides = [1, 1]} : vector<3x256xf32> to vector<3x14xf32>
    %761 = vector.extract_strided_slice %759 {offsets = [0, 0], sizes = [3, 242], strides = [1, 1]} : vector<3x256xf32> to vector<3x242xf32>
    %762 = tpu.concatenate %760, %761 in 1 : vector<3x14xf32>, vector<3x242xf32> -> vector<3x256xf32>
    %763 = vector.extract_strided_slice %759 {offsets = [0, 226], sizes = [3, 30], strides = [1, 1]} : vector<3x256xf32> to vector<3x30xf32>
    %764 = vector.extract_strided_slice %759 {offsets = [0, 0], sizes = [3, 226], strides = [1, 1]} : vector<3x256xf32> to vector<3x226xf32>
    %765 = tpu.concatenate %763, %764 in 1 : vector<3x30xf32>, vector<3x226xf32> -> vector<3x256xf32>
    %766 = vector.broadcast %198 : vector<1x256xf32> to vector<3x256xf32>
    %767 = arith.mulf %762, %766 : vector<3x256xf32>
    %768 = vector.broadcast %200 : vector<1x256xf32> to vector<3x256xf32>
    %769 = arith.mulf %765, %768 : vector<3x256xf32>
    %770 = arith.addf %767, %769 : vector<3x256xf32>
    %771 = arith.addf %757, %770 : vector<3x256xf32>
    %772 = arith.mulf %758, %546 : vector<3x256xf32>
    %773 = vector.extract_strided_slice %772 {offsets = [0, 241], sizes = [3, 15], strides = [1, 1]} : vector<3x256xf32> to vector<3x15xf32>
    %774 = vector.extract_strided_slice %772 {offsets = [0, 0], sizes = [3, 241], strides = [1, 1]} : vector<3x256xf32> to vector<3x241xf32>
    %775 = tpu.concatenate %773, %774 in 1 : vector<3x15xf32>, vector<3x241xf32> -> vector<3x256xf32>
    %776 = vector.extract_strided_slice %772 {offsets = [0, 225], sizes = [3, 31], strides = [1, 1]} : vector<3x256xf32> to vector<3x31xf32>
    %777 = vector.extract_strided_slice %772 {offsets = [0, 0], sizes = [3, 225], strides = [1, 1]} : vector<3x256xf32> to vector<3x225xf32>
    %778 = tpu.concatenate %776, %777 in 1 : vector<3x31xf32>, vector<3x225xf32> -> vector<3x256xf32>
    %779 = vector.broadcast %208 : vector<1x256xf32> to vector<3x256xf32>
    %780 = arith.mulf %775, %779 : vector<3x256xf32>
    %781 = vector.broadcast %210 : vector<1x256xf32> to vector<3x256xf32>
    %782 = arith.mulf %778, %781 : vector<3x256xf32>
    %783 = arith.addf %780, %782 : vector<3x256xf32>
    %784 = arith.addf %771, %783 : vector<3x256xf32>
    %785 = arith.mulf %758, %559 : vector<3x256xf32>
    %786 = vector.extract_strided_slice %785 {offsets = [0, 240], sizes = [3, 16], strides = [1, 1]} : vector<3x256xf32> to vector<3x16xf32>
    %787 = vector.extract_strided_slice %785 {offsets = [0, 0], sizes = [3, 240], strides = [1, 1]} : vector<3x256xf32> to vector<3x240xf32>
    %788 = tpu.concatenate %786, %787 in 1 : vector<3x16xf32>, vector<3x240xf32> -> vector<3x256xf32>
    %789 = arith.addf %784, %788 : vector<3x256xf32>
    %790 = arith.mulf %758, %572 : vector<3x256xf32>
    %791 = vector.extract_strided_slice %790 {offsets = [0, 239], sizes = [3, 17], strides = [1, 1]} : vector<3x256xf32> to vector<3x17xf32>
    %792 = vector.extract_strided_slice %790 {offsets = [0, 0], sizes = [3, 239], strides = [1, 1]} : vector<3x256xf32> to vector<3x239xf32>
    %793 = tpu.concatenate %791, %792 in 1 : vector<3x17xf32>, vector<3x239xf32> -> vector<3x256xf32>
    %794 = vector.extract_strided_slice %790 {offsets = [0, 255], sizes = [3, 1], strides = [1, 1]} : vector<3x256xf32> to vector<3x1xf32>
    %795 = vector.extract_strided_slice %790 {offsets = [0, 0], sizes = [3, 255], strides = [1, 1]} : vector<3x256xf32> to vector<3x255xf32>
    %796 = tpu.concatenate %794, %795 in 1 : vector<3x1xf32>, vector<3x255xf32> -> vector<3x256xf32>
    %797 = vector.broadcast %218 : vector<1x256xf32> to vector<3x256xf32>
    %798 = arith.mulf %793, %797 : vector<3x256xf32>
    %799 = vector.broadcast %220 : vector<1x256xf32> to vector<3x256xf32>
    %800 = arith.mulf %796, %799 : vector<3x256xf32>
    %801 = arith.addf %798, %800 : vector<3x256xf32>
    %802 = arith.addf %789, %801 : vector<3x256xf32>
    %803 = arith.mulf %758, %585 : vector<3x256xf32>
    %804 = vector.extract_strided_slice %803 {offsets = [0, 238], sizes = [3, 18], strides = [1, 1]} : vector<3x256xf32> to vector<3x18xf32>
    %805 = vector.extract_strided_slice %803 {offsets = [0, 0], sizes = [3, 238], strides = [1, 1]} : vector<3x256xf32> to vector<3x238xf32>
    %806 = tpu.concatenate %804, %805 in 1 : vector<3x18xf32>, vector<3x238xf32> -> vector<3x256xf32>
    %807 = vector.extract_strided_slice %803 {offsets = [0, 254], sizes = [3, 2], strides = [1, 1]} : vector<3x256xf32> to vector<3x2xf32>
    %808 = vector.extract_strided_slice %803 {offsets = [0, 0], sizes = [3, 254], strides = [1, 1]} : vector<3x256xf32> to vector<3x254xf32>
    %809 = tpu.concatenate %807, %808 in 1 : vector<3x2xf32>, vector<3x254xf32> -> vector<3x256xf32>
    %810 = vector.broadcast %228 : vector<1x256xf32> to vector<3x256xf32>
    %811 = arith.mulf %806, %810 : vector<3x256xf32>
    %812 = vector.broadcast %230 : vector<1x256xf32> to vector<3x256xf32>
    %813 = arith.mulf %809, %812 : vector<3x256xf32>
    %814 = arith.addf %811, %813 : vector<3x256xf32>
    %815 = arith.addf %802, %814 : vector<3x256xf32>
    %816 = arith.mulf %3, %520 : vector<3x256xf32>
    %817 = arith.mulf %816, %533 : vector<3x256xf32>
    %818 = vector.extract_strided_slice %817 {offsets = [0, 226], sizes = [3, 30], strides = [1, 1]} : vector<3x256xf32> to vector<3x30xf32>
    %819 = vector.extract_strided_slice %817 {offsets = [0, 0], sizes = [3, 226], strides = [1, 1]} : vector<3x256xf32> to vector<3x226xf32>
    %820 = tpu.concatenate %818, %819 in 1 : vector<3x30xf32>, vector<3x226xf32> -> vector<3x256xf32>
    %821 = vector.extract_strided_slice %817 {offsets = [0, 210], sizes = [3, 46], strides = [1, 1]} : vector<3x256xf32> to vector<3x46xf32>
    %822 = vector.extract_strided_slice %817 {offsets = [0, 0], sizes = [3, 210], strides = [1, 1]} : vector<3x256xf32> to vector<3x210xf32>
    %823 = tpu.concatenate %821, %822 in 1 : vector<3x46xf32>, vector<3x210xf32> -> vector<3x256xf32>
    %824 = vector.broadcast %198 : vector<1x256xf32> to vector<3x256xf32>
    %825 = arith.mulf %820, %824 : vector<3x256xf32>
    %826 = vector.broadcast %200 : vector<1x256xf32> to vector<3x256xf32>
    %827 = arith.mulf %823, %826 : vector<3x256xf32>
    %828 = arith.addf %825, %827 : vector<3x256xf32>
    %829 = arith.addf %815, %828 : vector<3x256xf32>
    %830 = arith.mulf %816, %546 : vector<3x256xf32>
    %831 = vector.extract_strided_slice %830 {offsets = [0, 225], sizes = [3, 31], strides = [1, 1]} : vector<3x256xf32> to vector<3x31xf32>
    %832 = vector.extract_strided_slice %830 {offsets = [0, 0], sizes = [3, 225], strides = [1, 1]} : vector<3x256xf32> to vector<3x225xf32>
    %833 = tpu.concatenate %831, %832 in 1 : vector<3x31xf32>, vector<3x225xf32> -> vector<3x256xf32>
    %834 = vector.extract_strided_slice %830 {offsets = [0, 209], sizes = [3, 47], strides = [1, 1]} : vector<3x256xf32> to vector<3x47xf32>
    %835 = vector.extract_strided_slice %830 {offsets = [0, 0], sizes = [3, 209], strides = [1, 1]} : vector<3x256xf32> to vector<3x209xf32>
    %836 = tpu.concatenate %834, %835 in 1 : vector<3x47xf32>, vector<3x209xf32> -> vector<3x256xf32>
    %837 = vector.broadcast %208 : vector<1x256xf32> to vector<3x256xf32>
    %838 = arith.mulf %833, %837 : vector<3x256xf32>
    %839 = vector.broadcast %210 : vector<1x256xf32> to vector<3x256xf32>
    %840 = arith.mulf %836, %839 : vector<3x256xf32>
    %841 = arith.addf %838, %840 : vector<3x256xf32>
    %842 = arith.addf %829, %841 : vector<3x256xf32>
    %843 = arith.mulf %816, %559 : vector<3x256xf32>
    %844 = vector.extract_strided_slice %843 {offsets = [0, 224], sizes = [3, 32], strides = [1, 1]} : vector<3x256xf32> to vector<3x32xf32>
    %845 = vector.extract_strided_slice %843 {offsets = [0, 0], sizes = [3, 224], strides = [1, 1]} : vector<3x256xf32> to vector<3x224xf32>
    %846 = tpu.concatenate %844, %845 in 1 : vector<3x32xf32>, vector<3x224xf32> -> vector<3x256xf32>
    %847 = arith.addf %842, %846 : vector<3x256xf32>
    %848 = arith.mulf %816, %572 : vector<3x256xf32>
    %849 = vector.extract_strided_slice %848 {offsets = [0, 223], sizes = [3, 33], strides = [1, 1]} : vector<3x256xf32> to vector<3x33xf32>
    %850 = vector.extract_strided_slice %848 {offsets = [0, 0], sizes = [3, 223], strides = [1, 1]} : vector<3x256xf32> to vector<3x223xf32>
    %851 = tpu.concatenate %849, %850 in 1 : vector<3x33xf32>, vector<3x223xf32> -> vector<3x256xf32>
    %852 = vector.extract_strided_slice %848 {offsets = [0, 239], sizes = [3, 17], strides = [1, 1]} : vector<3x256xf32> to vector<3x17xf32>
    %853 = vector.extract_strided_slice %848 {offsets = [0, 0], sizes = [3, 239], strides = [1, 1]} : vector<3x256xf32> to vector<3x239xf32>
    %854 = tpu.concatenate %852, %853 in 1 : vector<3x17xf32>, vector<3x239xf32> -> vector<3x256xf32>
    %855 = vector.broadcast %218 : vector<1x256xf32> to vector<3x256xf32>
    %856 = arith.mulf %851, %855 : vector<3x256xf32>
    %857 = vector.broadcast %220 : vector<1x256xf32> to vector<3x256xf32>
    %858 = arith.mulf %854, %857 : vector<3x256xf32>
    %859 = arith.addf %856, %858 : vector<3x256xf32>
    %860 = arith.addf %847, %859 : vector<3x256xf32>
    %861 = arith.mulf %816, %585 : vector<3x256xf32>
    %862 = vector.extract_strided_slice %861 {offsets = [0, 222], sizes = [3, 34], strides = [1, 1]} : vector<3x256xf32> to vector<3x34xf32>
    %863 = vector.extract_strided_slice %861 {offsets = [0, 0], sizes = [3, 222], strides = [1, 1]} : vector<3x256xf32> to vector<3x222xf32>
    %864 = tpu.concatenate %862, %863 in 1 : vector<3x34xf32>, vector<3x222xf32> -> vector<3x256xf32>
    %865 = vector.extract_strided_slice %861 {offsets = [0, 238], sizes = [3, 18], strides = [1, 1]} : vector<3x256xf32> to vector<3x18xf32>
    %866 = vector.extract_strided_slice %861 {offsets = [0, 0], sizes = [3, 238], strides = [1, 1]} : vector<3x256xf32> to vector<3x238xf32>
    %867 = tpu.concatenate %865, %866 in 1 : vector<3x18xf32>, vector<3x238xf32> -> vector<3x256xf32>
    %868 = vector.broadcast %228 : vector<1x256xf32> to vector<3x256xf32>
    %869 = arith.mulf %864, %868 : vector<3x256xf32>
    %870 = vector.broadcast %230 : vector<1x256xf32> to vector<3x256xf32>
    %871 = arith.mulf %867, %870 : vector<3x256xf32>
    %872 = arith.addf %869, %871 : vector<3x256xf32>
    %873 = arith.addf %860, %872 : vector<3x256xf32>
    %cst_213 = arith.constant 0.277008325 : f32
    %874 = vector.broadcast %cst_213 : f32 to vector<3x256xf32>
    %875 = arith.mulf %873, %874 : vector<3x256xf32>
    %c0_214 = arith.constant 0 : index
    %c0_215 = arith.constant 0 : index
    %876 = vector.load %arg3[%c0_214, %c0_215] : memref<3x256xf32, #tpu.memory_space<vmem>>, vector<3x256xf32>
    tpu.vector_store %arg3[%c0_214, %c0_215], %875 {strides = array<i32>} : memref<3x256xf32, #tpu.memory_space<vmem>>, vector<3x256xf32>,
    return
  }
  func.func @transform_0(%arg0: i32) -> (i32, i32) {
    %c0_i32 = arith.constant 0 : i32
    %c0_i32_0 = arith.constant 0 : i32
    %c0_i32_1 = arith.constant 0 : i32
    return %c0_i32, %c0_i32_0 : i32, i32
  }
  func.func @transform_1(%arg0: i32) -> (i32, i32) {
    %c0_i32 = arith.constant 0 : i32
    %c0_i32_0 = arith.constant 0 : i32
    %c0_i32_1 = arith.constant 0 : i32
    return %c0_i32, %c0_i32_0 : i32, i32
  }
  func.func @transform_2(%arg0: i32) -> (i32, i32) {
    %c0_i32 = arith.constant 0 : i32
    %c0_i32_0 = arith.constant 0 : i32
    %c0_i32_1 = arith.constant 0 : i32
    return %c0_i32, %c0_i32_0 : i32, i32
  }
}

</mosaic_0001>

<bundles_post_ra>
// kernel: forward.1
= control target key start
LH: loop header
LB: loop body
LE: loop exit
PB: predicated region body
PF: predicated region fallthrough
CT: control target
= control target key end

     0   :  { %7 = vsyncpa [#allocation3], 0  ;;  %s4250_s12 = smov [#allocation2]   ;;  %s4251_s14 = smov 768   ;;  %s5162_s0 = inlined_call_operand.hbm [shape: bf16[256,1536], index: 0, kind: input, shape index: {}]   ;;  %s5163_s1 = inlined_call_operand.vmem [shape: f32[3,256], index: 1, kind: input, shape index: {}]   ;;  %s5164_s2 = inlined_call_operand.vmem [shape: f32[3,256], index: 2, kind: output, shape index: {}]  }
   0x1   :  { %s12_s11 = sshll.u32 %s5162_s0, 4  ;;  %s14_s13 = sshll.u32 %s4250_s12, 4  ;;  %s13_s11 = int_to_ptr.hbm [resolvable:$true] %s12_s11  ;;  %s15_s13 = int_to_ptr.vmem [resolvable:$true] %s14_s13 }
   0x2   :  { %s4252_s15 = smov 48  }
   0x3   :  { %20 = dma.hbm_to_vmem [thread:$0]  %s13_s11, 24576, %s15_s13, [#allocation3], %s4251_s14, %s4251_s14, %s4252_s15  }
   0x4   :  { %4248 = dma.done.wait [#allocation3], 24576  }
   0x5   :  { %4249 = vsyncadd [#allocation3], 4294942720  ;;  %v3516_v0 = vld [vmem:[#allocation2 + $0x2a0] sm:$0xf]  ;;  %v4066_v1 = vld [vmem:[#allocation2 + $0x2cc] sm:$0xf0] }
   0x6   :  { %v3900_v2 = vld [vmem:[#allocation2 + $0x5a0] sm:$0xf]  ;;  %v3517_v3 = vor.u32 %v4066_v1, %v3516_v0  ;;  %v4162_v4 = vld [vmem:[#allocation2 + $0x5cc] sm:$0xf0]  ;;  %v4060_v5 = vld [vmem:[#allocation2 + $0x2a4] sm:$0xf] }
   0x7   :  { %v3518_v6 = vld [vmem:[#allocation2 + $0x2d0] sm:$0xf0]  ;;  %v3901_v7 = vor.u32 %v4162_v4, %v3900_v2  ;;  %v4156_v9 = vld [vmem:[#allocation2 + $0x5a4] sm:$0xf]  ;;  %v3468_v11 = vld [vmem:[#allocation2 + $0x240] sm:$0xf] }
   0x8   :  { %v3521_v8 = vor.u32 %v4060_v5, %v3518_v6  ;;  %v3902_v10 = vld [vmem:[#allocation2 + $0x5d0] sm:$0xf0]  ;;  %1335 = vmatpush.bf16.msra.mxu0 %v3517_v3  ;;  %v4054_v13 = vld [vmem:[#allocation2 + $0x26c] sm:$0xf0]  ;;  %v3852_v14 = vld [vmem:[#allocation2 + $0x540] sm:$0xf] }
   0x9   :  { %v3905_v12 = vor.u32 %v4156_v9, %v3902_v10  ;;  %v4150_v15 = vld [vmem:[#allocation2 + $0x56c] sm:$0xf0]  ;;  %1348 = vmatpush.bf16.msra.mxu1 %v3901_v7  ;;  %v3469_v16 = vor.u32 %v4054_v13, %v3468_v11  ;;  %v4048_v18 = vld [vmem:[#allocation2 + $0x244] sm:$0xf]  ;;  %v3470_v19 = vld [vmem:[#allocation2 + $0x270] sm:$0xf0] }
   0xa   :  { %1361 = vmatpush.bf16.msra.mxu2 %v3521_v8  ;;  %v3853_v17 = vor.u32 %v4150_v15, %v3852_v14  ;;  %v4144_v20 = vld [vmem:[#allocation2 + $0x544] sm:$0xf]  ;;  %v3473_v21 = vor.u32 %v4048_v18, %v3470_v19  ;;  %v3854_v22 = vld [vmem:[#allocation2 + $0x570] sm:$0xf0]  ;;  %v3420_v23 = vld [vmem:[#allocation2 + $0x1e0] sm:$0xf] }
   0xb   :  { %1374 = vmatpush.bf16.msra.mxu3 %v3905_v12  ;;  %v4042_v24 = vld [vmem:[#allocation2 + $0x20c] sm:$0xf0]  ;;  %v3857_v25 = vor.u32 %v4144_v20, %v3854_v22  ;;  %v3804_v26 = vld [vmem:[#allocation2 + $0x4e0] sm:$0xf]  ;;  %v4036_v28 = vld [vmem:[#allocation2 + $0x1e4] sm:$0xf] }
   0xc   :  { %v4138_v27 = vld [vmem:[#allocation2 + $0x50c] sm:$0xf0]  ;;  %1336 = vmatpush.bf16.msra.mxu0 %v3469_v16  ;;  %v3421_v29 = vor.u32 %v4042_v24, %v3420_v23  ;;  %v3422_v30 = vld [vmem:[#allocation2 + $0x210] sm:$0xf0]  ;;  %v4132_v31 = vld [vmem:[#allocation2 + $0x4e4] sm:$0xf] }
   0xd   :  { %v3806_v32 = vld [vmem:[#allocation2 + $0x510] sm:$0xf0]  ;;  %1349 = vmatpush.bf16.msra.mxu1 %v3853_v17  ;;  %v3805_v33 = vor.u32 %v4138_v27, %v3804_v26  ;;  %v3425_v34 = vor.u32 %v4036_v28, %v3422_v30  ;;  %v3372_v35 = vld [vmem:[#allocation2 + $0x180] sm:$0xf]  ;;  %v4030_v36 = vld [vmem:[#allocation2 + $0x1ac] sm:$0xf0] }
   0xe   :  { %1362 = vmatpush.bf16.msra.mxu2 %v3473_v21  ;;  %v3756_v37 = vld [vmem:[#allocation2 + $0x480] sm:$0xf]  ;;  %v3809_v38 = vor.u32 %v4132_v31, %v3806_v32  ;;  %v4126_v39 = vld [vmem:[#allocation2 + $0x4ac] sm:$0xf0]  ;;  %v4024_v40 = vld [vmem:[#allocation2 + $0x184] sm:$0xf]  ;;  %v3373_v44 = vor.u32 %v4030_v36, %v3372_v35 }
   0xf   :  { %1375 = vmatpush.bf16.msra.mxu3 %v3857_v25  ;;  %v3374_v41 = vld [vmem:[#allocation2 + $0x1b0] sm:$0xf0]  ;;  %v4120_v42 = vld [vmem:[#allocation2 + $0x484] sm:$0xf]  ;;  %v3757_v45 = vor.u32 %v4126_v39, %v3756_v37  ;;  %v3324_v47 = vld [vmem:[#allocation2 + $0x120] sm:$0xf] }
  0x10   :  { %v3758_v43 = vld [vmem:[#allocation2 + $0x4b0] sm:$0xf0]  ;;  %1337 = vmatpush.bf16.msra.mxu0 %v3421_v29  ;;  %v3377_v46 = vor.u32 %v4024_v40, %v3374_v41  ;;  %v4018_v48 = vld [vmem:[#allocation2 + $0x14c] sm:$0xf0]  ;;  %v3708_v49 = vld [vmem:[#allocation2 + $0x420] sm:$0xf] }
  0x11   :  { %1350 = vmatpush.bf16.msra.mxu1 %v3805_v33  ;;  %v3761_v50 = vor.u32 %v4120_v42, %v3758_v43  ;;  %v4114_v51 = vld [vmem:[#allocation2 + $0x44c] sm:$0xf0]  ;;  %v4012_v52 = vld [vmem:[#allocation2 + $0x124] sm:$0xf]  ;;  %v3326_v53 = vld [vmem:[#allocation2 + $0x150] sm:$0xf0]  ;;  %v3325_v56 = vor.u32 %v4018_v48, %v3324_v47 }
  0x12   :  { %1363 = vmatpush.bf16.msra.mxu2 %v3425_v34  ;;  %v4108_v54 = vld [vmem:[#allocation2 + $0x424] sm:$0xf]  ;;  %v3710_v55 = vld [vmem:[#allocation2 + $0x450] sm:$0xf0]  ;;  %v3709_v57 = vor.u32 %v4114_v51, %v3708_v49  ;;  %v3329_v58 = vor.u32 %v4012_v52, %v3326_v53  ;;  %v3276_v59 = vld [vmem:[#allocation2 + $0xc0] sm:$0xf] }
  0x13   :  { %1376 = vmatpush.bf16.msra.mxu3 %v3809_v38  ;;  %v4006_v60 = vld [vmem:[#allocation2 + $0xec] sm:$0xf0]  ;;  %v3660_v61 = vld [vmem:[#allocation2 + $0x3c0] sm:$0xf]  ;;  %v3713_v62 = vor.u32 %v4108_v54, %v3710_v55  ;;  %v4000_v0 = vld [vmem:[#allocation2 + $0xc4] sm:$0xf] }
  0x14   :  { %1338 = vmatpush.bf16.msra.mxu0 %v3373_v44  ;;  %v4102_v63 = vld [vmem:[#allocation2 + $0x3ec] sm:$0xf0]  ;;  %v3278_v1 = vld [vmem:[#allocation2 + $0xf0] sm:$0xf0]  ;;  %v4096_v2 = vld [vmem:[#allocation2 + $0x3c4] sm:$0xf]  ;;  %v3277_v4 = vor.u32 %v4006_v60, %v3276_v59 }
  0x15   :  { %1351 = vmatpush.bf16.msra.mxu1 %v3757_v45  ;;  %v3662_v3 = vld [vmem:[#allocation2 + $0x3f0] sm:$0xf0]  ;;  %v3661_v5 = vor.u32 %v4102_v63, %v3660_v61  ;;  %v3281_v6 = vor.u32 %v4000_v0, %v3278_v1  ;;  %v3228_v7 = vld [vmem:[#allocation2 + $0x60] sm:$0xf]  ;;  %v3994_v8 = vld [vmem:[#allocation2 + $0x8c] sm:$0xf0] }
  0x16   :  { %1364 = vmatpush.bf16.msra.mxu2 %v3377_v46  ;;  %v3612_v9 = vld [vmem:[#allocation2 + $0x360] sm:$0xf]  ;;  %v3665_v10 = vor.u32 %v4096_v2, %v3662_v3  ;;  %v4090_v11 = vld [vmem:[#allocation2 + $0x38c] sm:$0xf0]  ;;  %v3988_v12 = vld [vmem:[#allocation2 + $0x64] sm:$0xf]  ;;  %v3229_v16 = vor.u32 %v3994_v8, %v3228_v7 }
  0x17   :  { %1377 = vmatpush.bf16.msra.mxu3 %v3761_v50  ;;  %v3230_v13 = vld [vmem:[#allocation2 + $0x90] sm:$0xf0]  ;;  %v4084_v14 = vld [vmem:[#allocation2 + $0x364] sm:$0xf]  ;;  %v3180_v17 = vld [vmem:[#allocation2] sm:$0xf]  ;;  %v3613_v19 = vor.u32 %v4090_v11, %v3612_v9 }
  0x18   :  { %1339 = vmatpush.bf16.msra.mxu0 %v3325_v56  ;;  %v3614_v15 = vld [vmem:[#allocation2 + $0x390] sm:$0xf0]  ;;  %v3982_v18 = vld [vmem:[#allocation2 + $0x2c] sm:$0xf0]  ;;  %v3233_v20 = vor.u32 %v3988_v12, %v3230_v13  ;;  %v3564_v21 = vld [vmem:[#allocation2 + $0x300] sm:$0xf] }
  0x19   :  { %1352 = vmatpush.bf16.msra.mxu1 %v3709_v57  ;;  %v4078_v22 = vld [vmem:[#allocation2 + $0x32c] sm:$0xf0]  ;;  %v3976_v23 = vld [vmem:[#allocation2 + $0x4] sm:$0xf]  ;;  %v3617_v24 = vor.u32 %v4084_v14, %v3614_v15  ;;  %v3182_v25 = vld [vmem:[#allocation2 + $0x30] sm:$0xf0]  ;;  %v3181_v31 = vor.u32 %v3982_v18, %v3180_v17 }
  0x1a   :  { %1365 = vmatpush.bf16.msra.mxu2 %v3329_v58  ;;  %v4072_v26 = vld [vmem:[#allocation2 + $0x304] sm:$0xf]  ;;  %v3566_v27 = vld [vmem:[#allocation2 + $0x330] sm:$0xf0]  ;;  %v3524_v28 = vld [vmem:[#allocation2 + $0x2a8] sm:$0xf]  ;;  %v3565_v35 = vor.u32 %v4078_v22, %v3564_v21  ;;  %v3185_v36 = vor.u32 %v3976_v23, %v3182_v25 }
  0x1b   :  { %1378 = vmatpush.bf16.msra.mxu3 %v3713_v62  ;;  %v4067_v29 = vld [vmem:[#allocation2 + $0x2d4] sm:$0xf0]  ;;  %v3908_v30 = vld [vmem:[#allocation2 + $0x5a8] sm:$0xf]  ;;  %v4061_v33 = vld [vmem:[#allocation2 + $0x2ac] sm:$0xf]  ;;  %v3569_v39 = vor.u32 %v4072_v26, %v3566_v27 }
  0x1c   :  { %1340 = vmatpush.bf16.msra.mxu0 %v3277_v4  ;;  %v4163_v32 = vld [vmem:[#allocation2 + $0x5d4] sm:$0xf0]  ;;  %v3526_v34 = vld [vmem:[#allocation2 + $0x2d8] sm:$0xf0]  ;;  %v4157_v37 = vld [vmem:[#allocation2 + $0x5ac] sm:$0xf]  ;;  %v3525_v40 = vor.u32 %v4067_v29, %v3524_v28 }
  0x1d   :  { %1353 = vmatpush.bf16.msra.mxu1 %v3661_v5  ;;  %v3910_v38 = vld [vmem:[#allocation2 + $0x5d8] sm:$0xf0]  ;;  %v3909_v41 = vor.u32 %v4163_v32, %v3908_v30  ;;  %v3529_v42 = vor.u32 %v4061_v33, %v3526_v34  ;;  %v3476_v43 = vld [vmem:[#allocation2 + $0x248] sm:$0xf]  ;;  %v4055_v44 = vld [vmem:[#allocation2 + $0x274] sm:$0xf0] }
  0x1e   :  { %1366 = vmatpush.bf16.msra.mxu2 %v3281_v6  ;;  %v3860_v45 = vld [vmem:[#allocation2 + $0x548] sm:$0xf]  ;;  %v3913_v46 = vor.u32 %v4157_v37, %v3910_v38  ;;  %v4151_v47 = vld [vmem:[#allocation2 + $0x574] sm:$0xf0]  ;;  %v4049_v48 = vld [vmem:[#allocation2 + $0x24c] sm:$0xf]  ;;  %v3477_v52 = vor.u32 %v4055_v44, %v3476_v43 }
  0x1f   :  { %1379 = vmatpush.bf16.msra.mxu3 %v3665_v10  ;;  %v3478_v49 = vld [vmem:[#allocation2 + $0x278] sm:$0xf0]  ;;  %v4145_v50 = vld [vmem:[#allocation2 + $0x54c] sm:$0xf]  ;;  %v3861_v53 = vor.u32 %v4151_v47, %v3860_v45  ;;  %v3428_v55 = vld [vmem:[#allocation2 + $0x1e8] sm:$0xf] }
  0x20   :  { %1341 = vmatpush.bf16.msra.mxu0 %v3229_v16  ;;  %v3862_v51 = vld [vmem:[#allocation2 + $0x578] sm:$0xf0]  ;;  %v3481_v54 = vor.u32 %v4049_v48, %v3478_v49  ;;  %v4043_v56 = vld [vmem:[#allocation2 + $0x214] sm:$0xf0]  ;;  %v3812_v57 = vld [vmem:[#allocation2 + $0x4e8] sm:$0xf] }
  0x21   :  { %1354 = vmatpush.bf16.msra.mxu1 %v3613_v19  ;;  %v3865_v58 = vor.u32 %v4145_v50, %v3862_v51  ;;  %v4139_v59 = vld [vmem:[#allocation2 + $0x514] sm:$0xf0]  ;;  %v4037_v60 = vld [vmem:[#allocation2 + $0x1ec] sm:$0xf]  ;;  %v3430_v61 = vld [vmem:[#allocation2 + $0x218] sm:$0xf0]  ;;  %v3429_v0 = vor.u32 %v4043_v56, %v3428_v55 }
  0x22   :  { %1367 = vmatpush.bf16.msra.mxu2 %v3233_v20  ;;  %v4133_v62 = vld [vmem:[#allocation2 + $0x4ec] sm:$0xf]  ;;  %v3814_v63 = vld [vmem:[#allocation2 + $0x518] sm:$0xf0]  ;;  %v3380_v1 = vld [vmem:[#allocation2 + $0x188] sm:$0xf]  ;;  %v3813_v3 = vor.u32 %v4139_v59, %v3812_v57  ;;  %v3433_v4 = vor.u32 %v4037_v60, %v3430_v61 }
  0x23   :  { %1380 = vmatpush.bf16.msra.mxu3 %v3617_v24  ;;  %v31_v2 = vld [vmem:[%s5163_s1] sm:$0x77]  ;;  %v3764_v6 = vld [vmem:[#allocation2 + $0x488] sm:$0xf]  ;;  %v3817_v7 = vor.u32 %v4133_v62, %v3814_v63  ;;  %v4025_v9 = vld [vmem:[#allocation2 + $0x18c] sm:$0xf] }
  0x24   :  { %1342 = vmatpush.bf16.msra.mxu0 %v3181_v31  ;;  %v4031_v5 = vld [vmem:[#allocation2 + $0x1b4] sm:$0xf0]  ;;  %32 = vst [vmem:[%s5164_s2] sm:$0x77] %v31_v2  ;;  %v3382_v10 = vld [vmem:[#allocation2 + $0x1b8] sm:$0xf0]  ;;  %vm1818_vm0 = vcmask 1040384  }
  0x25   :  { %1355 = vmatpush.bf16.msra.mxu1 %v3565_v35  ;;  %v4127_v8 = vld [vmem:[#allocation2 + $0x4b4] sm:$0xf0]  ;;  %v4121_v11 = vld [vmem:[#allocation2 + $0x48c] sm:$0xf]  ;;  %v3766_v12 = vld [vmem:[#allocation2 + $0x4b8] sm:$0xf0]  ;;  %v3381_v13 = vor.u32 %v4031_v5, %v3380_v1  ;;  %v3385_v15 = vor.u32 %v4025_v9, %v3382_v10 }
  0x26   :  { %1368 = vmatpush.bf16.msra.mxu2 %v3185_v36  ;;  %v3765_v14 = vor.u32 %v4127_v8, %v3764_v6  ;;  %v3332_v16 = vld [vmem:[#allocation2 + $0x128] sm:$0xf]  ;;  %v4019_v17 = vld [vmem:[#allocation2 + $0x154] sm:$0xf0]  ;;  %v3769_v19 = vor.u32 %v4121_v11, %v3766_v12  ;;  %v4013_v21 = vld [vmem:[#allocation2 + $0x12c] sm:$0xf] }
  0x27   :  { %1381 = vmatpush.bf16.msra.mxu3 %v3569_v39  ;;  %v3716_v18 = vld [vmem:[#allocation2 + $0x428] sm:$0xf]  ;;  %v4115_v20 = vld [vmem:[#allocation2 + $0x454] sm:$0xf0]  ;;  %v3334_v22 = vld [vmem:[#allocation2 + $0x158] sm:$0xf0]  ;;  %v3333_v25 = vor.u32 %v4019_v17, %v3332_v16 }
  0x28   :  { %1387 = vmatpush.bf16.msrb.mxu0 %v3525_v40  ;;  %v4109_v23 = vld [vmem:[#allocation2 + $0x42c] sm:$0xf]  ;;  %v3718_v24 = vld [vmem:[#allocation2 + $0x458] sm:$0xf0]  ;;  %v3284_v26 = vld [vmem:[#allocation2 + $0xc8] sm:$0xf]  ;;  %v3717_v28 = vor.u32 %v4115_v20, %v3716_v18  ;;  %v3337_v29 = vor.u32 %v4013_v21, %v3334_v22 }
  0x29   :  { %1400 = vmatpush.bf16.msrb.mxu1 %v3909_v41  ;;  %v4007_v30 = vld [vmem:[#allocation2 + $0xf4] sm:$0xf0]  ;;  %v3668_v31 = vld [vmem:[#allocation2 + $0x3c8] sm:$0xf]  ;;  %v3721_v32 = vor.u32 %v4109_v23, %v3718_v24  ;;  %v4001_v34 = vld [vmem:[#allocation2 + $0xcc] sm:$0xf] }
  0x2a   :  { %1413 = vmatpush.bf16.msrb.mxu2 %v3529_v42  ;;  %v4103_v33 = vld [vmem:[#allocation2 + $0x3f4] sm:$0xf0]  ;;  %v3286_v35 = vld [vmem:[#allocation2 + $0xf8] sm:$0xf0]  ;;  %v4097_v36 = vld [vmem:[#allocation2 + $0x3cc] sm:$0xf]  ;;  %v3285_v38 = vor.u32 %v4007_v30, %v3284_v26 }
  0x2b   :  { %1426 = vmatpush.bf16.msrb.mxu3 %v3913_v46  ;;  %v4309_v27 = vld [vmem:[%s5164_s2] sm:$0x77]  ;;  %v3669_v39 = vor.u32 %v4103_v33, %v3668_v31  ;;  %v3289_v40 = vor.u32 %v4001_v34, %v3286_v35  ;;  %v3236_v41 = vld [vmem:[#allocation2 + $0x68] sm:$0xf]  ;;  %v3989_v46 = vld [vmem:[#allocation2 + $0x6c] sm:$0xf] }
  0x2c   :  { %1388 = vmatpush.bf16.msrb.mxu0 %v3477_v52  ;;  %176 = vst [vmem:[#allocation1] ss:$2 sm:$0xff] %v4309_v27  ;;  %v3670_v37 = vld [vmem:[#allocation2 + $0x3f8] sm:$0xf0]  ;;  %v3995_v42 = vld [vmem:[#allocation2 + $0x94] sm:$0xf0] }
  0x2d   :  { %1401 = vmatpush.bf16.msrb.mxu1 %v3861_v53  ;;  %v3673_v43 = vor.u32 %v4097_v36, %v3670_v37  ;;  %v3620_v44 = vld [vmem:[#allocation2 + $0x368] sm:$0xf]  ;;  %v4091_v45 = vld [vmem:[#allocation2 + $0x394] sm:$0xf0]  ;;  %v3238_v47 = vld [vmem:[#allocation2 + $0x98] sm:$0xf0]  ;;  %v3237_v52 = vor.u32 %v3995_v42, %v3236_v41 }
  0x2e   :  { %1414 = vmatpush.bf16.msrb.mxu2 %v3481_v54  ;;  %v4085_v48 = vld [vmem:[#allocation2 + $0x36c] sm:$0xf]  ;;  %v3622_v49 = vld [vmem:[#allocation2 + $0x398] sm:$0xf0]  ;;  %v3188_v53 = vld [vmem:[#allocation2 + $0x8] sm:$0xf]  ;;  %v3621_v56 = vor.u32 %v4091_v45, %v3620_v44  ;;  %v3241_v60 = vor.u32 %v3989_v46, %v3238_v47 }
  0x2f   :  { %1427 = vmatpush.bf16.msrb.mxu3 %v3865_v58  ;;  %v3983_v57 = vld [vmem:[#allocation2 + $0x34] sm:$0xf0]  ;;  %v3572_v58 = vld [vmem:[#allocation2 + $0x308] sm:$0xf]  ;;  %v3625_v61 = vor.u32 %v4085_v48, %v3622_v49  ;;  %v3977_v62 = vld [vmem:[#allocation2 + $0xc] sm:$0xf] }
  0x30   :  { %1389 = vmatpush.bf16.msrb.mxu0 %v3429_v0  ;;  %v4079_v59 = vld [vmem:[#allocation2 + $0x334] sm:$0xf0]  ;;  %v3190_v63 = vld [vmem:[#allocation2 + $0x38] sm:$0xf0]  ;;  %v4073_v0 = vld [vmem:[#allocation2 + $0x30c] sm:$0xf] }
  0x31   :  { %1402 = vmatpush.bf16.msrb.mxu1 %v3813_v3  ;;  %v3574_v1 = vld [vmem:[#allocation2 + $0x338] sm:$0xf0]  ;;  %v3532_v2 = vld [vmem:[#allocation2 + $0x2b0] sm:$0xf]  ;;  %v4068_v3 = vld [vmem:[#allocation2 + $0x2dc] sm:$0xf0]  ;;  %v3573_v8 = vor.u32 %v4079_v59, %v3572_v58  ;;  %v3193_v12 = vor.u32 %v3977_v62, %v3190_v63 }
  0x32   :  { %1415 = vmatpush.bf16.msrb.mxu2 %v3433_v4  ;;  %v3916_v4 = vld [vmem:[#allocation2 + $0x5b0] sm:$0xf]  ;;  %v4164_v5 = vld [vmem:[#allocation2 + $0x5dc] sm:$0xf0]  ;;  %v4062_v6 = vld [vmem:[#allocation2 + $0x2b4] sm:$0xf] }
  0x33   :  { %1428 = vmatpush.bf16.msrb.mxu3 %v3817_v7  ;;  %v177_v50 = vld.sshfl [vmem:[#allocation1] sm:$0xff pattern:$0x75316420]  ;;  %v178_v51 = vld.sshfl [vmem:[#allocation1 + $0x8] sm:$0xff pattern:$0x75316420]  ;;  %v3189_v7 = vor.u32 %v3983_v57, %v3188_v53 }
  0x34   :  { %1390 = vmatpush.bf16.msrb.mxu0 %v3381_v13  ;;  %v4312_v54 = vpack.c.bf16 %v177_v50, %v177_v50  ;;  %v4314_v55 = vpack.c.bf16 %v178_v51, %v178_v51  ;;  %v3534_v9 = vld [vmem:[#allocation2 + $0x2e0] sm:$0xf0]  ;;  %v4158_v10 = vld [vmem:[#allocation2 + $0x5b4] sm:$0xf]  ;;  %v3577_v13 = vor.u32 %v4073_v0, %v3574_v1  ;;  %v3484_v16 = vld [vmem:[#allocation2 + $0x250] sm:$0xf] }
  0x35   :  { %1403 = vmatpush.bf16.msrb.mxu1 %v3765_v14  ;;  %v3918_v11 = vld [vmem:[#allocation2 + $0x5e0] sm:$0xf0]  ;;  %v3533_v14 = vor.u32 %v4068_v3, %v3532_v2  ;;  %v4056_v17 = vld [vmem:[#allocation2 + $0x27c] sm:$0xf0]  ;;  %v3537_v18 = vor.u32 %v4062_v6, %v3534_v9  ;;  %v3868_v20 = vld [vmem:[#allocation2 + $0x550] sm:$0xf] }
  0x36   :  { %1416 = vmatpush.bf16.msrb.mxu2 %v3385_v15  ;;  %1343 = vmatmul.bf16.vlgmr.msra.gmra.mxu0 %v4312_v54  ;;  %v3917_v15 = vor.u32 %v4164_v5, %v3916_v4  ;;  %v4152_v21 = vld [vmem:[#allocation2 + $0x57c] sm:$0xf0]  ;;  %v4050_v22 = vld [vmem:[#allocation2 + $0x254] sm:$0xf]  ;;  %v3486_v23 = vld [vmem:[#allocation2 + $0x280] sm:$0xf0]  ;;  %v3485_v26 = vor.u32 %v4056_v17, %v3484_v16 }
  0x37   :  { %1429 = vmatpush.bf16.msrb.mxu3 %v3769_v19  ;;  %1356 = vmatmul.bf16.vlgmr.msra.gmra.mxu1 %v4314_v55  ;;  %v3921_v19 = vor.u32 %v4158_v10, %v3918_v11  ;;  %v4146_v24 = vld [vmem:[#allocation2 + $0x554] sm:$0xf]  ;;  %v4044_v30 = vld [vmem:[#allocation2 + $0x21c] sm:$0xf0]  ;;  %v3489_v31 = vor.u32 %v4050_v22, %v3486_v23  ;;  %v3820_v33 = vld [vmem:[#allocation2 + $0x4f0] sm:$0xf] }
  0x38   :  { %1391 = vmatpush.bf16.msrb.mxu0 %v3333_v25  ;;  %1369 = vmatmul.bf16.vlgmr.msra.gmra.mxu2 %v4312_v54  ;;  %v3870_v25 = vld [vmem:[#allocation2 + $0x580] sm:$0xf0]  ;;  %v4140_v34 = vld [vmem:[#allocation2 + $0x51c] sm:$0xf0]  ;;  %v4038_v35 = vld [vmem:[#allocation2 + $0x1f4] sm:$0xf] }
  0x39   :  { %1404 = vmatpush.bf16.msrb.mxu1 %v3717_v28  ;;  %1382 = vmatmul.bf16.vlgmr.msra.gmra.mxu3 %v4314_v55  ;;  %v3869_v28 = vor.u32 %v4152_v21, %v3868_v20  ;;  %v3438_v36 = vld [vmem:[#allocation2 + $0x220] sm:$0xf0]  ;;  %v4134_v37 = vld [vmem:[#allocation2 + $0x4f4] sm:$0xf]  ;;  %v3388_v41 = vld [vmem:[#allocation2 + $0x190] sm:$0xf] }
  0x3a   :  { %1417 = vmatpush.bf16.msrb.mxu2 %v3337_v29  ;;  %v3436_v29 = vld [vmem:[#allocation2 + $0x1f0] sm:$0xf]  ;;  %v4032_v42 = vld [vmem:[#allocation2 + $0x1bc] sm:$0xf0]  ;;  %v4026_v47 = vld [vmem:[#allocation2 + $0x194] sm:$0xf] }
  0x3b   :  { %1430 = vmatpush.bf16.msrb.mxu3 %v3721_v32  ;;  %v3873_v32 = vor.u32 %v4146_v24, %v3870_v25  ;;  %v3772_v45 = vld [vmem:[#allocation2 + $0x490] sm:$0xf]  ;;  %v4128_v46 = vld [vmem:[#allocation2 + $0x4bc] sm:$0xf0]  ;;  %v3390_v48 = vld [vmem:[#allocation2 + $0x1c0] sm:$0xf0]  ;;  %v3389_v51 = vor.u32 %v4032_v42, %v3388_v41 }
  0x3c   :  { %1392 = vmatpush.bf16.msrb.mxu0 %v3285_v38  ;;  %v3822_v38 = vld [vmem:[#allocation2 + $0x520] sm:$0xf0]  ;;  %v4122_v49 = vld [vmem:[#allocation2 + $0x494] sm:$0xf]  ;;  %v3340_v53 = vld [vmem:[#allocation2 + $0x130] sm:$0xf]  ;;  %v3393_v57 = vor.u32 %v4026_v47, %v3390_v48 }
  0x3d   :  { %1405 = vmatpush.bf16.msrb.mxu1 %v3669_v39  ;;  %v3437_v39 = vor.u32 %v4044_v30, %v3436_v29  ;;  %v3825_v44 = vor.u32 %v4134_v37, %v3822_v38  ;;  %v3774_v50 = vld [vmem:[#allocation2 + $0x4c0] sm:$0xf0]  ;;  %v3724_v59 = vld [vmem:[#allocation2 + $0x430] sm:$0xf]  ;;  %v4110_v63 = vld [vmem:[#allocation2 + $0x434] sm:$0xf] }
  0x3e   :  { %1418 = vmatpush.bf16.msrb.mxu2 %v3289_v40  ;;  %v3821_v40 = vor.u32 %v4140_v34, %v3820_v33  ;;  %v3777_v58 = vor.u32 %v4122_v49, %v3774_v50  ;;  %v3342_v62 = vld [vmem:[#allocation2 + $0x160] sm:$0xf0]  ;;  %v3292_v3 = vld [vmem:[#allocation2 + $0xd0] sm:$0xf]  ;;  %v4008_v4 = vld [vmem:[#allocation2 + $0xfc] sm:$0xf0] }
  0x3f   :  { %1431 = vmatpush.bf16.msrb.mxu3 %v3673_v43  ;;  %v3441_v43 = vor.u32 %v4038_v35, %v3438_v36  ;;  %v3726_v0 = vld [vmem:[#allocation2 + $0x460] sm:$0xf0]  ;;  %v4002_v9 = vld [vmem:[#allocation2 + $0xd4] sm:$0xf]  ;;  %v3996_v16 = vld [vmem:[#allocation2 + $0x9c] sm:$0xf0] }
  0x40   :  { %1393 = vmatpush.bf16.msrb.mxu0 %v3237_v52  ;;  %v3773_v52 = vor.u32 %v4128_v46, %v3772_v45  ;;  %v3729_v6 = vor.u32 %v4110_v63, %v3726_v0  ;;  %v3294_v10 = vld [vmem:[#allocation2 + $0x100] sm:$0xf0]  ;;  %v4098_v11 = vld [vmem:[#allocation2 + $0x3d4] sm:$0xf]  ;;  %v4092_v20 = vld [vmem:[#allocation2 + $0x39c] sm:$0xf0] }
  0x41   :  { %1406 = vmatpush.bf16.msrb.mxu1 %v3621_v56  ;;  %v4020_v56 = vld [vmem:[#allocation2 + $0x15c] sm:$0xf0]  ;;  %v3297_v17 = vor.u32 %v4002_v9, %v3294_v10  ;;  %v3990_v21 = vld [vmem:[#allocation2 + $0x74] sm:$0xf]  ;;  %v3246_v22 = vld [vmem:[#allocation2 + $0xa0] sm:$0xf0] }
  0x42   :  { %1419 = vmatpush.bf16.msrb.mxu2 %v3241_v60  ;;  %v4116_v60 = vld [vmem:[#allocation2 + $0x45c] sm:$0xf0]  ;;  %v3341_v1 = vor.u32 %v4020_v56, %v3340_v53  ;;  %v4086_v23 = vld [vmem:[#allocation2 + $0x374] sm:$0xf]  ;;  %v3630_v24 = vld [vmem:[#allocation2 + $0x3a0] sm:$0xf0] }
  0x43   :  { %1432 = vmatpush.bf16.msrb.mxu3 %v3625_v61  ;;  %v4014_v61 = vld [vmem:[#allocation2 + $0x134] sm:$0xf]  ;;  %v3725_v2 = vor.u32 %v4116_v60, %v3724_v59  ;;  %v3196_v25 = vld [vmem:[#allocation2 + $0x10] sm:$0xf]  ;;  %v3984_v29 = vld [vmem:[#allocation2 + $0x3c] sm:$0xf0]  ;;  %v3633_v33 = vor.u32 %v4086_v23, %v3630_v24 }
  0x44   :  { %1394 = vmatpush.bf16.msrb.mxu0 %v3189_v7  ;;  %v3345_v5 = vor.u32 %v4014_v61, %v3342_v62  ;;  %v3676_v7 = vld [vmem:[#allocation2 + $0x3d0] sm:$0xf]  ;;  %v3978_v34 = vld [vmem:[#allocation2 + $0x14] sm:$0xf]  ;;  %v3198_v35 = vld [vmem:[#allocation2 + $0x40] sm:$0xf0] }
  0x45   :  { %1407 = vmatpush.bf16.msrb.mxu1 %v3573_v8  ;;  %v4104_v8 = vld [vmem:[#allocation2 + $0x3fc] sm:$0xf0]  ;;  %v3580_v30 = vld [vmem:[#allocation2 + $0x310] sm:$0xf]  ;;  %v4074_v36 = vld [vmem:[#allocation2 + $0x314] sm:$0xf]  ;;  %v3201_v48 = vor.u32 %v3978_v34, %v3198_v35 }
  0x46   :  { %1420 = vmatpush.bf16.msrb.mxu2 %v3193_v12  ;;  %v3678_v12 = vld [vmem:[#allocation2 + $0x400] sm:$0xf0]  ;;  %v3540_v38 = vld [vmem:[#allocation2 + $0x2b8] sm:$0xf]  ;;  %v4165_v41 = vld [vmem:[#allocation2 + $0x5e4] sm:$0xf0] }
  0x47   :  { %1433 = vmatpush.bf16.msrb.mxu3 %v3577_v13  ;;  %1395 = vmatmul.bf16.vlgmr.msrb.gmra.mxu0 %v4312_v54  ;;  %v3293_v13 = vor.u32 %v4008_v4, %v3292_v3  ;;  %v3582_v37 = vld [vmem:[#allocation2 + $0x340] sm:$0xf0]  ;;  %v4063_v42 = vld [vmem:[#allocation2 + $0x2bc] sm:$0xf]  ;;  %v3542_v45 = vld [vmem:[#allocation2 + $0x2e8] sm:$0xf0] }
  0x48   :  { %1439 = vmatpush.bf16.msra.mxu0 %v3533_v14  ;;  %1408 = vmatmul.bf16.vlgmr.msrb.gmra.mxu1 %v4314_v55  ;;  %v3677_v14 = vor.u32 %v4104_v8, %v3676_v7  ;;  %v4159_v46 = vld [vmem:[#allocation2 + $0x5bc] sm:$0xf]  ;;  %v3926_v47 = vld [vmem:[#allocation2 + $0x5e8] sm:$0xf0]  ;;  %v3585_v49 = vor.u32 %v4074_v36, %v3582_v37  ;;  %v4057_v53 = vld [vmem:[#allocation2 + $0x284] sm:$0xf0]  ;;  %v3545_v56 = vor.u32 %v4063_v42, %v3542_v45 }
  0x49   :  { %1452 = vmatpush.bf16.msra.mxu1 %v3917_v15  ;;  %1421 = vmatmul.bf16.vlgmr.msrb.gmra.mxu2 %v4312_v54  ;;  %v3244_v15 = vld [vmem:[#allocation2 + $0x70] sm:$0xf]  ;;  %v4153_v59 = vld [vmem:[#allocation2 + $0x584] sm:$0xf0]  ;;  %v4051_v60 = vld [vmem:[#allocation2 + $0x25c] sm:$0xf] }
  0x4a   :  { %1465 = vmatpush.bf16.msra.mxu2 %v3537_v18  ;;  %1434 = vmatmul.bf16.vlgmr.msrb.gmra.mxu3 %v4314_v55  ;;  %v3681_v18 = vor.u32 %v4098_v11, %v3678_v12  ;;  %v3494_v61 = vld [vmem:[#allocation2 + $0x288] sm:$0xf0]  ;;  %v4147_v62 = vld [vmem:[#allocation2 + $0x55c] sm:$0xf]  ;;  %v4045_v3 = vld [vmem:[#allocation2 + $0x224] sm:$0xf0] }
  0x4b   :  { %1478 = vmatpush.bf16.msra.mxu3 %v3921_v19  ;;  %v3628_v19 = vld [vmem:[#allocation2 + $0x370] sm:$0xf]  ;;  %v3878_v63 = vld [vmem:[#allocation2 + $0x588] sm:$0xf0]  ;;  %v3497_v4 = vor.u32 %v4051_v60, %v3494_v61  ;;  %v4141_v7 = vld [vmem:[#allocation2 + $0x524] sm:$0xf0] }
  0x4c   :  { %1440 = vmatpush.bf16.msra.mxu0 %v3485_v26  ;;  %v3245_v26 = vor.u32 %v3996_v16, %v3244_v15  ;;  %v4039_v8 = vld [vmem:[#allocation2 + $0x1fc] sm:$0xf]  ;;  %v3446_v9 = vld [vmem:[#allocation2 + $0x228] sm:$0xf0]  ;;  %v4033_v15 = vld [vmem:[#allocation2 + $0x1c4] sm:$0xf0] }
  0x4d   :  { %1453 = vmatpush.bf16.msra.mxu1 %v3869_v28  ;;  %v3629_v28 = vor.u32 %v4092_v20, %v3628_v19  ;;  %v4135_v10 = vld [vmem:[#allocation2 + $0x4fc] sm:$0xf]  ;;  %v3830_v11 = vld [vmem:[#allocation2 + $0x528] sm:$0xf0]  ;;  %v3449_v16 = vor.u32 %v4039_v8, %v3446_v9  ;;  %v4129_v19 = vld [vmem:[#allocation2 + $0x4c4] sm:$0xf0] }
  0x4e   :  { %1466 = vmatpush.bf16.msra.mxu2 %v3489_v31  ;;  %v4080_v31 = vld [vmem:[#allocation2 + $0x33c] sm:$0xf0]  ;;  %v4027_v20 = vld [vmem:[#allocation2 + $0x19c] sm:$0xf]  ;;  %v3782_v23 = vld [vmem:[#allocation2 + $0x4c8] sm:$0xf0] }
  0x4f   :  { %1479 = vmatpush.bf16.msra.mxu3 %v3873_v32  ;;  %v3249_v32 = vor.u32 %v3990_v21, %v3246_v22  ;;  %v3398_v21 = vld [vmem:[#allocation2 + $0x1c8] sm:$0xf0]  ;;  %v4123_v22 = vld [vmem:[#allocation2 + $0x49c] sm:$0xf]  ;;  %vm1821_vm1 = vcmask 1041408   ;;  %vm1824_vm2 = vcmask 1042432  }
  0x50   :  { %1441 = vmatpush.bf16.msra.mxu0 %v3437_v39  ;;  %v4069_v39 = vld [vmem:[#allocation2 + $0x2e4] sm:$0xf0]  ;;  %v3350_v34 = vld [vmem:[#allocation2 + $0x168] sm:$0xf0]  ;;  %v4111_v35 = vld [vmem:[#allocation2 + $0x43c] sm:$0xf] }
  0x51   :  { %1454 = vmatpush.bf16.msra.mxu1 %v3821_v40  ;;  %v3924_v40 = vld [vmem:[#allocation2 + $0x5b8] sm:$0xf]  ;;  %v3541_v50 = vor.u32 %v4069_v39, %v3540_v38  ;;  %v3734_v36 = vld [vmem:[#allocation2 + $0x468] sm:$0xf0]  ;;  %v4003_v45 = vld [vmem:[#allocation2 + $0xdc] sm:$0xf] }
  0x52   :  { %1467 = vmatpush.bf16.msra.mxu2 %v3441_v43  ;;  %v3197_v43 = vor.u32 %v3984_v29, %v3196_v25  ;;  %v3401_v29 = vor.u32 %v4027_v20, %v3398_v21  ;;  %v3300_v39 = vld [vmem:[#allocation2 + $0xd8] sm:$0xf]  ;;  %v3737_v42 = vor.u32 %v4111_v35, %v3734_v36  ;;  %v3254_v60 = vld [vmem:[#allocation2 + $0xa8] sm:$0xf0]  ;;  %v4087_v61 = vld [vmem:[#allocation2 + $0x37c] sm:$0xf] }
  0x53   :  { %1480 = vmatpush.bf16.msra.mxu3 %v3825_v44  ;;  %v3581_v44 = vor.u32 %v4080_v31, %v3580_v30  ;;  %v3785_v30 = vor.u32 %v4123_v22, %v3782_v23  ;;  %v3732_v31 = vld [vmem:[#allocation2 + $0x438] sm:$0xf]  ;;  %v3206_v8 = vld [vmem:[#allocation2 + $0x48] sm:$0xf0]  ;;  %v4075_v9 = vld [vmem:[#allocation2 + $0x31c] sm:$0xf] }
  0x54   :  { %1442 = vmatpush.bf16.msra.mxu0 %v3389_v51  ;;  %v3925_v51 = vor.u32 %v4165_v41, %v3924_v40  ;;  %v4009_v40 = vld [vmem:[#allocation2 + $0x104] sm:$0xf0]  ;;  %v3934_v20 = vld [vmem:[#allocation2 + $0x5f0] sm:$0xf0]  ;;  %s4253_s20 = smov 17   ;;  %s4254_s21 = smov 112  }
  0x55   :  { %1455 = vmatpush.bf16.msra.mxu1 %v3773_v52  ;;  %v3492_v52 = vld [vmem:[#allocation2 + $0x258] sm:$0xf]  ;;  %v3886_v35 = vld [vmem:[#allocation2 + $0x590] sm:$0xf0]  ;;  %s4255_s22 = smov 16   ;;  %s4256_s23 = smov 127  }
  0x56   :  { %1468 = vmatpush.bf16.msra.mxu2 %v3393_v57  ;;  %v3929_v57 = vor.u32 %v4159_v46, %v3926_v47  ;;  %v3493_v0 = vor.u32 %v4057_v53, %v3492_v52  ;;  %v3302_v46 = vld [vmem:[#allocation2 + $0x108] sm:$0xf0]  ;;  %v4099_v47 = vld [vmem:[#allocation2 + $0x3dc] sm:$0xf]  ;;  %v3997_v52 = vld [vmem:[#allocation2 + $0xa4] sm:$0xf0] }
  0x57   :  { %1481 = vmatpush.bf16.msra.mxu3 %v3777_v58  ;;  %v3876_v58 = vld [vmem:[#allocation2 + $0x558] sm:$0xf]  ;;  %v3305_v53 = vor.u32 %v4003_v45, %v3302_v46  ;;  %v3454_v45 = vld [vmem:[#allocation2 + $0x230] sm:$0xf0]  ;;  %v4136_v46 = vld [vmem:[#allocation2 + $0x504] sm:$0xf] }
  0x58   :  { %1443 = vmatpush.bf16.msra.mxu0 %v3341_v1  ;;  %v3877_v1 = vor.u32 %v4153_v59, %v3876_v58  ;;  %v4093_v58 = vld [vmem:[#allocation2 + $0x3a4] sm:$0xf0]  ;;  %v3991_v59 = vld [vmem:[#allocation2 + $0x7c] sm:$0xf]  ;;  %s4257_s24 = smov 1   ;;  %s4258_s25 = smov 113  }
  0x59   :  { %1456 = vmatpush.bf16.msra.mxu1 %v3725_v2  ;;  %v3444_v2 = vld [vmem:[#allocation2 + $0x1f8] sm:$0xf]  ;;  %s4259_s26 = smov 111   ;;  %s4260_s27 = smov 15  }
  0x5a   :  { %1469 = vmatpush.bf16.msra.mxu2 %v3345_v5  ;;  %v3881_v5 = vor.u32 %v4147_v62, %v3878_v63  ;;  %v3445_v12 = vor.u32 %v4045_v3, %v3444_v2  ;;  %v3638_v62 = vld [vmem:[#allocation2 + $0x3a8] sm:$0xf0]  ;;  %v3204_v63 = vld [vmem:[#allocation2 + $0x18] sm:$0xf]  ;;  %v3985_v2 = vld [vmem:[#allocation2 + $0x44] sm:$0xf0] }
  0x5b   :  { %1482 = vmatpush.bf16.msra.mxu3 %v3729_v6  ;;  %v3828_v6 = vld [vmem:[#allocation2 + $0x4f8] sm:$0xf]  ;;  %s4262_s28 = smov 94   ;;  %s4263_s29 = smov 110  }
  0x5c   :  { %1444 = vmatpush.bf16.msra.mxu0 %v3293_v13  ;;  %v3829_v13 = vor.u32 %v4141_v7, %v3828_v6  ;;  %v3588_v3 = vld [vmem:[#allocation2 + $0x318] sm:$0xf]  ;;  %v3641_v6 = vor.u32 %v4087_v61, %v3638_v62  ;;  %v3979_v7 = vld [vmem:[#allocation2 + $0x1c] sm:$0xf]  ;;  %v3790_v61 = vld [vmem:[#allocation2 + $0x4d0] sm:$0xf0] }
  0x5d   :  { %1457 = vmatpush.bf16.msra.mxu1 %v3677_v14  ;;  %v3396_v14 = vld [vmem:[#allocation2 + $0x198] sm:$0xf]  ;;  %v3209_v21 = vor.u32 %v3979_v7, %v3206_v8  ;;  %v3358_v7 = vld [vmem:[#allocation2 + $0x170] sm:$0xf0]  ;;  %v4112_v8 = vld [vmem:[#allocation2 + $0x444] sm:$0xf] }
  0x5e   :  { %1470 = vmatpush.bf16.msra.mxu2 %v3297_v17  ;;  %v3833_v17 = vor.u32 %v4135_v10, %v3830_v11  ;;  %v3397_v24 = vor.u32 %v4033_v15, %v3396_v14  ;;  %v3590_v10 = vld [vmem:[#allocation2 + $0x348] sm:$0xf0]  ;;  %v3548_v11 = vld [vmem:[#allocation2 + $0x2c0] sm:$0xf]  ;;  %v4166_v14 = vld [vmem:[#allocation2 + $0x5ec] sm:$0xf0] }
  0x5f   :  { %1483 = vmatpush.bf16.msra.mxu3 %v3681_v18  ;;  %v3780_v18 = vld [vmem:[#allocation2 + $0x498] sm:$0xf]  ;;  %v4064_v15 = vld [vmem:[#allocation2 + $0x2c4] sm:$0xf]  ;;  %v3593_v22 = vor.u32 %v4075_v9, %v3590_v10  ;;  %v3742_v9 = vld [vmem:[#allocation2 + $0x470] sm:$0xf0] }
  0x60   :  { %1445 = vmatpush.bf16.msra.mxu0 %v3245_v26  ;;  %v3781_v25 = vor.u32 %v4129_v19, %v3780_v18  ;;  %v3348_v26 = vld [vmem:[#allocation2 + $0x138] sm:$0xf]  ;;  %v3550_v18 = vld [vmem:[#allocation2 + $0x2f0] sm:$0xf0]  ;;  %v4160_v19 = vld [vmem:[#allocation2 + $0x5c4] sm:$0xf] }
  0x61   :  { %1458 = vmatpush.bf16.msra.mxu1 %v3629_v28  ;;  %v4021_v28 = vld [vmem:[#allocation2 + $0x164] sm:$0xf0]  ;;  %s4264_s30 = smov 95   ;;  %s4265_s3 = smov 96  }
  0x62   :  { %1471 = vmatpush.bf16.msra.mxu2 %v3249_v32  ;;  %v4117_v32 = vld [vmem:[#allocation2 + $0x464] sm:$0xf0]  ;;  %v3349_v37 = vor.u32 %v4021_v28, %v3348_v26  ;;  %v4058_v26 = vld [vmem:[#allocation2 + $0x28c] sm:$0xf0]  ;;  %v3553_v28 = vor.u32 %v4064_v15, %v3550_v18  ;;  %v3745_v15 = vor.u32 %v4112_v8, %v3742_v9  ;;  %v4004_v18 = vld [vmem:[#allocation2 + $0xe4] sm:$0xf] }
  0x63   :  { %1484 = vmatpush.bf16.msra.mxu3 %v3633_v33  ;;  %v4015_v33 = vld [vmem:[#allocation2 + $0x13c] sm:$0xf]  ;;  %v3733_v38 = vor.u32 %v4117_v32, %v3732_v31  ;;  %v4154_v31 = vld [vmem:[#allocation2 + $0x58c] sm:$0xf0]  ;;  %v4052_v32 = vld [vmem:[#allocation2 + $0x264] sm:$0xf] }
  0x64   :  { %1446 = vmatpush.bf16.msra.mxu0 %v3197_v43  ;;  %v3353_v41 = vor.u32 %v4015_v33, %v3350_v34  ;;  %v3684_v43 = vld [vmem:[#allocation2 + $0x3d8] sm:$0xf]  ;;  %v3502_v33 = vld [vmem:[#allocation2 + $0x290] sm:$0xf0]  ;;  %v4148_v34 = vld [vmem:[#allocation2 + $0x564] sm:$0xf] }
  0x65   :  { %1459 = vmatpush.bf16.msra.mxu1 %v3581_v44  ;;  %v4105_v44 = vld [vmem:[#allocation2 + $0x404] sm:$0xf0]  ;;  %v3894_v8 = vld [vmem:[#allocation2 + $0x598] sm:$0xf0]  ;;  %s4266_s4 = smov 97   ;;  %s4267_s5 = smov 81  }
  0x66   :  { %1472 = vmatpush.bf16.msra.mxu2 %v3201_v48  ;;  %v3686_v48 = vld [vmem:[#allocation2 + $0x408] sm:$0xf0]  ;;  %s4268_s6 = smov 98   ;;  %s4269_s7 = smov 82  }
  0x67   :  { %1485 = vmatpush.bf16.msra.mxu3 %v3585_v49  ;;  %1447 = vmatmul.bf16.vlgmr.msra.gmra.mxu0 %v4312_v54  ;;  %v3301_v49 = vor.u32 %v4009_v40, %v3300_v39  ;;  %v4046_v39 = vld [vmem:[#allocation2 + $0x22c] sm:$0xf0]  ;;  %v3505_v40 = vor.u32 %v4052_v32, %v3502_v33  ;;  %v3262_v32 = vld [vmem:[#allocation2 + $0xb0] sm:$0xf0]  ;;  %v4088_v33 = vld [vmem:[#allocation2 + $0x384] sm:$0xf] }
  0x68   :  { %1491 = vmatpush.bf16.msrb.mxu0 %v3541_v50  ;;  %1460 = vmatmul.bf16.vlgmr.msra.gmra.mxu1 %v4314_v55  ;;  %v3685_v50 = vor.u32 %v4105_v44, %v3684_v43  ;;  %v4142_v43 = vld [vmem:[#allocation2 + $0x52c] sm:$0xf0]  ;;  %v4040_v44 = vld [vmem:[#allocation2 + $0x204] sm:$0xf]  ;;  %s4270_s8 = smov 126   ;;  %s4271_s9 = smov 114  }
  0x69   :  { %1504 = vmatpush.bf16.msrb.mxu1 %v3925_v51  ;;  %1473 = vmatmul.bf16.vlgmr.msra.gmra.mxu2 %v4312_v54  ;;  %v3252_v51 = vld [vmem:[#allocation2 + $0x78] sm:$0xf]  ;;  %s4272_s10 = smov 14   ;;  %s4273_s11 = smov 2  }
  0x6a   :  { %1517 = vmatpush.bf16.msrb.mxu2 %v3545_v56  ;;  %1486 = vmatmul.bf16.vlgmr.msra.gmra.mxu3 %v4314_v55  ;;  %v3689_v56 = vor.u32 %v4099_v47, %v3686_v48  ;;  %v3838_v47 = vld [vmem:[#allocation2 + $0x530] sm:$0xf0]  ;;  %s4274_s12 = smov 30   ;;  %s4275_s13 = smov 31  }
  0x6b   :  { %1530 = vmatpush.bf16.msrb.mxu3 %v3929_v57  ;;  %v3636_v57 = vld [vmem:[#allocation2 + $0x378] sm:$0xf]  ;;  %s4276_s14 = smov 18   ;;  %s4277_s15 = smov 46  }
  0x6c   :  { %1492 = vmatpush.bf16.msrb.mxu0 %v3493_v0  ;;  %v3253_v0 = vor.u32 %v3997_v52, %v3252_v51  ;;  %v4034_v51 = vld [vmem:[#allocation2 + $0x1cc] sm:$0xf0]  ;;  %v3457_v52 = vor.u32 %v4040_v44, %v3454_v45  ;;  %v3214_v44 = vld [vmem:[#allocation2 + $0x50] sm:$0xf0]  ;;  %v4076_v45 = vld [vmem:[#allocation2 + $0x324] sm:$0xf] }
  0x6d   :  { %1505 = vmatpush.bf16.msrb.mxu1 %v3877_v1  ;;  %v3637_v1 = vor.u32 %v4093_v58, %v3636_v57  ;;  %v4130_v57 = vld [vmem:[#allocation2 + $0x4cc] sm:$0xf0]  ;;  %v4028_v58 = vld [vmem:[#allocation2 + $0x1a4] sm:$0xf]  ;;  %s4278_s0 = smov 47   ;;  %s4279_s16 = smov 32  }
  0x6e   :  { %1518 = vmatpush.bf16.msrb.mxu2 %v3497_v4  ;;  %v4081_v4 = vld [vmem:[#allocation2 + $0x344] sm:$0xf0]  ;;  %s4280_s17 = smov 33   ;;  %s4281_s18 = smov 34  }
  0x6f   :  { %1531 = vmatpush.bf16.msrb.mxu3 %v3881_v5  ;;  %v3257_v5 = vor.u32 %v3991_v59, %v3254_v60  ;;  %v3406_v59 = vld [vmem:[#allocation2 + $0x1d0] sm:$0xf0]  ;;  %v4124_v60 = vld [vmem:[#allocation2 + $0x4a4] sm:$0xf] }
  0x70   :  { %1493 = vmatpush.bf16.msrb.mxu0 %v3445_v12  ;;  %v4070_v12 = vld [vmem:[#allocation2 + $0x2ec] sm:$0xf0] }
  0x71   :  { %1506 = vmatpush.bf16.msrb.mxu1 %v3829_v13  ;;  %v3932_v13 = vld [vmem:[#allocation2 + $0x5c0] sm:$0xf]  ;;  %v3549_v23 = vor.u32 %v4070_v12, %v3548_v11 }
  0x72   :  { %1519 = vmatpush.bf16.msrb.mxu2 %v3449_v16  ;;  %v3205_v16 = vor.u32 %v3985_v2, %v3204_v63  ;;  %v3409_v2 = vor.u32 %v4028_v58, %v3406_v59  ;;  %v3308_v12 = vld [vmem:[#allocation2 + $0xe0] sm:$0xf]  ;;  %v3942_v58 = vld [vmem:[#allocation2 + $0x5f8] sm:$0xf0] }
  0x73   :  { %1532 = vmatpush.bf16.msrb.mxu3 %v3833_v17  ;;  %v3589_v17 = vor.u32 %v4081_v4, %v3588_v3  ;;  %v3793_v3 = vor.u32 %v4124_v60, %v3790_v61  ;;  %v3740_v4 = vld [vmem:[#allocation2 + $0x440] sm:$0xf] }
  0x74   :  { %1494 = vmatpush.bf16.msrb.mxu0 %v3397_v24  ;;  %v3933_v24 = vor.u32 %v4166_v14, %v3932_v13  ;;  %v4010_v13 = vld [vmem:[#allocation2 + $0x10c] sm:$0xf0] }
  0x75   :  { %1507 = vmatpush.bf16.msrb.mxu1 %v3781_v25  ;;  %v3500_v25 = vld [vmem:[#allocation2 + $0x260] sm:$0xf] }
  0x76   :  { %1520 = vmatpush.bf16.msrb.mxu2 %v3401_v29  ;;  %v3937_v29 = vor.u32 %v4160_v19, %v3934_v20  ;;  %v3501_v36 = vor.u32 %v4058_v26, %v3500_v25  ;;  %v3310_v19 = vld [vmem:[#allocation2 + $0x110] sm:$0xf0]  ;;  %v4100_v20 = vld [vmem:[#allocation2 + $0x3e4] sm:$0xf]  ;;  %v3998_v25 = vld [vmem:[#allocation2 + $0xac] sm:$0xf0] }
  0x77   :  { %1533 = vmatpush.bf16.msrb.mxu3 %v3785_v30  ;;  %v3884_v30 = vld [vmem:[#allocation2 + $0x560] sm:$0xf]  ;;  %v3313_v26 = vor.u32 %v4004_v18, %v3310_v19  ;;  %v3462_v18 = vld [vmem:[#allocation2 + $0x238] sm:$0xf0]  ;;  %v4137_v19 = vld [vmem:[#allocation2 + $0x50c] sm:$0xf] }
  0x78   :  { %1495 = vmatpush.bf16.msrb.mxu0 %v3349_v37  ;;  %v3885_v37 = vor.u32 %v4154_v31, %v3884_v30  ;;  %v4094_v30 = vld [vmem:[#allocation2 + $0x3ac] sm:$0xf0]  ;;  %v3992_v31 = vld [vmem:[#allocation2 + $0x84] sm:$0xf] }
  0x79   :  { %1508 = vmatpush.bf16.msrb.mxu1 %v3733_v38  ;;  %v3452_v38 = vld [vmem:[#allocation2 + $0x200] sm:$0xf] }
  0x7a   :  { %1521 = vmatpush.bf16.msrb.mxu2 %v3353_v41  ;;  %v3889_v41 = vor.u32 %v4148_v34, %v3886_v35  ;;  %v3453_v48 = vor.u32 %v4046_v39, %v3452_v38  ;;  %v3646_v34 = vld [vmem:[#allocation2 + $0x3b0] sm:$0xf0]  ;;  %v3212_v35 = vld [vmem:[#allocation2 + $0x20] sm:$0xf]  ;;  %v3986_v38 = vld [vmem:[#allocation2 + $0x4c] sm:$0xf0] }
  0x7b   :  { %1534 = vmatpush.bf16.msrb.mxu3 %v3737_v42  ;;  %v3836_v42 = vld [vmem:[#allocation2 + $0x500] sm:$0xf] }
  0x7c   :  { %1496 = vmatpush.bf16.msrb.mxu0 %v3301_v49  ;;  %v3837_v49 = vor.u32 %v4142_v43, %v3836_v42  ;;  %v3596_v39 = vld [vmem:[#allocation2 + $0x320] sm:$0xf]  ;;  %v3649_v42 = vor.u32 %v4088_v33, %v3646_v34  ;;  %v3980_v43 = vld [vmem:[#allocation2 + $0x24] sm:$0xf]  ;;  %v3798_v33 = vld [vmem:[#allocation2 + $0x4d8] sm:$0xf0] }
  0x7d   :  { %1509 = vmatpush.bf16.msrb.mxu1 %v3685_v50  ;;  %v3404_v50 = vld [vmem:[#allocation2 + $0x1a0] sm:$0xf]  ;;  %v3217_v59 = vor.u32 %v3980_v43, %v3214_v44  ;;  %v3366_v43 = vld [vmem:[#allocation2 + $0x178] sm:$0xf0]  ;;  %v4113_v44 = vld [vmem:[#allocation2 + $0x44c] sm:$0xf] }
  0x7e   :  { %1522 = vmatpush.bf16.msrb.mxu2 %v3305_v53  ;;  %v3841_v53 = vor.u32 %v4136_v46, %v3838_v47  ;;  %v3405_v62 = vor.u32 %v4034_v51, %v3404_v50  ;;  %v3598_v46 = vld [vmem:[#allocation2 + $0x350] sm:$0xf0]  ;;  %v3556_v47 = vld [vmem:[#allocation2 + $0x2c8] sm:$0xf]  ;;  %v4167_v50 = vld [vmem:[#allocation2 + $0x5f4] sm:$0xf0] }
  0x7f   :  { %1535 = vmatpush.bf16.msrb.mxu3 %v3689_v56  ;;  %v3788_v56 = vld [vmem:[#allocation2 + $0x4a0] sm:$0xf]  ;;  %v4065_v51 = vld [vmem:[#allocation2 + $0x2cc] sm:$0xf]  ;;  %v3601_v60 = vor.u32 %v4076_v45, %v3598_v46  ;;  %v3750_v45 = vld [vmem:[#allocation2 + $0x478] sm:$0xf0] }
  0x80   :  { %1497 = vmatpush.bf16.msrb.mxu0 %v3253_v0  ;;  %v3789_v63 = vor.u32 %v4130_v57, %v3788_v56  ;;  %v3356_v0 = vld [vmem:[#allocation2 + $0x140] sm:$0xf]  ;;  %v3558_v56 = vld [vmem:[#allocation2 + $0x2f8] sm:$0xf0]  ;;  %v4161_v57 = vld [vmem:[#allocation2 + $0x5cc] sm:$0xf] }
  0x81   :  { %1510 = vmatpush.bf16.msrb.mxu1 %v3637_v1  ;;  %v4022_v1 = vld [vmem:[#allocation2 + $0x16c] sm:$0xf0] }
  0x82   :  { %1523 = vmatpush.bf16.msrb.mxu2 %v3257_v5  ;;  %v4118_v5 = vld [vmem:[#allocation2 + $0x46c] sm:$0xf0]  ;;  %v3357_v10 = vor.u32 %v4022_v1, %v3356_v0  ;;  %v4059_v0 = vld [vmem:[#allocation2 + $0x294] sm:$0xf0]  ;;  %v3561_v1 = vor.u32 %v4065_v51, %v3558_v56  ;;  %v3753_v51 = vor.u32 %v4113_v44, %v3750_v45  ;;  %v4005_v56 = vld [vmem:[#allocation2 + $0xec] sm:$0xf] }
  0x83   :  { %1536 = vmatpush.bf16.msrb.mxu3 %v3641_v6  ;;  %v4016_v6 = vld [vmem:[#allocation2 + $0x144] sm:$0xf]  ;;  %v3741_v11 = vor.u32 %v4118_v5, %v3740_v4  ;;  %v4155_v4 = vld [vmem:[#allocation2 + $0x594] sm:$0xf0]  ;;  %v4053_v5 = vld [vmem:[#allocation2 + $0x26c] sm:$0xf] }
  0x84   :  { %1498 = vmatpush.bf16.msrb.mxu0 %v3205_v16  ;;  %v3361_v14 = vor.u32 %v4016_v6, %v3358_v7  ;;  %v3692_v16 = vld [vmem:[#allocation2 + $0x3e0] sm:$0xf]  ;;  %v3510_v6 = vld [vmem:[#allocation2 + $0x298] sm:$0xf0]  ;;  %v4149_v7 = vld [vmem:[#allocation2 + $0x56c] sm:$0xf] }
  0x85   :  { %1511 = vmatpush.bf16.msrb.mxu1 %v3589_v17  ;;  %v4106_v17 = vld [vmem:[#allocation2 + $0x40c] sm:$0xf0] }
  0x86   :  { %1524 = vmatpush.bf16.msrb.mxu2 %v3209_v21  ;;  %v3694_v21 = vld [vmem:[#allocation2 + $0x410] sm:$0xf0] }
  0x87   :  { %1537 = vmatpush.bf16.msrb.mxu3 %v3593_v22  ;;  %1499 = vmatmul.bf16.vlgmr.msrb.gmra.mxu0 %v4312_v54  ;;  %v3309_v22 = vor.u32 %v4010_v13, %v3308_v12  ;;  %v4047_v12 = vld [vmem:[#allocation2 + $0x234] sm:$0xf0]  ;;  %v3513_v13 = vor.u32 %v4053_v5, %v3510_v6  ;;  %v3270_v5 = vld [vmem:[#allocation2 + $0xb8] sm:$0xf0]  ;;  %v4089_v6 = vld [vmem:[#allocation2 + $0x38c] sm:$0xf] }
  0x88   :  { %1543 = vmatpush.bf16.msra.mxu0 %v3549_v23  ;;  %1512 = vmatmul.bf16.vlgmr.msrb.gmra.mxu1 %v4314_v55  ;;  %v3693_v23 = vor.u32 %v4106_v17, %v3692_v16  ;;  %v4143_v16 = vld [vmem:[#allocation2 + $0x534] sm:$0xf0]  ;;  %v4041_v17 = vld [vmem:[#allocation2 + $0x20c] sm:$0xf] }
  0x89   :  { %1556 = vmatpush.bf16.msra.mxu1 %v3933_v24  ;;  %1525 = vmatmul.bf16.vlgmr.msrb.gmra.mxu2 %v4312_v54  ;;  %v3260_v24 = vld [vmem:[#allocation2 + $0x80] sm:$0xf] }
  0x8a   :  { %1569 = vmatpush.bf16.msra.mxu2 %v3553_v28  ;;  %1538 = vmatmul.bf16.vlgmr.msrb.gmra.mxu3 %v4314_v55  ;;  %v3697_v28 = vor.u32 %v4100_v20, %v3694_v21  ;;  %v3846_v20 = vld [vmem:[#allocation2 + $0x538] sm:$0xf0] }
  0x8b   :  { %1582 = vmatpush.bf16.msra.mxu3 %v3937_v29  ;;  %v3644_v29 = vld [vmem:[#allocation2 + $0x380] sm:$0xf] }
  0x8c   :  { %1544 = vmatpush.bf16.msra.mxu0 %v3501_v36  ;;  %v3261_v36 = vor.u32 %v3998_v25, %v3260_v24  ;;  %v4035_v24 = vld [vmem:[#allocation2 + $0x1d4] sm:$0xf0]  ;;  %v3465_v25 = vor.u32 %v4041_v17, %v3462_v18  ;;  %v3222_v17 = vld [vmem:[#allocation2 + $0x58] sm:$0xf0]  ;;  %v4077_v18 = vld [vmem:[#allocation2 + $0x32c] sm:$0xf] }
  0x8d   :  { %1557 = vmatpush.bf16.msra.mxu1 %v3885_v37  ;;  %v3645_v37 = vor.u32 %v4094_v30, %v3644_v29  ;;  %v4131_v29 = vld [vmem:[#allocation2 + $0x4d4] sm:$0xf0]  ;;  %v4029_v30 = vld [vmem:[#allocation2 + $0x1ac] sm:$0xf] }
  0x8e   :  { %1570 = vmatpush.bf16.msra.mxu2 %v3505_v40  ;;  %v4082_v40 = vld [vmem:[#allocation2 + $0x34c] sm:$0xf0] }
  0x8f   :  { %1583 = vmatpush.bf16.msra.mxu3 %v3889_v41  ;;  %v3265_v41 = vor.u32 %v3992_v31, %v3262_v32  ;;  %v3414_v31 = vld [vmem:[#allocation2 + $0x1d8] sm:$0xf0]  ;;  %v4125_v32 = vld [vmem:[#allocation2 + $0x4ac] sm:$0xf] }
  0x90   :  { %1545 = vmatpush.bf16.msra.mxu0 %v3453_v48  ;;  %v4071_v48 = vld [vmem:[#allocation2 + $0x2f4] sm:$0xf0] }
  0x91   :  { %1558 = vmatpush.bf16.msra.mxu1 %v3837_v49  ;;  %v3940_v49 = vld [vmem:[#allocation2 + $0x5c8] sm:$0xf]  ;;  %v3557_v61 = vor.u32 %v4071_v48, %v3556_v47 }
  0x92   :  { %1571 = vmatpush.bf16.msra.mxu2 %v3457_v52  ;;  %v3213_v52 = vor.u32 %v3986_v38, %v3212_v35  ;;  %v3417_v38 = vor.u32 %v4029_v30, %v3414_v31  ;;  %v3316_v48 = vld [vmem:[#allocation2 + $0xe8] sm:$0xf] }
  0x93   :  { %1584 = vmatpush.bf16.msra.mxu3 %v3841_v53  ;;  %v3597_v53 = vor.u32 %v4082_v40, %v3596_v39  ;;  %v3801_v39 = vor.u32 %v4125_v32, %v3798_v33  ;;  %v3748_v40 = vld [vmem:[#allocation2 + $0x448] sm:$0xf] }
  0x94   :  { %1546 = vmatpush.bf16.msra.mxu0 %v3405_v62  ;;  %v3941_v62 = vor.u32 %v4167_v50, %v3940_v49  ;;  %v4011_v49 = vld [vmem:[#allocation2 + $0x114] sm:$0xf0] }
  0x95   :  { %1559 = vmatpush.bf16.msra.mxu1 %v3789_v63  ;;  %v3508_v63 = vld [vmem:[#allocation2 + $0x268] sm:$0xf] }
  0x96   :  { %1572 = vmatpush.bf16.msra.mxu2 %v3409_v2  ;;  %v3945_v2 = vor.u32 %v4161_v57, %v3942_v58  ;;  %v3509_v9 = vor.u32 %v4059_v0, %v3508_v63  ;;  %v3318_v57 = vld [vmem:[#allocation2 + $0x118] sm:$0xf0]  ;;  %v4101_v58 = vld [vmem:[#allocation2 + $0x3ec] sm:$0xf]  ;;  %v3999_v63 = vld [vmem:[#allocation2 + $0xb4] sm:$0xf0] }
  0x97   :  { %1585 = vmatpush.bf16.msra.mxu3 %v3793_v3  ;;  %v3892_v3 = vld [vmem:[#allocation2 + $0x568] sm:$0xf]  ;;  %v3321_v0 = vor.u32 %v4005_v56, %v3318_v57 }
  0x98   :  { %1547 = vmatpush.bf16.msra.mxu0 %v3357_v10  ;;  %v3893_v10 = vor.u32 %v4155_v4, %v3892_v3  ;;  %v4095_v3 = vld [vmem:[#allocation2 + $0x3b4] sm:$0xf0]  ;;  %v3993_v4 = vld [vmem:[#allocation2 + $0x8c] sm:$0xf] }
  0x99   :  { %1560 = vmatpush.bf16.msra.mxu1 %v3741_v11  ;;  %v3460_v11 = vld [vmem:[#allocation2 + $0x208] sm:$0xf] }
  0x9a   :  { %1573 = vmatpush.bf16.msra.mxu2 %v3361_v14  ;;  %v3897_v14 = vor.u32 %v4149_v7, %v3894_v8  ;;  %v3461_v21 = vor.u32 %v4047_v12, %v3460_v11  ;;  %v3654_v7 = vld [vmem:[#allocation2 + $0x3b8] sm:$0xf0]  ;;  %v3987_v11 = vld [vmem:[#allocation2 + $0x54] sm:$0xf0]  ;;  %v3273_v12 = vor.u32 %v3993_v4, %v3270_v5 }
  0x9b   :  { %1586 = vmatpush.bf16.msra.mxu3 %v3745_v15  ;;  %v3844_v15 = vld [vmem:[#allocation2 + $0x508] sm:$0xf] }
  0x9c   :  { %1548 = vmatpush.bf16.msra.mxu0 %v3309_v22  ;;  %v3845_v22 = vor.u32 %v4143_v16, %v3844_v15  ;;  %v4083_v15 = vld [vmem:[#allocation2 + $0x354] sm:$0xf0]  ;;  %v3981_v16 = vld [vmem:[#allocation2 + $0x2c] sm:$0xf] }
  0x9d   :  { %1561 = vmatpush.bf16.msra.mxu1 %v3693_v23  ;;  %v3412_v23 = vld [vmem:[#allocation2 + $0x1a8] sm:$0xf] }
  0x9e   :  { %1574 = vmatpush.bf16.msra.mxu2 %v3313_v26  ;;  %v3849_v26 = vor.u32 %v4137_v19, %v3846_v20  ;;  %v3413_v34 = vor.u32 %v4035_v24, %v3412_v23  ;;  %v3606_v19 = vld [vmem:[#allocation2 + $0x358] sm:$0xf0] }
  0x9f   :  { %1587 = vmatpush.bf16.msra.mxu3 %v3697_v28  ;;  %v3796_v28 = vld [vmem:[#allocation2 + $0x4a8] sm:$0xf]  ;;  %v3609_v23 = vor.u32 %v4077_v18, %v3606_v19 }
  0xa0   :  { %1549 = vmatpush.bf16.msra.mxu0 %v3261_v36  ;;  %v3797_v35 = vor.u32 %v4131_v29, %v3796_v28  ;;  %v3364_v36 = vld [vmem:[#allocation2 + $0x148] sm:$0xf] }
  0xa1   :  { %1562 = vmatpush.bf16.msra.mxu1 %v3645_v37  ;;  %v4023_v37 = vld [vmem:[#allocation2 + $0x174] sm:$0xf0] }
  0xa2   :  { %1575 = vmatpush.bf16.msra.mxu2 %v3265_v41  ;;  %v4119_v41 = vld [vmem:[#allocation2 + $0x474] sm:$0xf0]  ;;  %v3365_v46 = vor.u32 %v4023_v37, %v3364_v36 }
  0xa3   :  { %1588 = vmatpush.bf16.msra.mxu3 %v3649_v42  ;;  %v4017_v42 = vld [vmem:[#allocation2 + $0x14c] sm:$0xf]  ;;  %v3749_v47 = vor.u32 %v4119_v41, %v3748_v40 }
  0xa4   :  { %1550 = vmatpush.bf16.msra.mxu0 %v3213_v52  ;;  %v3369_v50 = vor.u32 %v4017_v42, %v3366_v43  ;;  %v3700_v52 = vld [vmem:[#allocation2 + $0x3e8] sm:$0xf] }
  0xa5   :  { %1563 = vmatpush.bf16.msra.mxu1 %v3597_v53  ;;  %v4107_v53 = vld [vmem:[#allocation2 + $0x414] sm:$0xf0] }
  0xa6   :  { %1576 = vmatpush.bf16.msra.mxu2 %v3217_v59  ;;  %v3702_v59 = vld [vmem:[#allocation2 + $0x418] sm:$0xf0] }
  0xa7   :  { %1589 = vmatpush.bf16.msra.mxu3 %v3601_v60  ;;  %1551 = vmatmul.bf16.vlgmr.msra.gmra.mxu0 %v4312_v54  ;;  %v3317_v60 = vor.u32 %v4011_v49, %v3316_v48 }
  0xa8   :  { %1595 = vmatpush.bf16.msrb.mxu0 %v3557_v61  ;;  %1564 = vmatmul.bf16.vlgmr.msra.gmra.mxu1 %v4314_v55  ;;  %v3701_v61 = vor.u32 %v4107_v53, %v3700_v52 }
  0xa9   :  { %1608 = vmatpush.bf16.msrb.mxu1 %v3941_v62  ;;  %1577 = vmatmul.bf16.vlgmr.msra.gmra.mxu2 %v4312_v54  ;;  %v3268_v62 = vld [vmem:[#allocation2 + $0x88] sm:$0xf] }
  0xaa   :  { %1621 = vmatpush.bf16.msrb.mxu2 %v3561_v1  ;;  %1590 = vmatmul.bf16.vlgmr.msra.gmra.mxu3 %v4314_v55  ;;  %v3705_v1 = vor.u32 %v4101_v58, %v3702_v59  ;;  %v3269_v8 = vor.u32 %v3999_v63, %v3268_v62 }
  0xab   :  { %1634 = vmatpush.bf16.msrb.mxu3 %v3945_v2  ;;  %v3652_v2 = vld [vmem:[#allocation2 + $0x388] sm:$0xf] }
  0xac   :  { %1596 = vmatpush.bf16.msrb.mxu0 %v3509_v9  ;;  %v3653_v9 = vor.u32 %v4095_v3, %v3652_v2 }
  0xad   :  { %1609 = vmatpush.bf16.msrb.mxu1 %v3893_v10  ;;  %v3220_v10 = vld [vmem:[#allocation2 + $0x28] sm:$0xf] }
  0xae   :  { %1622 = vmatpush.bf16.msrb.mxu2 %v3513_v13  ;;  %v3657_v13 = vor.u32 %v4089_v6, %v3654_v7  ;;  %v3221_v20 = vor.u32 %v3987_v11, %v3220_v10 }
  0xaf   :  { %1635 = vmatpush.bf16.msrb.mxu3 %v3897_v14  ;;  %v3604_v14 = vld [vmem:[#allocation2 + $0x328] sm:$0xf] }
  0xb0   :  { %1597 = vmatpush.bf16.msrb.mxu0 %v3461_v21  ;;  %v3605_v21 = vor.u32 %v4083_v15, %v3604_v14 }
  0xb1   :  { %1610 = vmatpush.bf16.msrb.mxu1 %v3845_v22  ;;  %v3225_v22 = vor.u32 %v3981_v16, %v3222_v17 }
  0xb2   :  { %1623 = vmatpush.bf16.msrb.mxu2 %v3465_v25 }
  0xb3   :  { %1636 = vmatpush.bf16.msrb.mxu3 %v3849_v26  ;;  %v1344_v24 = vpop.f32.mrf.mxu0 }
  0xb4   :  { %1598 = vmatpush.bf16.msrb.mxu0 %v3413_v34  ;;  %v1357_v25 = vpop.f32.mrf.mxu1 }
  0xb5   :  { %1611 = vmatpush.bf16.msrb.mxu1 %v3797_v35  ;;  %v4336_v26 = vadd.f32 %v1357_v25, %v1344_v24 }
  0xb6   :  { %1624 = vmatpush.bf16.msrb.mxu2 %v3417_v38 }
  0xb7   :  { %1637 = vmatpush.bf16.msrb.mxu3 %v3801_v39 }
  0xb8   :  { %1599 = vmatpush.bf16.msrb.mxu0 %v3365_v46 }
  0xb9   :  { %1612 = vmatpush.bf16.msrb.mxu1 %v3749_v47 }
  0xba   :  { %1625 = vmatpush.bf16.msrb.mxu2 %v3369_v50 }
  0xbb   :  { %1638 = vmatpush.bf16.msrb.mxu3 %v3753_v51  ;;  %v1370_v28 = vpop.f32.mrf.mxu2  ;;  %v1346_v30 = vpop.f32.mrf.mxu0 }
  0xbc   :  { %1600 = vmatpush.bf16.msrb.mxu0 %v3317_v60  ;;  %v1383_v29 = vpop.f32.mrf.mxu3  ;;  %v1359_v31 = vpop.f32.mrf.mxu1 }
  0xbd   :  { %1613 = vmatpush.bf16.msrb.mxu1 %v3701_v61  ;;  %v4342_v32 = vadd.f32 %v1383_v29, %v1370_v28 }
  0xbe   :  { %1626 = vmatpush.bf16.msrb.mxu2 %v3321_v0 }
  0xbf   :  { %1639 = vmatpush.bf16.msrb.mxu3 %v3705_v1 }
  0xc0   :  { %1601 = vmatpush.bf16.msrb.mxu0 %v3269_v8 }
  0xc1   :  { %1614 = vmatpush.bf16.msrb.mxu1 %v3653_v9 }
  0xc2   :  { %1627 = vmatpush.bf16.msrb.mxu2 %v3273_v12 }
  0xc3   :  { %1640 = vmatpush.bf16.msrb.mxu3 %v3657_v13  ;;  %v1372_v33 = vpop.f32.mrf.mxu2 }
  0xc4   :  { %1602 = vmatpush.bf16.msrb.mxu0 %v3221_v20  ;;  %v1385_v34 = vpop.f32.mrf.mxu3  ;;  %v1396_v35 = vpop.f32.mrf.mxu0 }
  0xc5   :  { %1615 = vmatpush.bf16.msrb.mxu1 %v3605_v21  ;;  %v1409_v36 = vpop.f32.mrf.mxu1 }
  0xc6   :  { %1628 = vmatpush.bf16.msrb.mxu2 %v3225_v22  ;;  %v1410_v37 = vadd.f32 %v1409_v36, %v1396_v35 }
  0xc7   :  { %1641 = vmatpush.bf16.msrb.mxu3 %v3609_v23  ;;  %1603 = vmatmul.bf16.vlgmr.msrb.gmra.mxu0 %v4312_v54 }
  0xc8   :  { %1616 = vmatmul.bf16.vlgmr.msrb.gmra.mxu1 %v4314_v55  ;;  %v3950_v43 = vadd.f32 -0.22, %v1410_v37 }
  0xc9   :  { %1629 = vmatmul.bf16.vlgmr.msrb.gmra.mxu2 %v4312_v54 }
  0xca   :  { %1642 = vmatmul.bf16.vlgmr.msrb.gmra.mxu3 %v4314_v55  ;;  %v1667_v54 = vmul.f32 33.333332, %v3950_v43 }
  0xcc   :  { %v1422_v38 = vpop.f32.mrf.mxu2  ;;  %v1398_v41 = vpop.f32.mrf.mxu0  ;;  %v1669_v46 = vmul.f32 -0.5, %v1667_v54 }
  0xcd   :  { %v1435_v39 = vpop.f32.mrf.mxu3  ;;  %v1411_v42 = vpop.f32.mrf.mxu1 }
  0xce   :  { %v1436_v40 = vadd.f32 %v1435_v39, %v1422_v38  ;;  %v1671_v48 = vmul.f32 %v1669_v46, %v1667_v54 }
  0xd0   :  { %v3951_v45 = vadd.f32 -0.22, %v1436_v40  ;;  %v1673_v53 = vmul.f32 1.442695, %v1671_v48 }
  0xd2   :  { %v1668_v47 = vmul.f32 33.333332, %v3951_v45  ;;  %4200 = vpow2.f32 %v1673_v53 }
  0xd4   :  { %v1424_v44 = vpop.f32.mrf.mxu2  ;;  %v1670_v52 = vmul.f32 -0.5, %v1668_v47 }
  0xd5   :  { %v1437_v55 = vpop.f32.mrf.mxu3 }
  0xd6   :  { %v1672_v58 = vmul.f32 %v1670_v52, %v1668_v47 }
  0xd8   :  { %v1675_v2 = vmul.f32 1.442695, %v1672_v58  ;;  %v4201_v6 = vpop.eup %4200 }
  0xd9   :  { %v1677_v10 = vmul.f32 2.0, %v4201_v6  ;;  %v3946_v6 = vadd.f32 -0.15, %v4336_v26 }
  0xdb   :  { %v3952_v15 = vadd.f32 -1.0, %v1677_v10  ;;  %v1649_v10 = vmul.f32 66.666664, %v3946_v6 }
  0xdd   :  { %v1681_v19 = vmul.f32 0.7, %v3952_v15  ;;  %v3947_v15 = vadd.f32 -0.15, %v4342_v32 }
  0xdf   :  { %v1683_v25 = vmul.f32 0.7, %v1681_v19 }
  0xe4   :  { %v1448_v49 = vpop.f32.mrf.mxu0 }
  0xe5   :  { %v1461_v50 = vpop.f32.mrf.mxu1 }
  0xe6   :  { %v1462_v51 = vadd.f32 %v1461_v50, %v1448_v49 }
  0xe8   :  { %v3954_v56 = vadd.f32 -0.18, %v1462_v51 }
  0xea   :  { %v1689_v57 = vmul.f32 40.0, %v3954_v56 }
  0xec   :  { %v1691_v59 = vmul.f32 -0.5, %v1689_v57  ;;  %v1474_v60 = vpop.f32.mrf.mxu2  ;;  %v1450_v63 = vpop.f32.mrf.mxu0 }
  0xed   :  { %v1487_v61 = vpop.f32.mrf.mxu3  ;;  %v1463_v0 = vpop.f32.mrf.mxu1 }
  0xee   :  { %v1488_v62 = vadd.f32 %v1487_v61, %v1474_v60  ;;  %v1693_v1 = vmul.f32 %v1691_v59, %v1689_v57 }
  0xf0   :  { %v3955_v3 = vadd.f32 -0.18, %v1488_v62  ;;  %v1695_v4 = vmul.f32 1.442695, %v1693_v1 }
  0xf2   :  { %v1690_v5 = vmul.f32 40.0, %v3955_v3  ;;  %4202 = vpow2.f32 %v1695_v4 }
  0xf3   :  { %4204 = vpow2.f32 %v1675_v2 }
  0xf4   :  { %v1692_v7 = vmul.f32 -0.5, %v1690_v5  ;;  %v1476_v8 = vpop.f32.mrf.mxu2 }
  0xf5   :  { %v1489_v9 = vpop.f32.mrf.mxu3 }
  0xf6   :  { %v1694_v11 = vmul.f32 %v1692_v7, %v1690_v5 }
  0xf8   :  { %v1697_v12 = vmul.f32 1.442695, %v1694_v11  ;;  %v4203_v13 = vpop.eup %4202 }
  0xf9   :  { %v4205_v14 = vpop.eup %4204  ;;  %v1699_v16 = vmul.f32 2.0, %v4203_v13 }
  0xfa   :  { %4206 = vpow2.f32 %v1697_v12  ;;  %v1678_v18 = vmul.f32 2.0, %v4205_v14 }
  0xfb   :  { %v3956_v17 = vadd.f32 -1.0, %v1699_v16 }
  0xfc   :  { %v3953_v23 = vadd.f32 -1.0, %v1678_v18  ;;  %v1651_v18 = vmul.f32 -0.5, %v1649_v10 }
  0xfd   :  { %v1703_v20 = vmul.f32 0.9, %v3956_v17 }
  0xfe   :  { %v1682_v34 = vmul.f32 0.7, %v3953_v23  ;;  %v1653_v23 = vmul.f32 %v1651_v18, %v1649_v10 }
  0xff   :  { %v1705_v22 = vmul.f32 0.9, %v1703_v20 }
 0x100   :  { %v4207_v21 = vpop.eup %4206  ;;  %v1684_v37 = vmul.f32 0.7, %v1682_v34 }
 0x101   :  { %v1700_v24 = vmul.f32 2.0, %v4207_v21  ;;  %v1709_v28 = vrot.slane %v1705_v22, 1  ;;  %v1650_v22 = vmul.f32 66.666664, %v3947_v15 }
 0x103   :  { %v3957_v29 = vadd.f32 -1.0, %v1700_v24  ;;  %v4344_v30 = vadd.f32 %v1709_v28, %v1683_v25  ;;  %v1652_v32 = vmul.f32 -0.5, %v1650_v22 }
 0x104   :  { %v1500_v31 = vpop.f32.mrf.mxu0 }
 0x105   :  { %v1513_v33 = vpop.f32.mrf.mxu1  ;;  %v1704_v35 = vmul.f32 0.9, %v3957_v29 }
 0x106   :  { %v1514_v52 = vadd.f32 %v1513_v33, %v1500_v31 }
 0x107   :  { %v1706_v36 = vmul.f32 0.9, %v1704_v35 }
 0x108   :  { %v3958_v57 = vadd.f32 -0.3, %v1514_v52 }
 0x109   :  { %v1710_v38 = vrot.slane %v1706_v36, 1 }
 0x10a   :  { %v1717_v63 = vmul.f32 16.666666, %v3958_v57 }
 0x10b   :  { %v4346_v39 = vadd.f32 %v1710_v38, %v1684_v37 }
 0x10c   :  { %v1526_v40 = vpop.f32.mrf.mxu2  ;;  %v1502_v42 = vpop.f32.mrf.mxu0  ;;  %v1719_v3 = vmul.f32 -0.5, %v1717_v63 }
 0x10d   :  { %v1539_v41 = vpop.f32.mrf.mxu3  ;;  %v1515_v43 = vpop.f32.mrf.mxu1 }
 0x10e   :  { %v1540_v62 = vadd.f32 %v1539_v41, %v1526_v40  ;;  %v1721_v8 = vmul.f32 %v1719_v3, %v1717_v63  ;;  %v1655_v41 = vmul.f32 1.442695, %v1653_v23 }
 0x110   :  { %v3959_v2 = vadd.f32 -0.3, %v1540_v62  ;;  %v1723_v12 = vmul.f32 1.442695, %v1721_v8 }
 0x112   :  { %v1718_v7 = vmul.f32 16.666666, %v3959_v2 }
 0x114   :  { %v1528_v54 = vpop.f32.mrf.mxu2  ;;  %v1720_v11 = vmul.f32 -0.5, %v1718_v7 }
 0x115   :  { %v1541_v44 = vpop.f32.mrf.mxu3 }
 0x116   :  { %v1722_v19 = vmul.f32 %v1720_v11, %v1718_v7  ;;  %v1654_v44 = vmul.f32 %v1652_v32, %v1650_v22 }
 0x118   :  { %v1725_v24 = vmul.f32 1.442695, %v1722_v19  ;;  %v1657_v52 = vmul.f32 1.442695, %v1654_v44 }
 0x124   :  { %v1552_v55 = vpop.f32.mrf.mxu0 }
 0x125   :  { %v1565_v45 = vpop.f32.mrf.mxu1 }
 0x126   :  { %v1566_v46 = vadd.f32 %v1565_v45, %v1552_v55 }
 0x128   :  { %v3962_v47 = vadd.f32 -0.12, %v1566_v46 }
 0x12a   :  { %v1739_v56 = vmul.f32 50.0, %v3962_v47 }
 0x12c   :  { %v1578_v48 = vpop.f32.mrf.mxu2  ;;  %v1554_v50 = vpop.f32.mrf.mxu0  ;;  %v1741_v59 = vmul.f32 -0.5, %v1739_v56 }
 0x12d   :  { %v1591_v49 = vpop.f32.mrf.mxu3  ;;  %v1567_v51 = vpop.f32.mrf.mxu1 }
 0x12e   :  { %v1592_v53 = vadd.f32 %v1591_v49, %v1578_v48  ;;  %v1743_v1 = vmul.f32 %v1741_v59, %v1739_v56 }
 0x130   :  { %v3963_v58 = vadd.f32 -0.12, %v1592_v53  ;;  %v1745_v5 = vmul.f32 1.442695, %v1743_v1 }
 0x132   :  { %v1740_v0 = vmul.f32 50.0, %v3963_v58  ;;  %4208 = vpow2.f32 %v1745_v5  ;;  %v3970_v58 = vrot.slane %v4309_v27, 9 }
 0x133   :  { %4210 = vpow2.f32 %v1723_v12 }
 0x134   :  { %v1580_v60 = vpop.f32.mrf.mxu2  ;;  %v1742_v4 = vmul.f32 -0.5, %v1740_v0  ;;  %v1796_v3 = vadd.f32 %v3970_v58, %v4309_v27 }
 0x135   :  { %v1593_v61 = vpop.f32.mrf.mxu3 }
 0x136   :  { %v1744_v9 = vmul.f32 %v1742_v4, %v1740_v0  ;;  %v3971_v4 = vrot.slane %v4309_v27, 10 }
 0x138   :  { %v1747_v16 = vmul.f32 1.442695, %v1744_v9  ;;  %v4209_v21 = vpop.eup %4208 }
 0x139   :  { %v1749_v25 = vmul.f32 2.0, %v4209_v21  ;;  %v4211_v37 = vpop.eup %4210 }
 0x13a   :  { %4212 = vpow2.f32 %v1747_v16  ;;  %v1727_v55 = vmul.f32 2.0, %v4211_v37  ;;  %v1804_v37 = vrot.slane %v4346_v39, 7  ;;  %v1953_v39 = vmul.f32 0.5, %v4309_v27 }
 0x13b   :  { %4214 = vpow2.f32 %v1725_v24  ;;  %v3964_v42 = vadd.f32 -1.0, %v1749_v25 }
 0x13c   :  { %v3960_v53 = vadd.f32 -1.0, %v1727_v55  ;;  %v1954_v44 = vmul.f32 %v1953_v39, %v1953_v39 }
 0x13d   :  { %v1753_v47 = vmul.f32 0.8, %v3964_v42 }
 0x13e   :  { %v1731_v0 = vmul.f32 0.6, %v3960_v53  ;;  %v1955_v55 = vmax.f32 %v1954_v44, 0.0 }
 0x13f   :  { %v1755_v60 = vmul.f32 0.8, %v1753_v47  ;;  %v34_v47 = vlaneseq }
 0x140   :  { %v4213_v40 = vpop.eup %4212  ;;  %v1733_v9 = vmul.f32 0.6, %v1731_v0 }
 0x141   :  { %v1750_v45 = vmul.f32 2.0, %v4213_v40  ;;  %v4215_v51 = vpop.eup %4214  ;;  %v1759_v5 = vrot.slane %v1755_v60, 1 }
 0x142   :  { %v1728_v61 = vmul.f32 2.0, %v4215_v51 }
 0x143   :  { %v3965_v56 = vadd.f32 -1.0, %v1750_v45  ;;  %v1763_v15 = vadd.f32 %v1759_v5, %v1733_v9  ;;  %v1956_v45 = vmin.f32 %v1955_v55, 1.0 }
 0x144   :  { %v1604_v13 = vpop.f32.mrf.mxu0  ;;  %v3961_v7 = vadd.f32 -1.0, %v1728_v61 }
 0x145   :  { %v1617_v14 = vpop.f32.mrf.mxu1  ;;  %v1754_v1 = vmul.f32 0.8, %v3965_v56  ;;  %v1809_v25 = vrot.slane %v1763_v15, 7 }
 0x146   :  { %v1618_v17 = vadd.f32 %v1617_v14, %v1604_v13  ;;  %v1800_v13 = vadd.f32 %v3971_v4, %v1796_v3  ;;  %v1732_v18 = vmul.f32 0.6, %v3961_v7 }
 0x147   :  { %v1756_v11 = vmul.f32 0.8, %v1754_v1 }
 0x148   :  { %v3966_v20 = vadd.f32 -0.25, %v1618_v17  ;;  %v1814_v23 = vperm.slane %v1800_v13, 0  ;;  %v1815_v42 = vperm.slane %v1800_v13, 4 }
 0x149   :  { %v1760_v22 = vrot.slane %v1756_v11, 1 }
 0x14a   :  { %v1767_v26 = vmul.f32 25.0, %v3966_v20  ;;  %v1803_v20 = vrot.slane %v4344_v30, 7 }
 0x14c   :  { %v1769_v28 = vmul.f32 -0.5, %v1767_v26  ;;  %v1630_v29 = vpop.f32.mrf.mxu2  ;;  %v1606_v34 = vpop.f32.mrf.mxu0 }
 0x14d   :  { %v1643_v31 = vpop.f32.mrf.mxu3  ;;  %v1619_v35 = vpop.f32.mrf.mxu1 }
 0x14e   :  { %v1644_v33 = vadd.f32 %v1643_v31, %v1630_v29  ;;  %v1771_v36 = vmul.f32 %v1769_v28, %v1767_v26  ;;  %v1734_v29 = vmul.f32 0.6, %v1732_v18 }
 0x150   :  { %v3967_v38 = vadd.f32 -0.25, %v1644_v33  ;;  %v1773_v43 = vmul.f32 1.442695, %v1771_v36  ;;  %v1764_v35 = vadd.f32 %v1760_v22, %v1734_v29 }
 0x152   :  { %v1768_v54 = vmul.f32 25.0, %v3967_v38  ;;  %4216 = vpow2.f32 %v1773_v43  ;;  %v1810_v40 = vrot.slane %v1764_v35, 7 }
 0x153   :  { %4218 = vpow2.f32 %v1655_v41 }
 0x154   :  { %v1770_v46 = vmul.f32 -0.5, %v1768_v54  ;;  %v1632_v48 = vpop.f32.mrf.mxu2 }
 0x155   :  { %v1645_v49 = vpop.f32.mrf.mxu3 }
 0x156   :  { %v1772_v50 = vmul.f32 %v1770_v46, %v1768_v54  ;;  %v1957_v46 = vsub.f32 1.0, %v1956_v45 }
 0x158   :  { %v1775_v57 = vmul.f32 1.442695, %v1772_v50  ;;  %v4217_v59 = vpop.eup %4216  ;;  %1959 = vst [vmem:[#allocation1] ss:$2 sm:$0xff] %v1957_v46  ;;  %v35_v50 = vand.u32 127, %v34_v47 }
 0x159   :  { %v1777_v62 = vmul.f32 2.0, %v4217_v59  ;;  %v4219_v63 = vpop.eup %4218 }
 0x15a   :  { %4220 = vpow2.f32 %v1775_v57  ;;  %v1659_v6 = vmul.f32 2.0, %v4219_v63  ;;  %v36_v53 = vadd.s32 128, %v35_v50  ;;  %v4388_v57 = vshra.s32 %v35_v50, 4 }
 0x15b   :  { %4222 = vpow2.f32 %v1657_v52  ;;  %v3968_v2 = vadd.f32 -1.0, %v1777_v62  ;;  %v4396_v61 = vand.u32 15, %v35_v50 }
 0x15c   :  { %v3948_v17 = vadd.f32 -1.0, %v1659_v6  ;;  %v4394_v60 = vshra.s32 %v36_v53, 4  ;;  %v4398_v62 = vand.u32 15, %v36_v53  ;;  %v49_v63 = vadd.s32 4294967295, %v4388_v57 }
 0x15d   :  { %v1781_v8 = vmul.f32 0.5, %v3968_v2  ;;  %v57_v4 = vadd.s32 4294967295, %v4396_v61 }
 0x15e   :  { %v50_v1 = vadd.s32 4294967295, %v4394_v60  ;;  %vm51_vm3 = vcmp.ge.s32.totalorder %v49_v63, 0  ;;  %vm53_vm4 = vcmp.lt.s32.totalorder %v49_v63, 16  ;;  %v58_v5 = vadd.s32 4294967295, %v4398_v62 }
 0x15f   :  { %v1783_v12 = vmul.f32 0.5, %v1781_v8  ;;  %v4378_v48 = vld.sshfl [vmem:[#allocation1] sm:$0xff pattern:$0x75316420]  ;;  %v109_v8 = vadd.s32 1, %v4388_v57  ;;  %v110_v9 = vadd.s32 1, %v4394_v60  ;;  %vm4414_vm7 = vmand %vm51_vm3, %vm53_vm4 }
 0x160   :  { %v4221_v10 = vpop.eup %4220  ;;  %v4380_v49 = vld.sshfl [vmem:[#allocation1 + $0x8] sm:$0xff pattern:$0x75316420]  ;;  %vm52_vm5 = vcmp.ge.s32.totalorder %v50_v1, 0  ;;  %vm54_vm6 = vcmp.lt.s32.totalorder %v50_v1, 16  ;;  %vm5166_vm8 = vcmp.ge.s32.totalorder %v57_v4, 0 }
 0x161   :  { %v4223_v14 = vpop.eup %4222  ;;  %v1778_v16 = vmul.f32 2.0, %v4221_v10  ;;  %v1787_v19 = vrot.slane %v1783_v12, 2  ;;  %1969 = vst [vmem:[#allocation1] ss:$2 sm:$0xff] %v1956_v45  ;;  %vm4418_vm9 = vmand %vm52_vm5, %vm54_vm6  ;;  %vm5165_vm10 = vcmp.ge.s32.totalorder %v58_v5, 0  ;;  %vm111_vm11 = vcmp.ge.s32.totalorder %v109_v8, 0 }
 0x162   :  { %v1660_v24 = vmul.f32 2.0, %v4223_v14  ;;  %vm113_vm12 = vcmp.lt.s32.totalorder %v109_v8, 16  ;;  %vm4427_vm13 = vmand %vm4414_vm7, %vm5166_vm8  ;;  %vm112_vm14 = vcmp.ge.s32.totalorder %v110_v9, 0  ;;  %vm114_vm15 = vcmp.lt.s32.totalorder %v110_v9, 16 }
 0x163   :  { %v3969_v21 = vadd.f32 -1.0, %v1778_v16  ;;  %v1791_v26 = vadd.f32 %v3948_v17, %v1787_v19  ;;  %vm4440_vm3 = vmand %vm111_vm11, %vm113_vm12  ;;  %vm92_vm4 = vcmp.ge.s32.totalorder %v4394_v60, 0  ;;  %vm94_vm5 = vcmp.lt.s32.totalorder %v4394_v60, 16 }
 0x164   :  { %v3949_v30 = vadd.f32 -1.0, %v1660_v24  ;;  %vm4446_vm6 = vmand %vm112_vm14, %vm114_vm15  ;;  %v4460_v22 = vadd.s32 1, %v4398_v62  ;;  %vm5183_vm11 = vcmp.ge.s32.totalorder %v57_v4, 0  ;;  %vm1846_vm15 = vcmask 130048  }
 0x165   :  { %v1782_v28 = vmul.f32 0.5, %v3969_v21  ;;  %v1819_v31 = vsel %vm1818_vm0, %v1791_v26, %v1803_v20  ;;  %v79_v20 = vadd.s32 1, %v4396_v61  ;;  %vm4455_vm8 = vmand %vm92_vm4, %vm94_vm5  ;;  %vm5189_vm4 = vcmp.ge.s32.totalorder %v58_v5, 0 }
 0x166   :  { %v1822_v33 = vsel %vm1821_vm1, %v1819_v31, %v1809_v25  ;;  %vm4465_vm12 = vmand %vm4440_vm3, %vm5183_vm11 }
 0x167   :  { %v1784_v34 = vmul.f32 0.5, %v1782_v28  ;;  %v1825_v32 = vsel %vm1824_vm2, %v1822_v33, %v1814_v23  ;;  %v4261_v28 = vmov 0.0   ;;  %vm98_vm5 = vmand %vm4455_vm8, %vm5189_vm4  ;;  %vm85_vm14 = vcmp.lt.s32.totalorder %v79_v20, 16 }
 0x168   :  { %1832 = vrot.lane.b32.xlu2 %v1825_v32, %s4253_s20  ;;  %1901 = vrot.lane.b32.xlu1 %v1825_v32, %s4254_s21  ;;  %v4390_v58 = vld.sshfl [vmem:[#allocation1] sm:$0xff pattern:$0x75316420]  ;;  %v4392_v59 = vld.sshfl [vmem:[#allocation1 + $0x8] sm:$0xff pattern:$0x75316420] }
 0x169   :  { %v1788_v36 = vrot.slane %v1784_v34, 2  ;;  %1844 = vrot.lane.b32.xlu0 %v1825_v32, %s4255_s22  ;;  %1978 = vst [vmem:[#allocation1] ss:$2 sm:$0xff] %v1957_v46  ;;  %v67_v29 = vsel %vm4427_vm13, 1.0, %v4261_v28  ;;  %v77_v33 = vsel %vm4414_vm7, 1.0, %v4261_v28  ;;  %v78_v34 = vsel %vm4418_vm9, 1.0, %v4261_v28 }
 0x16a   :  { %vm86_vm13 = vcmp.lt.s32.totalorder %v4460_v22, 16  ;;  %v128_v39 = vsel %vm4446_vm6, 1.0, %v4261_v28 }
 0x16b   :  { %v1792_v38 = vadd.f32 %v3949_v30, %v1788_v36  ;;  %v121_v36 = vsel %vm4465_vm12, 1.0, %v4261_v28  ;;  %vm5195_vm12 = vcmask 138240  }
 0x16d   :  { %v1820_v41 = vsel %vm1818_vm0, %v1792_v38, %v1804_v37  ;;  %vm4434_vm0 = vmand %vm4418_vm9, %vm5165_vm10  ;;  %v102_v38 = vsel %vm98_vm5, 1.0, %v4261_v28 }
 0x16e   :  { %v1823_v43 = vsel %vm1821_vm1, %v1820_v41, %v1810_v40  ;;  %vm91_vm1 = vcmp.ge.s32.totalorder %v4388_v57, 0  ;;  %v68_v31 = vsel %vm4434_vm0, 1.0, %v4261_v28  ;;  %vm5190_vm0 = vmmov %vm5189_vm4 }
 0x16f   :  { %v1826_v54 = vsel %vm1824_vm2, %v1823_v43, %v1815_v42  ;;  %vm93_vm2 = vcmp.lt.s32.totalorder %v4388_v57, 16  ;;  %vm4499_vm4 = vmand %vm4446_vm6, %vm5190_vm0 }
 0x170   :  { %1877 = vrot.lane.b32.xlu2 %v1825_v32, %s4256_s23  ;;  %1868 = vrot.lane.b32.xlu1 %v1825_v32, %s4257_s24  ;;  %v4408_v6 = vld.sshfl [vmem:[#allocation1] sm:$0xff pattern:$0x75316420]  ;;  %v4410_v7 = vld.sshfl [vmem:[#allocation1 + $0x8] sm:$0xff pattern:$0x75316420]  ;;  %vm4450_vm10 = vmand %vm91_vm1, %vm93_vm2 }
 0x171   :  { %1841 = vrot.lane.b32.xlu0 %v1826_v54, %s4255_s22  ;;  %1987 = vst [vmem:[#allocation1] ss:$2 sm:$0xff] %v1956_v45  ;;  %vm5186_vm1 = vmmov %vm5183_vm11  ;;  %vm1870_vm11 = vcmask 7168  }
 0x172   :  { %vm4472_vm2 = vmand %vm4450_vm10, %vm5186_vm1  ;;  %vm1905_vm1 = vcmask 916480  }
 0x173   :  { %v101_v37 = vsel %vm4472_vm2, 1.0, %v4261_v28  ;;  %vm4517_vm0 = vmand %vm4450_vm10, %vm85_vm14  ;;  %vm1881_vm10 = vcmask 1039360  }
 0x174   :  { %vm106_vm2 = vmand %vm4455_vm8, %vm86_vm13  ;;  %v107_v1 = vsel %vm4517_vm0, 1.0, %v4261_v28  ;;  %vm5198_vm0 = vcmask 924672  }
 0x175   :  { %vm4540_vm5 = vmand %vm4414_vm7, %vm85_vm14  ;;  %vm1858_vm7 = vcmask 121856  }
 0x176   :  { %vm88_vm8 = vmand %vm4418_vm9, %vm86_vm13  ;;  %v89_v14 = vsel %vm4540_vm5, 1.0, %v4261_v28  ;;  %vm2198_vm5 = vcmask 900096  }
 0x177   :  { %v90_v15 = vsel %vm88_vm8, 1.0, %v4261_v28  ;;  %vm131_vm9 = vmand %vm4440_vm3, %vm85_vm14  ;;  %vm2181_vm14 = vcmask 769024   ;;  %vm2230_vm8 = vcmask 777216  }
 0x178   :  { %1828 = vrot.lane.b32.xlu2 %v1826_v54, %s4253_s20  ;;  %1889 = vrot.lane.b32.xlu1 %v1825_v32, %s4258_s25 }
 0x179   :  { %1865 = vrot.lane.b32.xlu0 %v1826_v54, %s4257_s24 }
 0x180   :  { %1891 = vrot.lane.b32.xlu2 %v1826_v54, %s4258_s25  ;;  %1903 = vrot.lane.b32.xlu1 %v1826_v54, %s4254_s21 }
 0x181   :  { %1879 = vrot.lane.b32.xlu0 %v1826_v54, %s4256_s23 }
 0x188   :  { %1913 = vrot.lane.b32.xlu2 %v1825_v32, %s4259_s26  ;;  %1856 = vrot.lane.b32.xlu1 %v1825_v32, %s4260_s27 }
 0x189   :  { %1853 = vrot.lane.b32.xlu0 %v1826_v54, %s4260_s27 }
 0x191   :  { %1915 = vrot.lane.b32.xlu0 %v1826_v54, %s4259_s26  ;;  %v127_v54 = vsel %vm4440_vm3, 1.0, %v4261_v28  ;;  %vm1917_vm3 = vcmask 908288  }
 0x1c2   :  { %v4384_v52 = vpop.permute.xlu2 %1832 }
 0x1ca   :  { %v4404_v3 = vpop.permute.xlu2 %1877 }
 0x1d2   :  { %v1829_v17 = vpop.permute.xlu2 %1828 }
 0x1d3   :  { %v1838_v43 = vsel %vm5195_vm12, %v1829_v17, %v4384_v52  ;;  %v1835_v53 = vsel %vm5195_vm12, %v4384_v52, %v1829_v17  ;;  %vm138_vm12 = vcmp.lt.s32.totalorder %v4398_v62, 14 }
 0x1d4   :  { %v1840_v24 = vmul.f32 %v1835_v53, %v68_v31 }
 0x1da   :  { %v4382_v51 = vpop.permute.xlu1 %1901  ;;  %v1892_v44 = vpop.permute.xlu2 %1891 }
 0x1db   :  { %v4386_v56 = vpop.permute.xlu0 %1844 }
 0x1e2   :  { %v4401_v0 = vpop.permute.xlu1 %1868 }
 0x1e3   :  { %v1842_v2 = vpop.permute.xlu0 %1841 }
 0x1e4   :  { %v1847_v35 = vsel %vm1846_vm15, %v4386_v56, %v1842_v2  ;;  %v1850_v32 = vsel %vm1846_vm15, %v1842_v2, %v4386_v56  ;;  %v122_v56 = vsel %vm4499_vm4, 1.0, %v4261_v28  ;;  %v108_v2 = vsel %vm106_vm2, 1.0, %v4261_v28  ;;  %vm132_vm4 = vmand %vm4446_vm6, %vm86_vm13 }
 0x1e5   :  { %v1851_v55 = vmul.f32 %v1850_v32, %v77_v33  ;;  %v1852_v45 = vmul.f32 %v1847_v35, %v78_v34  ;;  %vm5199_vm2 = vmmov %vm5198_vm0  ;;  %v133_v33 = vsel %vm131_vm9, 1.0, %v4261_v28  ;;  %v134_v22 = vsel %vm132_vm4, 1.0, %v4261_v28 }
 0x1e6   :  { %vm2163_vm6 = vcmask 1043456   ;;  %vm137_vm13 = vcmp.lt.s32.totalorder %v4396_v61, 14  ;;  %vm147_vm9 = vcmp.lt.s32.totalorder %v4396_v61, 15  ;;  %vm148_vm4 = vcmp.lt.s32.totalorder %v4398_v62, 15 }
 0x1e7   :  { %v1945_v11 = vmul.f32 2.0, %v1851_v55 }
 0x1ea   :  { %v4422_v12 = vpop.permute.xlu1 %1889 }
 0x1eb   :  { %v1866_v13 = vpop.permute.xlu0 %1865  ;;  %v1898_v20 = vsel %vm5199_vm2, %v1892_v44, %v4422_v12  ;;  %vm2304_vm2 = vcmask 793600  }
 0x1ec   :  { %v1871_v40 = vsel %vm1870_vm11, %v4401_v0, %v1866_v13  ;;  %v1874_v41 = vsel %vm1870_vm11, %v1866_v13, %v4401_v0  ;;  %v1946_v13 = vmul.f32 2.0, %v1852_v45  ;;  %v1900_v32 = vmul.f32 %v1898_v20, %v122_v56 }
 0x1ed   :  { %v1875_v63 = vmul.f32 %v1874_v41, %v101_v37  ;;  %v1876_v0 = vmul.f32 %v1871_v40, %v102_v38  ;;  %v1914_v38 = vpop.permute.xlu2 %1913 }
 0x1ee   :  { %v1948_v41 = vadd.f32 %v1946_v13, %v1840_v24 }
 0x1ef   :  { %v1931_v17 = vmul.f32 2.0, %v1875_v63  ;;  %v1932_v19 = vmul.f32 2.0, %v1876_v0 }
 0x1f1   :  { %v1934_v37 = vadd.f32 %v1932_v19, %v1840_v24 }
 0x1f2   :  { %v1904_v23 = vpop.permute.xlu1 %1903 }
 0x1f3   :  { %v1880_v25 = vpop.permute.xlu0 %1879  ;;  %v1906_v46 = vsel %vm1905_vm1, %v4382_v51, %v1904_v23  ;;  %v1910_v47 = vsel %vm1905_vm1, %v1904_v23, %v4382_v51  ;;  %v1839_v51 = vmul.f32 %v1838_v43, %v67_v29  ;;  %v1936_v50 = vadd.f32 %v1934_v37, %v1900_v32 }
 0x1f4   :  { %v1911_v5 = vmul.f32 %v1906_v46, %v127_v54  ;;  %v1912_v8 = vmul.f32 %v1910_v47, %v128_v39  ;;  %v1882_v9 = vsel %vm1881_vm10, %v4404_v3, %v1880_v25  ;;  %v1886_v10 = vsel %vm1881_vm10, %v1880_v25, %v4404_v3 }
 0x1f5   :  { %v1894_v3 = vsel %vm5198_vm0, %v4422_v12, %v1892_v44  ;;  %v1887_v23 = vmul.f32 %v1882_v9, %v107_v1  ;;  %v1888_v16 = vmul.f32 %v1886_v10, %v108_v2  ;;  %v1933_v30 = vadd.f32 %v1931_v17, %v1839_v51 }
 0x1f6   :  { %v1939_v25 = vmul.f32 2.0, %v1911_v5  ;;  %v1940_v29 = vmul.f32 2.0, %v1912_v8  ;;  %v1899_v18 = vmul.f32 %v1894_v3, %v121_v36  ;;  %v1947_v40 = vadd.f32 %v1945_v11, %v1839_v51  ;;  %v1988_v8 = vld.sshfl [vmem:[#allocation1] sm:$0xff pattern:$0x75316420] }
 0x1f7   :  { %v1925_v12 = vmul.f32 2.0, %v1887_v23  ;;  %v1926_v42 = vmul.f32 2.0, %v1888_v16  ;;  %v41_v9 = vcvt.s32.f32 %v4388_v57  ;;  %v42_v10 = vcvt.s32.f32 %v4394_v60  ;;  %v1989_v11 = vld.sshfl [vmem:[#allocation1 + $0x8] sm:$0xff pattern:$0x75316420] }
 0x1f8   :  { %v1941_v31 = vadd.f32 %v1939_v25, %v1899_v18  ;;  %v1942_v54 = vadd.f32 %v1940_v29, %v1900_v32  ;;  %v1935_v36 = vadd.f32 %v1933_v30, %v1899_v18  ;;  %v46_v17 = vcvt.s32.f32 %v4398_v62 }
 0x1f9   :  { %vm2278_vm0 = vcmask 785408  }
 0x1fa   :  { %v1857_v4 = vpop.permute.xlu1 %1856 }
 0x1fb   :  { %v1854_v52 = vpop.permute.xlu0 %1853 }
 0x1fc   :  { %v1859_v21 = vsel %vm1858_vm7, %v1857_v4, %v1854_v52  ;;  %v1862_v26 = vsel %vm1858_vm7, %v1854_v52, %v1857_v4 }
 0x1fd   :  { %v1863_v34 = vmul.f32 %v1862_v26, %v89_v14  ;;  %v1864_v35 = vmul.f32 %v1859_v21, %v90_v15  ;;  %v45_v15 = vcvt.s32.f32 %v4396_v61 }
 0x1ff   :  { %v1927_v55 = vadd.f32 %v1925_v12, %v1863_v34  ;;  %v1928_v45 = vadd.f32 %v1926_v42, %v1864_v35  ;;  %v1949_v53 = vadd.f32 %v1947_v40, %v1863_v34  ;;  %v1950_v56 = vadd.f32 %v1948_v41, %v1864_v35 }
 0x200   :  { %v43_v35 = vadd.f32 0.5, %v41_v9  ;;  %v4592_v32 = vadd.f32 0.5, %v45_v15 }
 0x202   :  { %v2020_v37 = vadd.f32 -2.0, %v43_v35  ;;  %v2034_v41 = vadd.f32 -1.0, %v43_v35 }
 0x203   :  { %v1916_v43 = vpop.permute.xlu0 %1915 }
 0x204   :  { %v1918_v39 = vsel %vm1917_vm3, %v1914_v38, %v1916_v43  ;;  %v1922_v44 = vsel %vm1917_vm3, %v1916_v43, %v1914_v38 }
 0x205   :  { %v1923_v46 = vmul.f32 %v1918_v39, %v133_v33  ;;  %v1924_v47 = vmul.f32 %v1922_v44, %v134_v22  ;;  %v44_v22 = vadd.f32 0.5, %v42_v10 }
 0x207   :  { %v1929_v63 = vadd.f32 %v1927_v55, %v1923_v46  ;;  %v1930_v0 = vadd.f32 %v1928_v45, %v1924_v47  ;;  %v1943_v51 = vadd.f32 %v1941_v31, %v1923_v46  ;;  %v1944_v1 = vadd.f32 %v1942_v54, %v1924_v47 }
 0x208   :  { %v2035_v12 = vadd.f32 -1.0, %v44_v22  ;;  %v2062_v31 = vadd.f32 1.0, %v43_v35  ;;  %v2063_v54 = vadd.f32 1.0, %v44_v22  ;;  %v4598_v55 = vadd.f32 2.0, %v43_v35 }
 0x209   :  { %v1937_v2 = vsub.f32 %v1929_v63, %v1935_v36  ;;  %v1938_v4 = vsub.f32 %v1930_v0, %v1936_v50  ;;  %v1951_v52 = vsub.f32 %v1943_v51, %v1949_v53  ;;  %v1952_v5 = vsub.f32 %v1944_v1, %v1950_v56 }
 0x20a   :  { %v4600_v45 = vadd.f32 2.0, %v44_v22  ;;  %v4603_v36 = vadd.f32 -2.0, %v4592_v32  ;;  %v4609_v63 = vadd.f32 -1.0, %v4592_v32 }
 0x20b   :  { %v1966_v13 = vperm.slane %v1951_v52, 3  ;;  %v1967_v14 = vperm.slane %v1952_v5, 3  ;;  %v1985_v19 = vperm.slane %v1937_v2, 3  ;;  %v1986_v21 = vperm.slane %v1938_v4, 3 }
 0x20c   :  { %v1964_v26 = vmul.f32 %v4378_v48, %v1951_v52  ;;  %v1965_v3 = vmul.f32 %v4380_v49, %v1952_v5  ;;  %v1983_v57 = vmul.f32 %v4408_v6, %v1937_v2  ;;  %v1984_v60 = vmul.f32 %v4410_v7, %v1938_v4 }
 0x20d   :  { %v1974_v20 = vmul.f32 %v4390_v58, %v1966_v13  ;;  %v1975_v23 = vmul.f32 %v4392_v59, %v1967_v14  ;;  %v1992_v16 = vmul.f32 %v1988_v8, %v1985_v19  ;;  %v1993_v24 = vmul.f32 %v1989_v11, %v1986_v21 }
 0x20e   :  { %v4594_v49 = vadd.f32 0.5, %v46_v17  ;;  %v2021_v7 = vadd.f32 -2.0, %v44_v22  ;;  %v4615_v2 = vadd.f32 1.0, %v4592_v32 }
 0x20f   :  { %v1976_v25 = vsub.f32 %v1964_v26, %v1974_v20  ;;  %v1977_v29 = vsub.f32 %v1965_v3, %v1975_v23  ;;  %v1994_v33 = vsub.f32 %v1983_v57, %v1992_v16  ;;  %v1995_v34 = vsub.f32 %v1984_v60, %v1993_v24 }
 0x210   :  { %v4606_v50 = vadd.f32 -2.0, %v4594_v49  ;;  %v4612_v0 = vadd.f32 -1.0, %v4594_v49  ;;  %v4618_v4 = vadd.f32 1.0, %v4594_v49 }
 0x211   :  { %v1996_v18 = vmul.f32 0.2, %v1976_v25  ;;  %v1997_v48 = vmul.f32 0.2, %v1977_v29  ;;  %v2008_v58 = vmul.f32 0.2, %v1994_v33 }
 0x212   :  { %v2009_v59 = vmul.f32 0.2, %v1995_v34 }
 0x213   :  { %v3972_v30 = vclamps-f32 %v1996_v18, 1.05  ;;  %v3973_v6 = vclamps-f32 %v1997_v48, 1.05  ;;  %v3974_v38 = vclamps-f32 %v2008_v58, 1.05 }
 0x214   :  { %v3975_v40 = vclamps-f32 %v2009_v59, 1.05 }
 0x215   :  { %v2002_v42 = vadd.f32 %v3972_v30, %v43_v35  ;;  %v2003_v43 = vadd.f32 %v3973_v6, %v44_v22  ;;  %v2014_v39 = vadd.f32 %v3974_v38, %v4592_v32 }
 0x216   :  { %v2015_v44 = vadd.f32 %v3975_v40, %v4594_v49 }
 0x217   :  { %v2004_v46 = vmax.f32 %v2002_v42, 0.95  ;;  %v2005_v47 = vmax.f32 %v2003_v43, 0.95  ;;  %v2016_v53 = vmax.f32 %v2014_v39, 0.95 }
 0x218   :  { %v2017_v56 = vmax.f32 %v2015_v44, 0.95  ;;  %v2146_v39 = vadd.f32 2.0, %v4592_v32  ;;  %v2147_v44 = vadd.f32 2.0, %v4594_v49 }
 0x219   :  { %v2006_v51 = vmin.f32 %v2004_v46, 15.05  ;;  %v2007_v1 = vmin.f32 %v2005_v47, 15.05  ;;  %v4620_v52 = vmin.f32 %v2016_v53, 15.05 }
 0x21a   :  { %v4622_v5 = vmin.f32 %v2017_v56, 15.05 }
 0x21b   :  { %v2022_v8 = vsub.f32 %v2020_v37, %v2006_v51  ;;  %v2023_v9 = vsub.f32 %v2021_v7, %v2007_v1  ;;  %v2036_v10 = vsub.f32 %v2034_v41, %v2006_v51  ;;  %v2037_v11 = vsub.f32 %v2035_v12, %v2007_v1 }
 0x21c   :  { %v2050_v13 = vsub.f32 %v43_v35, %v2006_v51  ;;  %v2051_v14 = vsub.f32 %v44_v22, %v2007_v1  ;;  %v2064_v15 = vsub.f32 %v2062_v31, %v2006_v51  ;;  %v2065_v17 = vsub.f32 %v2063_v54, %v2007_v1 }
 0x21d   :  { %v2024_v19 = vand.u32 2147483647, %v2022_v8  ;;  %v2025_v21 = vand.u32 2147483647, %v2023_v9  ;;  %v2038_v26 = vand.u32 2147483647, %v2036_v10  ;;  %v2078_v3 = vsub.f32 %v4598_v55, %v2006_v51 }
 0x21e   :  { %v2039_v20 = vand.u32 2147483647, %v2037_v11  ;;  %v2052_v23 = vand.u32 2147483647, %v2050_v13  ;;  %v2053_v57 = vand.u32 2147483647, %v2051_v14  ;;  %v2079_v60 = vsub.f32 %v4600_v45, %v2007_v1 }
 0x21f   :  { %v2026_v16 = vsub.f32 0.5, %v2024_v19  ;;  %v2027_v24 = vsub.f32 0.5, %v2025_v21  ;;  %v2040_v25 = vsub.f32 0.5, %v2038_v26  ;;  %v2066_v29 = vand.u32 2147483647, %v2064_v15 }
 0x220   :  { %v2041_v33 = vsub.f32 0.5, %v2039_v20  ;;  %v2054_v34 = vsub.f32 0.5, %v2052_v23  ;;  %v2055_v35 = vsub.f32 0.5, %v2053_v57  ;;  %v2067_v22 = vand.u32 2147483647, %v2065_v17 }
 0x221   :  { %v2028_v18 = vadd.f32 0.95, %v2026_v16  ;;  %v2029_v48 = vadd.f32 0.95, %v2027_v24  ;;  %v2042_v58 = vadd.f32 0.95, %v2040_v25  ;;  %v2092_v59 = vsub.f32 %v4603_v36, %v4620_v52 }
 0x222   :  { %v2043_v30 = vadd.f32 0.95, %v2041_v33  ;;  %v2056_v6 = vadd.f32 0.95, %v2054_v34  ;;  %v2057_v37 = vadd.f32 0.95, %v2055_v35  ;;  %v2093_v7 = vsub.f32 %v4606_v50, %v4622_v5 }
 0x223   :  { %v2030_v38 = vmax.f32 %v2028_v18, 0.0  ;;  %v2031_v40 = vmax.f32 %v2029_v48, 0.0  ;;  %v2044_v41 = vmax.f32 %v2042_v58, 0.0  ;;  %v2068_v12 = vsub.f32 0.5, %v2066_v29 }
 0x224   :  { %v2045_v42 = vmax.f32 %v2043_v30, 0.0  ;;  %v2058_v43 = vmax.f32 %v2056_v6, 0.0  ;;  %v2059_v31 = vmax.f32 %v2057_v37, 0.0  ;;  %v2069_v54 = vsub.f32 0.5, %v2067_v22 }
 0x225   :  { %v4632_v55 = vmin.f32 %v2030_v38, 1.0  ;;  %v2070_v45 = vadd.f32 0.95, %v2068_v12  ;;  %v4634_v46 = vmin.f32 %v2031_v40, 1.0  ;;  %v4636_v47 = vmin.f32 %v2044_v41, 1.0 }
 0x226   :  { %v4638_v36 = vmin.f32 %v2045_v42, 1.0  ;;  %v2071_v50 = vadd.f32 0.95, %v2069_v54  ;;  %v4640_v53 = vmin.f32 %v2058_v43, 1.0  ;;  %v2080_v56 = vand.u32 2147483647, %v2078_v3 }
 0x227   :  { %v2081_v51 = vand.u32 2147483647, %v2079_v60  ;;  %v2106_v1 = vsub.f32 %v4609_v63, %v4620_v52  ;;  %v4644_v8 = vmin.f32 %v2059_v31, 1.0  ;;  %v2094_v9 = vand.u32 2147483647, %v2092_v59 }
 0x228   :  { %v2095_v10 = vand.u32 2147483647, %v2093_v7  ;;  %v2107_v11 = vsub.f32 %v4612_v0, %v4622_v5  ;;  %v2072_v13 = vmax.f32 %v2070_v45, 0.0  ;;  %v2082_v14 = vsub.f32 0.5, %v2080_v56 }
 0x229   :  { %v2083_v15 = vsub.f32 0.5, %v2081_v51  ;;  %v2108_v17 = vand.u32 2147483647, %v2106_v1  ;;  %v2073_v19 = vmax.f32 %v2071_v50, 0.0  ;;  %v2096_v21 = vsub.f32 0.5, %v2094_v9 }
 0x22a   :  { %v2097_v26 = vsub.f32 0.5, %v2095_v10  ;;  %v2109_v3 = vand.u32 2147483647, %v2107_v11  ;;  %v2084_v20 = vadd.f32 0.95, %v2082_v14  ;;  %v2120_v63 = vsub.f32 %v4592_v32, %v4620_v52 }
 0x22b   :  { %v2085_v23 = vadd.f32 0.95, %v2083_v15  ;;  %v2110_v57 = vsub.f32 0.5, %v2108_v17  ;;  %v2098_v60 = vadd.f32 0.95, %v2096_v21  ;;  %v2121_v0 = vsub.f32 %v4594_v49, %v4622_v5 }
 0x22c   :  { %v2099_v16 = vadd.f32 0.95, %v2097_v26  ;;  %v2111_v24 = vsub.f32 0.5, %v2109_v3  ;;  %v4652_v25 = vmin.f32 %v2072_v13, 1.0  ;;  %v2122_v34 = vand.u32 2147483647, %v2120_v63 }
 0x22d   :  { %v2087_v29 = vmax.f32 %v2085_v23, 0.0  ;;  %v2112_v33 = vadd.f32 0.95, %v2110_v57  ;;  %v2100_v35 = vmax.f32 %v2098_v60, 0.0  ;;  %v2123_v48 = vand.u32 2147483647, %v2121_v0 }
 0x22e   :  { %v2101_v22 = vmax.f32 %v2099_v16, 0.0  ;;  %v2113_v18 = vadd.f32 0.95, %v2111_v24  ;;  %v4654_v58 = vmin.f32 %v2073_v19, 1.0  ;;  %v2086_v59 = vmax.f32 %v2084_v20, 0.0 }
 0x22f   :  { %v4656_v30 = vmin.f32 %v2087_v29, 1.0  ;;  %v2124_v32 = vsub.f32 0.5, %v2122_v34  ;;  %v2114_v37 = vmax.f32 %v2112_v33, 0.0  ;;  %v2125_v38 = vsub.f32 0.5, %v2123_v48 }
 0x230   :  { %v2103_v6 = vmin.f32 %v2101_v22, 1.0  ;;  %v2115_v7 = vmax.f32 %v2113_v18, 0.0  ;;  %v2102_v49 = vmin.f32 %v2100_v35, 1.0  ;;  %v2134_v41 = vsub.f32 %v4615_v2, %v4620_v52 }
 0x231   :  { %v2126_v40 = vadd.f32 0.95, %v2124_v32  ;;  %v2135_v12 = vsub.f32 %v4618_v4, %v4622_v5  ;;  %v2127_v43 = vadd.f32 0.95, %v2125_v38  ;;  %v2148_v31 = vsub.f32 %v2146_v39, %v4620_v52 }
 0x232   :  { %v2117_v42 = vmin.f32 %v2115_v7, 1.0  ;;  %v2149_v54 = vsub.f32 %v2147_v44, %v4622_v5  ;;  %v2136_v50 = vand.u32 2147483647, %v2134_v41  ;;  %v2162_v51 = vrot.slane %v4634_v46, 4 }
 0x233   :  { %v2128_v45 = vmax.f32 %v2126_v40, 0.0  ;;  %v2137_v56 = vand.u32 2147483647, %v2135_v12  ;;  %v2129_v1 = vmax.f32 %v2127_v43, 0.0  ;;  %v2150_v9 = vand.u32 2147483647, %v2148_v31 }
 0x234   :  { %v2151_v10 = vand.u32 2147483647, %v2149_v54  ;;  %v2169_v11 = vrot.slane %v2103_v6, 4  ;;  %v2138_v2 = vsub.f32 0.5, %v2136_v50  ;;  %v2164_v4 = vsel %vm2163_vm6, %v4632_v55, %v2162_v51 }
 0x235   :  { %v2130_v13 = vmin.f32 %v2128_v45, 1.0  ;;  %v2139_v14 = vsub.f32 0.5, %v2137_v56  ;;  %v2131_v15 = vmin.f32 %v2129_v1, 1.0  ;;  %v2152_v17 = vsub.f32 0.5, %v2150_v9 }
 0x236   :  { %v2153_v52 = vsub.f32 0.5, %v2151_v10  ;;  %v4668_v5 = vmul.f32 %v2164_v4, %v4309_v27  ;;  %v2140_v39 = vadd.f32 0.95, %v2138_v2  ;;  %v2170_v46 = vsel %vm2163_vm6, %v2102_v49, %v2169_v11 }
 0x237   :  { %v2141_v44 = vadd.f32 0.95, %v2139_v14  ;;  %v2218_v19 = vrot.slane %v2117_v42, 4  ;;  %v2154_v21 = vadd.f32 0.95, %v2152_v17  ;;  %v2266_v20 = vrot.slane %v2131_v15, 4 }
 0x238   :  { %v2155_v26 = vadd.f32 0.95, %v2153_v52  ;;  %v4672_v3 = vmul.f32 %v2170_v46, %v4668_v5  ;;  %v2116_v23 = vmin.f32 %v2114_v37, 1.0  ;;  %v2142_v57 = vmax.f32 %v2140_v39, 0.0 }
 0x239   :  { %v2143_v55 = vmax.f32 %v2141_v44, 0.0  ;;  %v2390_v63 = vrot.slane %v4638_v36, 4  ;;  %v2088_v60 = vmin.f32 %v2086_v59, 1.0  ;;  %v2156_v16 = vmax.f32 %v2154_v21, 0.0 }
 0x23a   :  { %v2157_v24 = vmax.f32 %v2155_v26, 0.0  ;;  %2174 = vst [vmem:[#allocation1] ss:$2 sm:$0xff] %v4672_v3  ;;  %v2267_v0 = vsel %vm2163_vm6, %v2130_v13, %v2266_v20  ;;  %v2219_v33 = vsel %vm2163_vm6, %v2116_v23, %v2218_v19  ;;  %v2144_v22 = vmin.f32 %v2142_v57, 1.0 }
 0x23b   :  { %v2145_v29 = vmin.f32 %v2143_v55, 1.0  ;;  %v4679_v34 = vmul.f32 %v2267_v0, %v4668_v5  ;;  %v2391_v35 = vsel %vm2163_vm6, %v4636_v47, %v2390_v63  ;;  %v2586_v48 = vrot.slane %v4644_v8, 4 }
 0x23c   :  { %v2159_v18 = vmin.f32 %v2157_v24, 1.0  ;;  %v2393_v36 = vmul.f32 %v2391_v35, %v4309_v27  ;;  %v2158_v59 = vmin.f32 %v2156_v16, 1.0  ;;  %v2771_v6 = vrot.slane %v4654_v58, 4 }
 0x23d   :  { %v2292_v32 = vrot.slane %v2145_v29, 4  ;;  %v2968_v37 = vrot.slane %v4656_v30, 4  ;;  %v2587_v41 = vsel %vm2163_vm6, %v4640_v53, %v2586_v48 }
 0x23e   :  { %v2341_v7 = vrot.slane %v2159_v18, 4  ;;  %v4687_v38 = vmul.f32 %v2393_v36, %v2170_v46  ;;  %v4689_v49 = vmul.f32 %v2393_v36, %v2219_v33  ;;  %v4691_v40 = vmul.f32 %v2393_v36, %v2267_v0 }
 0x23f   :  { %v2293_v47 = vsel %vm2163_vm6, %v2144_v22, %v2292_v32  ;;  %v2772_v8 = vsel %vm2163_vm6, %v4652_v25, %v2771_v6  ;;  %v2969_v12 = vsel %vm2163_vm6, %v2088_v60, %v2968_v37  ;;  %v2589_v43 = vmul.f32 %v2587_v41, %v4309_v27 }
 0x240   :  { %v4700_v58 = vmul.f32 %v2293_v47, %v4668_v5  ;;  %v2342_v30 = vsel %vm2163_vm6, %v2158_v59, %v2341_v7  ;;  %v4703_v42 = vmul.f32 %v2393_v36, %v2293_v47  ;;  %v2774_v25 = vmul.f32 %v2772_v8, %v4309_v27 }
 0x241   :  { %v2175_v31 = vld.sshfl [vmem:[#allocation1] sm:$0xff pattern:$0x75316420]  ;;  %v2176_v54 = vld.sshfl [vmem:[#allocation1 + $0x8] sm:$0xff pattern:$0x75316420]  ;;  %v4707_v45 = vmul.f32 %v2342_v30, %v4668_v5  ;;  %v4709_v53 = vmul.f32 %v2393_v36, %v2342_v30  ;;  %v2971_v50 = vmul.f32 %v2969_v12, %v4309_v27  ;;  %v4714_v56 = vmul.f32 %v2589_v43, %v2170_v46 }
 0x242   :  { %2185 = vst [vmem:[#allocation1] ss:$2 sm:$0xff] %v4672_v3  ;;  %v4716_v51 = vmul.f32 %v2589_v43, %v2219_v33  ;;  %v4718_v1 = vmul.f32 %v2589_v43, %v2267_v0  ;;  %v4720_v9 = vmul.f32 %v2589_v43, %v2293_v47  ;;  %v4722_v10 = vmul.f32 %v2589_v43, %v2342_v30 }
 0x243   :  { %v4724_v11 = vmul.f32 %v2774_v25, %v2170_v46  ;;  %v4726_v13 = vmul.f32 %v2774_v25, %v2219_v33  ;;  %v4728_v2 = vmul.f32 %v2774_v25, %v2267_v0  ;;  %2179 = vrot.lane.b32.xlu2 %v2176_v54, %s4262_s28  ;;  %v4730_v27 = vmul.f32 %v2774_v25, %v2293_v47 }
 0x244   :  { %v4732_v14 = vmul.f32 %v2774_v25, %v2342_v30  ;;  %v4734_v4 = vmul.f32 %v2971_v50, %v2170_v46  ;;  %v4736_v15 = vmul.f32 %v2971_v50, %v2219_v33  ;;  %2177 = vrot.lane.b32.xlu1 %v2175_v31, %s4262_s28  ;;  %v4738_v17 = vmul.f32 %v2971_v50, %v2267_v0 }
 0x245   :  { %v4740_v52 = vmul.f32 %v2971_v50, %v2293_v47  ;;  %v4742_v39 = vmul.f32 %v2971_v50, %v2342_v30  ;;  %v2221_v46 = vmul.f32 %v2219_v33, %v4668_v5  ;;  %v4770_v7 = vsel %vm137_vm13, 1.0, %v4261_v28 }
 0x246   :  { %v4774_v8 = vsub.f32 1.0, %v4770_v7  ;;  %vm2321_vm13 = vcmask 662528  }
 0x249   :  { %v2186_v44 = vld.sshfl [vmem:[#allocation1] sm:$0xff pattern:$0x75316420] }
 0x24a   :  { %2191 = vst [vmem:[#allocation1] ss:$2 sm:$0xff] %v4672_v3  ;;  %2187 = vrot.lane.b32.xlu0 %v2186_v44, %s4262_s28 }
 0x251   :  { %v2192_v19 = vld.sshfl [vmem:[#allocation1] sm:$0xff pattern:$0x75316420]  ;;  %v2193_v21 = vld.sshfl [vmem:[#allocation1 + $0x8] sm:$0xff pattern:$0x75316420] }
 0x252   :  { %2202 = vst [vmem:[#allocation1] ss:$2 sm:$0xff] %v4672_v3  ;;  %2196 = vrot.lane.b32.xlu2 %v2193_v21, %s4263_s29  ;;  %2194 = vrot.lane.b32.xlu1 %v2192_v19, %s4263_s29 }
 0x259   :  { %v2203_v26 = vld.sshfl [vmem:[#allocation1] sm:$0xff pattern:$0x75316420] }
 0x25a   :  { %2223 = vst [vmem:[#allocation1] ss:$2 sm:$0xff] %v2221_v46  ;;  %2204 = vrot.lane.b32.xlu0 %v2203_v26, %s4263_s29 }
 0x261   :  { %v2224_v20 = vld.sshfl [vmem:[#allocation1] sm:$0xff pattern:$0x75316420]  ;;  %v2225_v23 = vld.sshfl [vmem:[#allocation1 + $0x8] sm:$0xff pattern:$0x75316420] }
 0x262   :  { %2234 = vst [vmem:[#allocation1] ss:$2 sm:$0xff] %v2221_v46  ;;  %2228 = vrot.lane.b32.xlu2 %v2225_v23, %s4264_s30  ;;  %2226 = vrot.lane.b32.xlu1 %v2224_v20, %s4264_s30 }
 0x269   :  { %v2235_v57 = vld.sshfl [vmem:[#allocation1] sm:$0xff pattern:$0x75316420] }
 0x26a   :  { %2240 = vst [vmem:[#allocation1] ss:$2 sm:$0xff] %v2221_v46  ;;  %2236 = vrot.lane.b32.xlu0 %v2235_v57, %s4264_s30 }
 0x271   :  { %v2241_v3 = vld.sshfl [vmem:[#allocation1] sm:$0xff pattern:$0x75316420]  ;;  %v2242_v55 = vld.sshfl [vmem:[#allocation1 + $0x8] sm:$0xff pattern:$0x75316420] }
 0x272   :  { %2250 = vst [vmem:[#allocation1] ss:$2 sm:$0xff] %v2221_v46  ;;  %2245 = vrot.lane.b32.xlu2 %v2242_v55, %s4259_s26  ;;  %2243 = vrot.lane.b32.xlu1 %v2241_v3, %s4259_s26 }
 0x279   :  { %v2251_v5 = vld.sshfl [vmem:[#allocation1] sm:$0xff pattern:$0x75316420] }
 0x27a   :  { %2271 = vst [vmem:[#allocation1] ss:$2 sm:$0xff] %v4679_v34  ;;  %2252 = vrot.lane.b32.xlu0 %v2251_v5, %s4259_s26 }
 0x281   :  { %v2272_v63 = vld.sshfl [vmem:[#allocation1] sm:$0xff pattern:$0x75316420]  ;;  %v2273_v60 = vld.sshfl [vmem:[#allocation1 + $0x8] sm:$0xff pattern:$0x75316420] }
 0x282   :  { %2282 = vst [vmem:[#allocation1] ss:$2 sm:$0xff] %v4679_v34  ;;  %2276 = vrot.lane.b32.xlu2 %v2273_v60, %s4265_s3  ;;  %2274 = vrot.lane.b32.xlu1 %v2272_v63, %s4265_s3 }
 0x289   :  { %v2283_v16 = vld.sshfl [vmem:[#allocation1] sm:$0xff pattern:$0x75316420] }
 0x28a   :  { %2297 = vst [vmem:[#allocation1] ss:$2 sm:$0xff] %v4700_v58  ;;  %2284 = vrot.lane.b32.xlu0 %v2283_v16, %s4265_s3  ;;  %v4797_v16 = vsel %vm147_vm9, 1.0, %v4261_v28  ;;  %vm165_vm9 = vcmp.ge.s32.totalorder %v4396_v61, 2 }
 0x291   :  { %v2298_v24 = vld.sshfl [vmem:[#allocation1] sm:$0xff pattern:$0x75316420]  ;;  %v2299_v0 = vld.sshfl [vmem:[#allocation1 + $0x8] sm:$0xff pattern:$0x75316420] }
 0x292   :  { %2308 = vst [vmem:[#allocation1] ss:$2 sm:$0xff] %v4700_v58  ;;  %2302 = vrot.lane.b32.xlu2 %v2299_v0, %s4266_s4  ;;  %2300 = vrot.lane.b32.xlu1 %v2298_v24, %s4266_s4 }
 0x299   :  { %v2309_v29 = vld.sshfl [vmem:[#allocation1] sm:$0xff pattern:$0x75316420] }
 0x29a   :  { %2314 = vst [vmem:[#allocation1] ss:$2 sm:$0xff] %v4700_v58  ;;  %2310 = vrot.lane.b32.xlu0 %v2309_v29, %s4266_s4  ;;  %v4803_v29 = vsub.f32 1.0, %v4797_v16 }
 0x29d   :  { %v2180_v36 = vpop.permute.xlu2 %2179 }
 0x2a1   :  { %v2315_v33 = vld.sshfl [vmem:[#allocation1] sm:$0xff pattern:$0x75316420]  ;;  %v2316_v34 = vld.sshfl [vmem:[#allocation1 + $0x8] sm:$0xff pattern:$0x75316420] }
 0x2a2   :  { %2325 = vst [vmem:[#allocation1] ss:$2 sm:$0xff] %v4700_v58  ;;  %2319 = vrot.lane.b32.xlu2 %v2316_v34, %s4267_s5  ;;  %2317 = vrot.lane.b32.xlu1 %v2315_v33, %s4267_s5 }
 0x2a9   :  { %v2326_v35 = vld.sshfl [vmem:[#allocation1] sm:$0xff pattern:$0x75316420] }
 0x2aa   :  { %2346 = vst [vmem:[#allocation1] ss:$2 sm:$0xff] %v4707_v45  ;;  %2327 = vrot.lane.b32.xlu0 %v2326_v35, %s4267_s5 }
 0x2ac   :  { %v2197_v12 = vpop.permute.xlu2 %2196 }
 0x2b1   :  { %v2347_v22 = vld.sshfl [vmem:[#allocation1] sm:$0xff pattern:$0x75316420]  ;;  %v2348_v18 = vld.sshfl [vmem:[#allocation1 + $0x8] sm:$0xff pattern:$0x75316420] }
 0x2b2   :  { %2357 = vst [vmem:[#allocation1] ss:$2 sm:$0xff] %v4707_v45  ;;  %2351 = vrot.lane.b32.xlu2 %v2348_v18, %s4268_s6  ;;  %2349 = vrot.lane.b32.xlu1 %v2347_v22, %s4268_s6 }
 0x2b6   :  { %v2178_v48 = vpop.permute.xlu1 %2177 }
 0x2b7   :  { %v2182_v59 = vsel %vm2181_vm14, %v2178_v48, %v2180_v36  ;;  %v4810_v48 = vsel %vm148_vm4, 1.0, %v4261_v28  ;;  %vm2370_vm4 = vcmask 670720  }
 0x2b8   :  { %v2208_v43 = vmul.f32 %v2182_v59, %v4770_v7  ;;  %v4815_v59 = vsub.f32 1.0, %v4810_v48 }
 0x2b9   :  { %v2358_v32 = vld.sshfl [vmem:[#allocation1] sm:$0xff pattern:$0x75316420] }
 0x2ba   :  { %2363 = vst [vmem:[#allocation1] ss:$2 sm:$0xff] %v4707_v45  ;;  %2359 = vrot.lane.b32.xlu0 %v2358_v32, %s4268_s6 }
 0x2bc   :  { %v2188_v6 = vpop.permute.xlu0 %2187  ;;  %v2229_v57 = vpop.permute.xlu2 %2228 }
 0x2bd   :  { %v2190_v37 = vsel %vm2181_vm14, %v2180_v36, %v2188_v6  ;;  %vm155_vm14 = vcmp.ge.s32.totalorder %v4396_v61, 1 }
 0x2c1   :  { %v2364_v47 = vld.sshfl [vmem:[#allocation1] sm:$0xff pattern:$0x75316420]  ;;  %v2365_v41 = vld.sshfl [vmem:[#allocation1 + $0x8] sm:$0xff pattern:$0x75316420] }
 0x2c2   :  { %2374 = vst [vmem:[#allocation1] ss:$2 sm:$0xff] %v4707_v45  ;;  %2368 = vrot.lane.b32.xlu2 %v2365_v41, %s4269_s7  ;;  %2366 = vrot.lane.b32.xlu1 %v2364_v47, %s4269_s7  ;;  %v4781_v45 = vsel %vm138_vm12, 1.0, %v4261_v28  ;;  %vm156_vm12 = vcmp.ge.s32.totalorder %v4398_v62, 1 }
 0x2c3   :  { %v4785_v50 = vsub.f32 1.0, %v4781_v45  ;;  %v2209_v21 = vmul.f32 %v2190_v37, %v4781_v45 }
 0x2c4   :  { %v2195_v58 = vpop.permute.xlu1 %2194 }
 0x2c5   :  { %v2199_v30 = vsel %vm2198_vm5, %v2195_v58, %v2197_v12 }
 0x2c6   :  { %v2210_v31 = vmul.f32 %v2199_v30, %v4774_v8 }
 0x2c8   :  { %v2212_v54 = vadd.f32 %v2210_v31, %v2208_v43 }
 0x2c9   :  { %v2375_v25 = vld.sshfl [vmem:[#allocation1] sm:$0xff pattern:$0x75316420] }
 0x2ca   :  { %2396 = vst [vmem:[#allocation1] ss:$2 sm:$0xff] %v4687_v38  ;;  %2376 = vrot.lane.b32.xlu0 %v2375_v25, %s4269_s7 }
 0x2cc   :  { %v2205_v44 = vpop.permute.xlu0 %2204  ;;  %v2246_v33 = vpop.permute.xlu2 %2245 }
 0x2cd   :  { %v2207_v19 = vsel %vm2198_vm5, %v2197_v12, %v2205_v44 }
 0x2ce   :  { %v2211_v46 = vmul.f32 %v2207_v19, %v4785_v50 }
 0x2d0   :  { %v2213_v26 = vadd.f32 %v2211_v46, %v2209_v21 }
 0x2d1   :  { %v2397_v20 = vld.sshfl [vmem:[#allocation1] sm:$0xff pattern:$0x75316420]  ;;  %v2398_v23 = vld.sshfl [vmem:[#allocation1 + $0x8] sm:$0xff pattern:$0x75316420] }
 0x2d2   :  { %2406 = vst [vmem:[#allocation1] ss:$2 sm:$0xff] %v4687_v38  ;;  %2401 = vrot.lane.b32.xlu2 %v2398_v23, %s4263_s29  ;;  %2399 = vrot.lane.b32.xlu1 %v2397_v20, %s4263_s29 }
 0x2d4   :  { %v2227_v3 = vpop.permute.xlu1 %2226 }
 0x2d5   :  { %v2231_v55 = vsel %vm2230_vm8, %v2227_v3, %v2229_v57 }
 0x2d6   :  { %v2256_v22 = vmul.f32 %v2231_v55, %v4797_v16 }
 0x2d9   :  { %v2407_v5 = vld.sshfl [vmem:[#allocation1] sm:$0xff pattern:$0x75316420] }
 0x2da   :  { %2412 = vst [vmem:[#allocation1] ss:$2 sm:$0xff] %v4687_v38  ;;  %2408 = vrot.lane.b32.xlu0 %v2407_v5, %s4263_s29 }
 0x2dc   :  { %v2237_v63 = vpop.permute.xlu0 %2236  ;;  %v2277_v31 = vpop.permute.xlu2 %2276 }
 0x2dd   :  { %v2239_v60 = vsel %vm2230_vm8, %v2229_v57, %v2237_v63  ;;  %vm2353_vm8 = vcmask 801792  }
 0x2de   :  { %v2257_v47 = vmul.f32 %v2239_v60, %v4810_v48 }
 0x2e1   :  { %v2413_v24 = vld.sshfl [vmem:[#allocation1] sm:$0xff pattern:$0x75316420]  ;;  %v2414_v0 = vld.sshfl [vmem:[#allocation1 + $0x8] sm:$0xff pattern:$0x75316420] }
 0x2e2   :  { %2423 = vst [vmem:[#allocation1] ss:$2 sm:$0xff] %v4687_v38  ;;  %2417 = vrot.lane.b32.xlu2 %v2414_v0, %s4270_s8  ;;  %2415 = vrot.lane.b32.xlu1 %v2413_v24, %s4270_s8  ;;  %v4834_v24 = vsel %vm155_vm14, 1.0, %v4261_v28  ;;  %vm2419_vm14 = vcmask 1031168  }
 0x2e4   :  { %v2244_v34 = vpop.permute.xlu1 %2243 }
 0x2e5   :  { %v2247_v35 = vsel %vm1917_vm3, %v2244_v34, %v2246_v33 }
 0x2e6   :  { %v2258_v18 = vmul.f32 %v2247_v35, %v4803_v29 }
 0x2e8   :  { %v2260_v36 = vadd.f32 %v2258_v18, %v2256_v22 }
 0x2e9   :  { %v2424_v38 = vld.sshfl [vmem:[#allocation1] sm:$0xff pattern:$0x75316420] }
 0x2ea   :  { %2439 = vst [vmem:[#allocation1] ss:$2 sm:$0xff] %v4689_v49  ;;  %2425 = vrot.lane.b32.xlu0 %v2424_v38, %s4270_s8  ;;  %v2262_v32 = vadd.f32 %v2260_v36, %v2212_v54 }
 0x2ec   :  { %v2253_v6 = vpop.permute.xlu0 %2252 }
 0x2ed   :  { %v2255_v37 = vsel %vm1917_vm3, %v2246_v33, %v2253_v6  ;;  %v4840_v33 = vsub.f32 1.0, %v4834_v24 }
 0x2ee   :  { %v2259_v41 = vmul.f32 %v2255_v37, %v4815_v59 }
 0x2f0   :  { %v2261_v12 = vadd.f32 %v2259_v41, %v2257_v47 }
 0x2f1   :  { %v2441_v58 = vld.sshfl [vmem:[#allocation1 + $0x8] sm:$0xff pattern:$0x75316420]  ;;  %v2440_v30 = vld.sshfl [vmem:[#allocation1] sm:$0xff pattern:$0x75316420] }
 0x2f2   :  { %2444 = vrot.lane.b32.xlu2 %v2441_v58, %s4259_s26  ;;  %2442 = vrot.lane.b32.xlu1 %v2440_v30, %s4259_s26  ;;  %2449 = vst [vmem:[#allocation1] ss:$2 sm:$0xff] %v4689_v49  ;;  %v2263_v43 = vadd.f32 %v2261_v12, %v2213_v26  ;;  %v2303_v26 = vpop.permute.xlu2 %2302 }
 0x2f4   :  { %v2275_v54 = vpop.permute.xlu1 %2274 }
 0x2f5   :  { %v2279_v25 = vsel %vm2278_vm0, %v2275_v54, %v2277_v31 }
 0x2f6   :  { %v2288_v44 = vadd.f32 %v2279_v25, %v2262_v32  ;;  %v4846_v32 = vsel %vm156_vm12, 1.0, %v4261_v28  ;;  %vm2740_vm12 = vcmask 15360  }
 0x2f9   :  { %v2450_v19 = vld.sshfl [vmem:[#allocation1] sm:$0xff pattern:$0x75316420] }
 0x2fa   :  { %2451 = vrot.lane.b32.xlu0 %v2450_v19, %s4259_s26  ;;  %2455 = vst [vmem:[#allocation1] ss:$2 sm:$0xff] %v4689_v49 }
 0x2fc   :  { %v2285_v21 = vpop.permute.xlu0 %2284  ;;  %v2320_v34 = vpop.permute.xlu2 %2319 }
 0x2fd   :  { %v2287_v46 = vsel %vm2278_vm0, %v2277_v31, %v2285_v21  ;;  %vm166_vm0 = vcmp.ge.s32.totalorder %v4398_v62, 2 }
 0x2fe   :  { %v2289_v20 = vadd.f32 %v2287_v46, %v2263_v43 }
 0x301   :  { %v2457_v23 = vld.sshfl [vmem:[#allocation1 + $0x8] sm:$0xff pattern:$0x75316420]  ;;  %v2456_v57 = vld.sshfl [vmem:[#allocation1] sm:$0xff pattern:$0x75316420] }
 0x302   :  { %2460 = vrot.lane.b32.xlu2 %v2457_v23, %s4256_s23  ;;  %2458 = vrot.lane.b32.xlu1 %v2456_v57, %s4256_s23  ;;  %2465 = vst [vmem:[#allocation1] ss:$2 sm:$0xff] %v4689_v49  ;;  %v4864_v23 = vsel %vm165_vm9, 1.0, %v4261_v28  ;;  %vm2848_vm9 = vcmask 252928  }
 0x304   :  { %v2301_v3 = vpop.permute.xlu1 %2300 }
 0x305   :  { %v2305_v55 = vsel %vm2304_vm2, %v2301_v3, %v2303_v26  ;;  %v4870_v3 = vsub.f32 1.0, %v4864_v23 }
 0x306   :  { %v2331_v18 = vmul.f32 %v2305_v55, %v4834_v24 }
 0x309   :  { %v2466_v5 = vld.sshfl [vmem:[#allocation1] sm:$0xff pattern:$0x75316420] }
 0x30a   :  { %2467 = vrot.lane.b32.xlu0 %v2466_v5, %s4256_s23  ;;  %2481 = vst [vmem:[#allocation1] ss:$2 sm:$0xff] %v4691_v40 }
 0x30c   :  { %v2311_v63 = vpop.permute.xlu0 %2310  ;;  %v2352_v25 = vpop.permute.xlu2 %2351 }
 0x30d   :  { %v2313_v60 = vsel %vm2304_vm2, %v2303_v26, %v2311_v63 }
 0x30e   :  { %v2332_v12 = vmul.f32 %v2313_v60, %v4846_v32 }
 0x311   :  { %v2483_v0 = vld.sshfl [vmem:[#allocation1 + $0x8] sm:$0xff pattern:$0x75316420]  ;;  %v2482_v49 = vld.sshfl [vmem:[#allocation1] sm:$0xff pattern:$0x75316420] }
 0x312   :  { %2486 = vrot.lane.b32.xlu2 %v2483_v0, %s4254_s21  ;;  %2484 = vrot.lane.b32.xlu1 %v2482_v49, %s4254_s21  ;;  %2491 = vst [vmem:[#allocation1] ss:$2 sm:$0xff] %v4691_v40  ;;  %v4851_v40 = vsub.f32 1.0, %v4846_v32  ;;  %v4876_v49 = vsel %vm166_vm0, 1.0, %v4261_v28  ;;  %vm3045_vm0 = vcmask 384000  }
 0x314   :  { %v2318_v35 = vpop.permute.xlu1 %2317 }
 0x315   :  { %v2322_v22 = vsel %vm2321_vm13, %v2318_v35, %v2320_v34 }
 0x316   :  { %v2333_v36 = vmul.f32 %v2322_v22, %v4840_v33 }
 0x318   :  { %v2335_v38 = vadd.f32 %v2333_v36, %v2331_v18 }
 0x319   :  { %v2492_v6 = vld.sshfl [vmem:[#allocation1] sm:$0xff pattern:$0x75316420] }
 0x31a   :  { %v2337_v37 = vadd.f32 %v2335_v38, %v2288_v44  ;;  %2493 = vrot.lane.b32.xlu0 %v2492_v6, %s4254_s21  ;;  %2501 = vst [vmem:[#allocation1] ss:$2 sm:$0xff] %v4703_v42 }
 0x31c   :  { %v2328_v47 = vpop.permute.xlu0 %2327  ;;  %v2369_v55 = vpop.permute.xlu2 %2368 }
 0x31d   :  { %v2330_v41 = vsel %vm2321_vm13, %v2320_v34, %v2328_v47 }
 0x31e   :  { %v2334_v58 = vmul.f32 %v2330_v41, %v4851_v40 }
 0x320   :  { %v2336_v30 = vadd.f32 %v2334_v58, %v2332_v12 }
 0x321   :  { %v2503_v43 = vld.sshfl [vmem:[#allocation1 + $0x8] sm:$0xff pattern:$0x75316420]  ;;  %v2502_v31 = vld.sshfl [vmem:[#allocation1] sm:$0xff pattern:$0x75316420] }
 0x322   :  { %v2338_v54 = vadd.f32 %v2336_v30, %v2289_v20  ;;  %2506 = vrot.lane.b32.xlu2 %v2503_v43, %s4258_s25  ;;  %2504 = vrot.lane.b32.xlu1 %v2502_v31, %s4258_s25  ;;  %2511 = vst [vmem:[#allocation1] ss:$2 sm:$0xff] %v4703_v42 }
 0x324   :  { %v2350_v44 = vpop.permute.xlu1 %2349 }
 0x325   :  { %v2354_v19 = vsel %vm2353_vm8, %v2350_v44, %v2352_v25 }
 0x326   :  { %v2380_v63 = vmul.f32 %v2354_v19, %v4864_v23 }
 0x329   :  { %v2512_v21 = vld.sshfl [vmem:[#allocation1] sm:$0xff pattern:$0x75316420] }
 0x32a   :  { %2513 = vrot.lane.b32.xlu0 %v2512_v21, %s4258_s25  ;;  %2517 = vst [vmem:[#allocation1] ss:$2 sm:$0xff] %v4703_v42 }
 0x32c   :  { %v2360_v46 = vpop.permute.xlu0 %2359 }
 0x32d   :  { %v2362_v20 = vsel %vm2353_vm8, %v2352_v25, %v2360_v46 }
 0x32e   :  { %v2381_v36 = vmul.f32 %v2362_v20, %v4876_v49 }
 0x331   :  { %v2519_v57 = vld.sshfl [vmem:[#allocation1 + $0x8] sm:$0xff pattern:$0x75316420]  ;;  %v2518_v26 = vld.sshfl [vmem:[#allocation1] sm:$0xff pattern:$0x75316420] }
 0x332   :  { %2522 = vrot.lane.b32.xlu2 %v2519_v57, %s4266_s4  ;;  %2520 = vrot.lane.b32.xlu1 %v2518_v26, %s4266_s4  ;;  %2527 = vst [vmem:[#allocation1] ss:$2 sm:$0xff] %v4703_v42  ;;  %v4881_v42 = vsub.f32 1.0, %v4876_v49 }
 0x334   :  { %v2367_v5 = vpop.permute.xlu1 %2366 }
 0x335   :  { %v2371_v61 = vsel %vm2370_vm4, %v2367_v5, %v2369_v55 }
 0x336   :  { %v2382_v60 = vmul.f32 %v2371_v61, %v4870_v3 }
 0x338   :  { %v2384_v0 = vadd.f32 %v2382_v60, %v2380_v63 }
 0x339   :  { %v2528_v34 = vld.sshfl [vmem:[#allocation1] sm:$0xff pattern:$0x75316420] }
 0x33a   :  { %v2386_v35 = vadd.f32 %v2384_v0, %v2337_v37  ;;  %2529 = vrot.lane.b32.xlu0 %v2528_v34, %s4266_s4  ;;  %2543 = vst [vmem:[#allocation1] ss:$2 sm:$0xff] %v4709_v53  ;;  %v2402_v37 = vpop.permute.xlu2 %2401 }
 0x33c   :  { %v2377_v22 = vpop.permute.xlu0 %2376 }
 0x33d   :  { %v2379_v18 = vsel %vm2370_vm4, %v2369_v55, %v2377_v22 }
 0x33e   :  { %v2383_v62 = vmul.f32 %v2379_v18, %v4881_v42 }
 0x340   :  { %v2385_v38 = vadd.f32 %v2383_v62, %v2381_v36 }
 0x341   :  { %v2545_v6 = vld.sshfl [vmem:[#allocation1 + $0x8] sm:$0xff pattern:$0x75316420]  ;;  %v2544_v47 = vld.sshfl [vmem:[#allocation1] sm:$0xff pattern:$0x75316420] }
 0x342   :  { %v2387_v28 = vadd.f32 %v2385_v38, %v2338_v54  ;;  %2548 = vrot.lane.b32.xlu2 %v2545_v6, %s4271_s9  ;;  %2546 = vrot.lane.b32.xlu1 %v2544_v47, %s4271_s9  ;;  %2554 = vst [vmem:[#allocation1] ss:$2 sm:$0xff] %v4709_v53  ;;  %v2418_v25 = vpop.permute.xlu2 %2417 }
 0x344   :  { %v2400_v41 = vpop.permute.xlu1 %2399 }
 0x345   :  { %v2403_v12 = vsel %vm2198_vm5, %v2400_v41, %v2402_v37 }
 0x346   :  { %v2429_v21 = vmul.f32 %v2403_v12, %v4770_v7 }
 0x349   :  { %v2555_v58 = vld.sshfl [vmem:[#allocation1] sm:$0xff pattern:$0x75316420] }
 0x34a   :  { %2556 = vrot.lane.b32.xlu0 %v2555_v58, %s4271_s9  ;;  %2560 = vst [vmem:[#allocation1] ss:$2 sm:$0xff] %v4709_v53 }
 0x34c   :  { %v2409_v30 = vpop.permute.xlu0 %2408  ;;  %v2445_v22 = vpop.permute.xlu2 %2444 }
 0x34d   :  { %v2411_v43 = vsel %vm2198_vm5, %v2402_v37, %v2409_v30  ;;  %vm2550_vm5 = vcmask 932864  }
 0x351   :  { %v2562_v31 = vld.sshfl [vmem:[#allocation1 + $0x8] sm:$0xff pattern:$0x75316420]  ;;  %v2561_v54 = vld.sshfl [vmem:[#allocation1] sm:$0xff pattern:$0x75316420] }
 0x352   :  { %2565 = vrot.lane.b32.xlu2 %v2562_v31, %s4268_s6  ;;  %2563 = vrot.lane.b32.xlu1 %v2561_v54, %s4268_s6  ;;  %2570 = vst [vmem:[#allocation1] ss:$2 sm:$0xff] %v4709_v53  ;;  %v2430_v53 = vmul.f32 %v2411_v43, %v4781_v45 }
 0x354   :  { %v2416_v44 = vpop.permute.xlu1 %2415 }
 0x355   :  { %v2420_v19 = vsel %vm2419_vm14, %v2416_v44, %v2418_v25 }
 0x356   :  { %v2431_v46 = vmul.f32 %v2420_v19, %v4774_v8 }
 0x358   :  { %v2433_v20 = vadd.f32 %v2431_v46, %v2429_v21 }
 0x359   :  { %v2571_v57 = vld.sshfl [vmem:[#allocation1] sm:$0xff pattern:$0x75316420] }
 0x35a   :  { %2572 = vrot.lane.b32.xlu0 %v2571_v57, %s4268_s6  ;;  %2592 = vst [vmem:[#allocation1] ss:$2 sm:$0xff] %v4714_v56  ;;  %v2435_v26 = vadd.f32 %v2433_v20, %v2386_v35 }
 0x35c   :  { %v2426_v55 = vpop.permute.xlu0 %2425  ;;  %v2461_v47 = vpop.permute.xlu2 %2460 }
 0x35d   :  { %v2428_v5 = vsel %vm2419_vm14, %v2418_v25, %v2426_v55 }
 0x35e   :  { %v2432_v61 = vmul.f32 %v2428_v5, %v4785_v50 }
 0x360   :  { %v2434_v63 = vadd.f32 %v2432_v61, %v2430_v53 }
 0x361   :  { %v2594_v60 = vld.sshfl [vmem:[#allocation1 + $0x8] sm:$0xff pattern:$0x75316420]  ;;  %v2593_v0 = vld.sshfl [vmem:[#allocation1] sm:$0xff pattern:$0x75316420] }
 0x362   :  { %2597 = vrot.lane.b32.xlu2 %v2594_v60, %s4270_s8  ;;  %2595 = vrot.lane.b32.xlu1 %v2593_v0, %s4270_s8  ;;  %2602 = vst [vmem:[#allocation1] ss:$2 sm:$0xff] %v4714_v56  ;;  %v2436_v34 = vadd.f32 %v2434_v63, %v2387_v28 }
 0x364   :  { %v2443_v18 = vpop.permute.xlu1 %2442 }
 0x365   :  { %v2446_v35 = vsel %vm1917_vm3, %v2443_v18, %v2445_v22 }
 0x366   :  { %v2471_v41 = vmul.f32 %v2446_v35, %v4797_v16 }
 0x369   :  { %v2603_v36 = vld.sshfl [vmem:[#allocation1] sm:$0xff pattern:$0x75316420] }
 0x36a   :  { %2604 = vrot.lane.b32.xlu0 %v2603_v36, %s4270_s8  ;;  %2608 = vst [vmem:[#allocation1] ss:$2 sm:$0xff] %v4714_v56 }
 0x36c   :  { %v2452_v62 = vpop.permute.xlu0 %2451  ;;  %v2487_v57 = vpop.permute.xlu2 %2486 }
 0x36d   :  { %v2454_v38 = vsel %vm1917_vm3, %v2445_v22, %v2452_v62  ;;  %vm5200_vm3 = vcmask 924672  }
 0x36e   :  { %v2472_v25 = vmul.f32 %v2454_v38, %v4810_v48 }
 0x371   :  { %v2609_v6 = vld.sshfl [vmem:[#allocation1 + $0x8] sm:$0xff pattern:$0x75316420] }
 0x372   :  { %2610 = vrot.lane.b32.xlu1 %v2609_v6, %s4272_s10  ;;  %2613 = vst [vmem:[#allocation1] ss:$2 sm:$0xff] %v4714_v56 }
 0x374   :  { %v2459_v28 = vpop.permute.xlu1 %2458 }
 0x375   :  { %v2462_v37 = vsel %vm1881_vm10, %v2459_v28, %v2461_v47 }
 0x376   :  { %v2473_v12 = vmul.f32 %v2462_v37, %v4803_v29 }
 0x378   :  { %v2475_v58 = vadd.f32 %v2473_v12, %v2471_v41 }
 0x379   :  { %v2615_v30 = vld.sshfl [vmem:[#allocation1 + $0x8] sm:$0xff pattern:$0x75316420]  ;;  %v2614_v43 = vld.sshfl [vmem:[#allocation1] sm:$0xff pattern:$0x75316420] }
 0x37a   :  { %2618 = vrot.lane.b32.xlu0 %v2615_v30, %s4272_s10  ;;  %2616 = vrot.lane.b32.xlu2 %v2614_v43, %s4272_s10  ;;  %2635 = vst [vmem:[#allocation1] ss:$2 sm:$0xff] %v4716_v51  ;;  %v2477_v31 = vadd.f32 %v2475_v58, %v2435_v26 }
 0x37c   :  { %v2468_v54 = vpop.permute.xlu0 %2467 }
 0x37d   :  { %v2470_v56 = vsel %vm1881_vm10, %v2461_v47, %v2468_v54 }
 0x37e   :  { %v2474_v44 = vmul.f32 %v2470_v56, %v4815_v59 }
 0x380   :  { %v2476_v19 = vadd.f32 %v2474_v44, %v2472_v25 }
 0x381   :  { %v2637_v21 = vld.sshfl [vmem:[#allocation1 + $0x8] sm:$0xff pattern:$0x75316420]  ;;  %v2636_v46 = vld.sshfl [vmem:[#allocation1] sm:$0xff pattern:$0x75316420] }
 0x382   :  { %2640 = vrot.lane.b32.xlu2 %v2637_v21, %s4256_s23  ;;  %2638 = vrot.lane.b32.xlu1 %v2636_v46, %s4256_s23  ;;  %2645 = vst [vmem:[#allocation1] ss:$2 sm:$0xff] %v4716_v51  ;;  %v2478_v20 = vadd.f32 %v2476_v19, %v2436_v34  ;;  %v2507_v34 = vpop.permute.xlu2 %2506 }
 0x384   :  { %v2485_v55 = vpop.permute.xlu1 %2484 }
 0x385   :  { %v2488_v26 = vsel %vm1905_vm1, %v2485_v55, %v2487_v57 }
 0x386   :  { %v2497_v5 = vadd.f32 %v2488_v26, %v2477_v31 }
 0x389   :  { %v2646_v53 = vld.sshfl [vmem:[#allocation1] sm:$0xff pattern:$0x75316420] }
 0x38a   :  { %2647 = vrot.lane.b32.xlu0 %v2646_v53, %s4256_s23  ;;  %2651 = vst [vmem:[#allocation1] ss:$2 sm:$0xff] %v4716_v51 }
 0x38c   :  { %v2494_v61 = vpop.permute.xlu0 %2493 }
 0x38d   :  { %v2496_v63 = vsel %vm1905_vm1, %v2487_v57, %v2494_v61  ;;  %vm5201_vm1 = vmmov %vm5200_vm3 }
 0x38e   :  { %v2498_v60 = vadd.f32 %v2496_v63, %v2478_v20  ;;  %vm5203_vm13 = vmmov %vm5201_vm1 }
 0x391   :  { %v2652_v0 = vld.sshfl [vmem:[#allocation1 + $0x8] sm:$0xff pattern:$0x75316420] }
 0x392   :  { %2653 = vrot.lane.b32.xlu1 %v2652_v0, %s4260_s27  ;;  %2656 = vst [vmem:[#allocation1] ss:$2 sm:$0xff] %v4716_v51  ;;  %v2523_v51 = vpop.permute.xlu2 %2522 }
 0x394   :  { %v2505_v22 = vpop.permute.xlu1 %2504 }
 0x395   :  { %v2508_v18 = vsel %vm5200_vm3, %v2505_v22, %v2507_v34 }
 0x396   :  { %v2533_v41 = vmul.f32 %v2508_v18, %v4834_v24 }
 0x399   :  { %v2658_v35 = vld.sshfl [vmem:[#allocation1 + $0x8] sm:$0xff pattern:$0x75316420]  ;;  %v2657_v36 = vld.sshfl [vmem:[#allocation1] sm:$0xff pattern:$0x75316420] }
 0x39a   :  { %2661 = vrot.lane.b32.xlu0 %v2658_v35, %s4260_s27  ;;  %2677 = vst [vmem:[#allocation1] ss:$2 sm:$0xff] %v4718_v1  ;;  %2659 = vrot.lane.b32.xlu2 %v2657_v36, %s4260_s27 }
 0x39c   :  { %v2514_v62 = vpop.permute.xlu0 %2513  ;;  %v2549_v46 = vpop.permute.xlu2 %2548 }
 0x39d   :  { %v2516_v38 = vsel %vm5201_vm1, %v2507_v34, %v2514_v62 }
 0x39e   :  { %v2534_v54 = vmul.f32 %v2516_v38, %v4846_v32 }
 0x3a1   :  { %v4935_v6 = vld.sshfl [vmem:[#allocation1] sm:$0xff pattern:$0x75316420]  ;;  %v4937_v47 = vld.sshfl [vmem:[#allocation1 + $0x8] sm:$0xff pattern:$0x75316420] }
 0x3a2   :  { %2686 = vst [vmem:[#allocation1] ss:$2 sm:$0xff] %v4720_v9 }
 0x3a4   :  { %v2521_v28 = vpop.permute.xlu1 %2520 }
 0x3a5   :  { %v2524_v37 = vsel %vm2304_vm2, %v2521_v28, %v2523_v51 }
 0x3a6   :  { %v2535_v12 = vmul.f32 %v2524_v37, %v4840_v33 }
 0x3a8   :  { %v2537_v1 = vadd.f32 %v2535_v12, %v2533_v41 }
 0x3a9   :  { %v2687_v58 = vld.sshfl [vmem:[#allocation1 + $0x8] sm:$0xff pattern:$0x75316420] }
 0x3aa   :  { %v2539_v30 = vadd.f32 %v2537_v1, %v2497_v5  ;;  %2688 = vrot.lane.b32.xlu1 %v2687_v58, %s4257_s24  ;;  %2691 = vst [vmem:[#allocation1] ss:$2 sm:$0xff] %v4720_v9 }
 0x3ac   :  { %v2530_v43 = vpop.permute.xlu0 %2529  ;;  %v2566_v63 = vpop.permute.xlu2 %2565 }
 0x3ad   :  { %v2532_v31 = vsel %vm2304_vm2, %v2523_v51, %v2530_v43  ;;  %vm2620_vm2 = vcmask 113664  }
 0x3ae   :  { %v2536_v56 = vmul.f32 %v2532_v31, %v4851_v40 }
 0x3b0   :  { %v2538_v25 = vadd.f32 %v2536_v56, %v2534_v54 }
 0x3b1   :  { %v2693_v44 = vld.sshfl [vmem:[#allocation1 + $0x8] sm:$0xff pattern:$0x75316420]  ;;  %v2692_v19 = vld.sshfl [vmem:[#allocation1] sm:$0xff pattern:$0x75316420] }
 0x3b2   :  { %v2540_v21 = vadd.f32 %v2538_v25, %v2498_v60  ;;  %2696 = vrot.lane.b32.xlu0 %v2693_v44, %s4257_s24  ;;  %2694 = vrot.lane.b32.xlu2 %v2692_v19, %s4257_s24  ;;  %2702 = vst [vmem:[#allocation1] ss:$2 sm:$0xff] %v4720_v9 }
 0x3b4   :  { %v2547_v20 = vpop.permute.xlu1 %2546 }
 0x3b5   :  { %v2551_v57 = vsel %vm2550_vm5, %v2547_v20, %v2549_v46 }
 0x3b6   :  { %v2576_v34 = vmul.f32 %v2551_v57, %v4864_v23 }
 0x3b9   :  { %v2704_v55 = vld.sshfl [vmem:[#allocation1 + $0x8] sm:$0xff pattern:$0x75316420]  ;;  %v2703_v26 = vld.sshfl [vmem:[#allocation1] sm:$0xff pattern:$0x75316420] }
 0x3ba   :  { %2707 = vrot.lane.b32.xlu2 %v2704_v55, %s4258_s25  ;;  %2705 = vrot.lane.b32.xlu1 %v2703_v26, %s4258_s25  ;;  %2712 = vst [vmem:[#allocation1] ss:$2 sm:$0xff] %v4720_v9 }
 0x3bc   :  { %v2557_v5 = vpop.permute.xlu0 %2556  ;;  %v2598_v1 = vpop.permute.xlu2 %2597 }
 0x3bd   :  { %v2559_v53 = vsel %vm2550_vm5, %v2549_v46, %v2557_v5 }
 0x3be   :  { %v2577_v38 = vmul.f32 %v2559_v53, %v4876_v49 }
 0x3c1   :  { %v2713_v61 = vld.sshfl [vmem:[#allocation1] sm:$0xff pattern:$0x75316420] }
 0x3c2   :  { %2714 = vrot.lane.b32.xlu0 %v2713_v61, %s4258_s25  ;;  %2728 = vst [vmem:[#allocation1] ss:$2 sm:$0xff] %v4722_v10 }
 0x3c4   :  { %v2564_v60 = vpop.permute.xlu1 %2563 }
 0x3c5   :  { %v2567_v0 = vsel %vm2353_vm8, %v2564_v60, %v2566_v63 }
 0x3c6   :  { %v2578_v22 = vmul.f32 %v2567_v0, %v4870_v3 }
 0x3c8   :  { %v2580_v18 = vadd.f32 %v2578_v22, %v2576_v34 }
 0x3c9   :  { %v2729_v35 = vld.sshfl [vmem:[#allocation1 + $0x8] sm:$0xff pattern:$0x75316420] }
 0x3ca   :  { %v2582_v36 = vadd.f32 %v2580_v18, %v2539_v30  ;;  %2730 = vrot.lane.b32.xlu1 %v2729_v35, %s4273_s11  ;;  %2733 = vst [vmem:[#allocation1] ss:$2 sm:$0xff] %v4722_v10 }
 0x3cc   :  { %v2573_v9 = vpop.permute.xlu0 %2572 }
 0x3cd   :  { %v2575_v62 = vsel %vm2353_vm8, %v2566_v63, %v2573_v9  ;;  %vm2805_vm8 = vcmask 244736  }
 0x3ce   :  { %v2579_v51 = vmul.f32 %v2575_v62, %v4881_v42 }
 0x3d0   :  { %v2581_v28 = vadd.f32 %v2579_v51, %v2577_v38 }
 0x3d1   :  { %v2735_v37 = vld.sshfl [vmem:[#allocation1 + $0x8] sm:$0xff pattern:$0x75316420]  ;;  %v2734_v41 = vld.sshfl [vmem:[#allocation1] sm:$0xff pattern:$0x75316420] }
 0x3d2   :  { %v2583_v12 = vadd.f32 %v2581_v28, %v2540_v21  ;;  %2738 = vrot.lane.b32.xlu0 %v2735_v37, %s4273_s11  ;;  %2736 = vrot.lane.b32.xlu2 %v2734_v41, %s4273_s11  ;;  %2745 = vst [vmem:[#allocation1] ss:$2 sm:$0xff] %v4722_v10 }
 0x3d4   :  { %v2596_v58 = vpop.permute.xlu1 %2595  ;;  %v2617_v44 = vpop.permute.xlu2 %2616 }
 0x3d5   :  { %v2599_v30 = vsel %vm2419_vm14, %v2596_v58, %v2598_v1 }
 0x3d6   :  { %v2625_v46 = vmul.f32 %v2599_v30, %v4770_v7 }
 0x3d9   :  { %v2747_v43 = vld.sshfl [vmem:[#allocation1 + $0x8] sm:$0xff pattern:$0x75316420]  ;;  %v2746_v31 = vld.sshfl [vmem:[#allocation1] sm:$0xff pattern:$0x75316420] }
 0x3da   :  { %2750 = vrot.lane.b32.xlu2 %v2747_v43, %s4271_s9  ;;  %2748 = vrot.lane.b32.xlu1 %v2746_v31, %s4271_s9  ;;  %2755 = vst [vmem:[#allocation1] ss:$2 sm:$0xff] %v4722_v10 }
 0x3dc   :  { %v2605_v54 = vpop.permute.xlu0 %2604  ;;  %v2641_v22 = vpop.permute.xlu2 %2640 }
 0x3dd   :  { %v2607_v56 = vsel %vm2419_vm14, %v2598_v1, %v2605_v54  ;;  %vm3093_vm14 = vcmask 269312  }
 0x3de   :  { %v2626_v53 = vmul.f32 %v2607_v56, %v4781_v45 }
 0x3e1   :  { %v2756_v25 = vld.sshfl [vmem:[#allocation1] sm:$0xff pattern:$0x75316420] }
 0x3e2   :  { %2757 = vrot.lane.b32.xlu0 %v2756_v25, %s4271_s9  ;;  %2777 = vst [vmem:[#allocation1] ss:$2 sm:$0xff] %v4724_v11 }
 0x3e4   :  { %v2611_v19 = vpop.permute.xlu1 %2610 }
 0x3e5   :  { %v2624_v21 = vsel %vm2620_vm2, %v2611_v19, %v2617_v44 }
 0x3e6   :  { %v2627_v20 = vmul.f32 %v2624_v21, %v4774_v8 }
 0x3e8   :  { %v2629_v57 = vadd.f32 %v2627_v20, %v2625_v46 }
 0x3e9   :  { %v2778_v55 = vld.sshfl [vmem:[#allocation1 + $0x8] sm:$0xff pattern:$0x75316420] }
 0x3ea   :  { %v2631_v10 = vadd.f32 %v2629_v57, %v2582_v36  ;;  %2779 = vrot.lane.b32.xlu1 %v2778_v55, %s4272_s10  ;;  %2782 = vst [vmem:[#allocation1] ss:$2 sm:$0xff] %v4724_v11 }
 0x3ec   :  { %v2619_v26 = vpop.permute.xlu0 %2618 }
 0x3ed   :  { %v2621_v5 = vsel %vm2620_vm2, %v2617_v44, %v2619_v26 }
 0x3ee   :  { %v2628_v61 = vmul.f32 %v2621_v5, %v4785_v50 }
 0x3f0   :  { %v2630_v63 = vadd.f32 %v2628_v61, %v2626_v53 }
 0x3f1   :  { %v2784_v60 = vld.sshfl [vmem:[#allocation1 + $0x8] sm:$0xff pattern:$0x75316420]  ;;  %v2783_v0 = vld.sshfl [vmem:[#allocation1] sm:$0xff pattern:$0x75316420] }
 0x3f2   :  { %v2632_v34 = vadd.f32 %v2630_v63, %v2583_v12  ;;  %2787 = vrot.lane.b32.xlu0 %v2784_v60, %s4272_s10  ;;  %2785 = vrot.lane.b32.xlu2 %v2783_v0, %s4272_s10  ;;  %2793 = vst [vmem:[#allocation1] ss:$2 sm:$0xff] %v4724_v11 }
 0x3f4   :  { %v2639_v18 = vpop.permute.xlu1 %2638  ;;  %v2660_v28 = vpop.permute.xlu2 %2659 }
 0x3f5   :  { %v2642_v35 = vsel %vm1881_vm10, %v2639_v18, %v2641_v22 }
 0x3f6   :  { %v2667_v12 = vmul.f32 %v2642_v35, %v4797_v16 }
 0x3f9   :  { %v2794_v36 = vld.sshfl [vmem:[#allocation1 + $0x8] sm:$0xff pattern:$0x75316420] }
 0x3fa   :  { %2795 = vrot.lane.b32.xlu1 %v2794_v36, %s4274_s12  ;;  %2798 = vst [vmem:[#allocation1] ss:$2 sm:$0xff] %v4724_v11 }
 0x3fc   :  { %v2648_v9 = vpop.permute.xlu0 %2647 }
 0x3fd   :  { %v2650_v62 = vsel %vm1881_vm10, %v2641_v22, %v2648_v9  ;;  %vm5202_vm10 = vmmov %vm5201_vm1  ;;  %vm3136_vm1 = vcmask 277504  }
 0x3fe   :  { %v2668_v54 = vmul.f32 %v2650_v62, %v4810_v48 }
 0x401   :  { %v2800_v38 = vld.sshfl [vmem:[#allocation1 + $0x8] sm:$0xff pattern:$0x75316420]  ;;  %v2799_v51 = vld.sshfl [vmem:[#allocation1] sm:$0xff pattern:$0x75316420] }
 0x402   :  { %2803 = vrot.lane.b32.xlu0 %v2800_v38, %s4274_s12  ;;  %2801 = vrot.lane.b32.xlu2 %v2799_v51, %s4274_s12  ;;  %2820 = vst [vmem:[#allocation1] ss:$2 sm:$0xff] %v4726_v13 }
 0x404   :  { %v2654_v37 = vpop.permute.xlu1 %2653 }
 0x405   :  { %v2666_v41 = vsel %vm1858_vm7, %v2654_v37, %v2660_v28 }
 0x406   :  { %v2669_v1 = vmul.f32 %v2666_v41, %v4803_v29 }
 0x408   :  { %v2671_v11 = vadd.f32 %v2669_v1, %v2667_v12 }
 0x409   :  { %v2821_v58 = vld.sshfl [vmem:[#allocation1 + $0x8] sm:$0xff pattern:$0x75316420] }
 0x40a   :  { %v2673_v30 = vadd.f32 %v2671_v11, %v2631_v10  ;;  %2822 = vrot.lane.b32.xlu1 %v2821_v58, %s4260_s27  ;;  %2825 = vst [vmem:[#allocation1] ss:$2 sm:$0xff] %v4726_v13 }
 0x40c   :  { %v2662_v43 = vpop.permute.xlu0 %2661  ;;  %v2695_v20 = vpop.permute.xlu2 %2694  ;;  %v2682_v22 = vadd.f32 %v4935_v6, %v2673_v30 }
 0x40d   :  { %v2663_v31 = vsel %vm1858_vm7, %v2660_v28, %v2662_v43 }
 0x40e   :  { %v2670_v56 = vmul.f32 %v2663_v31, %v4815_v59 }
 0x410   :  { %v2672_v25 = vadd.f32 %v2670_v56, %v2668_v54 }
 0x411   :  { %v2827_v44 = vld.sshfl [vmem:[#allocation1 + $0x8] sm:$0xff pattern:$0x75316420]  ;;  %v2826_v19 = vld.sshfl [vmem:[#allocation1] sm:$0xff pattern:$0x75316420] }
 0x412   :  { %v2674_v21 = vadd.f32 %v2672_v25, %v2632_v34  ;;  %2830 = vrot.lane.b32.xlu0 %v2827_v44, %s4260_s27  ;;  %2828 = vrot.lane.b32.xlu2 %v2826_v19, %s4260_s27  ;;  %2836 = vst [vmem:[#allocation1] ss:$2 sm:$0xff] %v4726_v13 }
 0x414   :  { %v2683_v28 = vadd.f32 %v4937_v47, %v2674_v21 }
 0x419   :  { %v2837_v46 = vld.sshfl [vmem:[#allocation1 + $0x8] sm:$0xff pattern:$0x75316420] }
 0x41a   :  { %2838 = vrot.lane.b32.xlu1 %v2837_v46, %s4275_s13  ;;  %2841 = vst [vmem:[#allocation1] ss:$2 sm:$0xff] %v4726_v13  ;;  %v2708_v13 = vpop.permute.xlu2 %2707 }
 0x41c   :  { %v2689_v57 = vpop.permute.xlu1 %2688 }
 0x41d   :  { %v2701_v55 = vsel %vm1870_vm11, %v2689_v57, %v2695_v20 }
 0x41e   :  { %v2718_v0 = vmul.f32 %v2701_v55, %v4834_v24 }
 0x421   :  { %v2843_v10 = vld.sshfl [vmem:[#allocation1 + $0x8] sm:$0xff pattern:$0x75316420]  ;;  %v2842_v26 = vld.sshfl [vmem:[#allocation1] sm:$0xff pattern:$0x75316420] }
 0x422   :  { %2846 = vrot.lane.b32.xlu0 %v2843_v10, %s4275_s13  ;;  %2844 = vrot.lane.b32.xlu2 %v2842_v26, %s4275_s13  ;;  %2863 = vst [vmem:[#allocation1] ss:$2 sm:$0xff] %v4728_v2 }
 0x424   :  { %v2697_v5 = vpop.permute.xlu0 %2696 }
 0x425   :  { %v2698_v53 = vsel %vm1870_vm11, %v2695_v20, %v2697_v5 }
 0x426   :  { %v2719_v38 = vmul.f32 %v2698_v53, %v4846_v32 }
 0x429   :  { %v2864_v61 = vld.sshfl [vmem:[#allocation1 + $0x8] sm:$0xff pattern:$0x75316420] }
 0x42a   :  { %2865 = vrot.lane.b32.xlu1 %v2864_v61, %s4255_s22  ;;  %2868 = vst [vmem:[#allocation1] ss:$2 sm:$0xff] %v4728_v2 }
 0x42c   :  { %v2706_v63 = vpop.permute.xlu1 %2705  ;;  %v2737_v12 = vpop.permute.xlu2 %2736 }
 0x42d   :  { %v2709_v60 = vsel %vm5202_vm10, %v2706_v63, %v2708_v13 }
 0x42e   :  { %v2720_v34 = vmul.f32 %v2709_v60, %v4840_v33 }
 0x430   :  { %v2722_v18 = vadd.f32 %v2720_v34, %v2718_v0 }
 0x431   :  { %v2870_v35 = vld.sshfl [vmem:[#allocation1 + $0x8] sm:$0xff pattern:$0x75316420]  ;;  %v2869_v36 = vld.sshfl [vmem:[#allocation1] sm:$0xff pattern:$0x75316420] }
 0x432   :  { %v2724_v9 = vadd.f32 %v2722_v18, %v2682_v22  ;;  %2873 = vrot.lane.b32.xlu0 %v2870_v35, %s4255_s22  ;;  %2871 = vrot.lane.b32.xlu2 %v2869_v36, %s4255_s22  ;;  %2883 = vst [vmem:[#allocation1] ss:$2 sm:$0xff] %v4730_v27 }
 0x434   :  { %v2715_v2 = vpop.permute.xlu0 %2714  ;;  %v2751_v54 = vpop.permute.xlu2 %2750 }
 0x435   :  { %v2717_v62 = vsel %vm5203_vm13, %v2708_v13, %v2715_v2 }
 0x436   :  { %v2721_v51 = vmul.f32 %v2717_v62, %v4851_v40 }
 0x438   :  { %v2723_v6 = vadd.f32 %v2721_v51, %v2719_v38 }
 0x439   :  { %v2884_v37 = vld.sshfl [vmem:[#allocation1 + $0x8] sm:$0xff pattern:$0x75316420] }
 0x43a   :  { %v2725_v41 = vadd.f32 %v2723_v6, %v2683_v28  ;;  %2885 = vrot.lane.b32.xlu1 %v2884_v37, %s4253_s20  ;;  %2888 = vst [vmem:[#allocation1] ss:$2 sm:$0xff] %v4730_v27 }
 0x43c   :  { %v2731_v1 = vpop.permute.xlu1 %2730 }
 0x43d   :  { %v2744_v11 = vsel %vm2740_vm12, %v2731_v1, %v2737_v12 }
 0x43e   :  { %v2761_v44 = vmul.f32 %v2744_v11, %v4864_v23 }
 0x441   :  { %v2890_v58 = vld.sshfl [vmem:[#allocation1 + $0x8] sm:$0xff pattern:$0x75316420]  ;;  %v2889_v30 = vld.sshfl [vmem:[#allocation1] sm:$0xff pattern:$0x75316420] }
 0x442   :  { %2893 = vrot.lane.b32.xlu0 %v2890_v58, %s4253_s20  ;;  %2891 = vrot.lane.b32.xlu2 %v2889_v30, %s4253_s20  ;;  %2899 = vst [vmem:[#allocation1] ss:$2 sm:$0xff] %v4730_v27 }
 0x444   :  { %v2739_v47 = vpop.permute.xlu0 %2738 }
 0x445   :  { %v2741_v43 = vsel %vm2740_vm12, %v2737_v12, %v2739_v47 }
 0x446   :  { %v2762_v10 = vmul.f32 %v2741_v43, %v4876_v49 }
 0x449   :  { %v2900_v31 = vld.sshfl [vmem:[#allocation1 + $0x8] sm:$0xff pattern:$0x75316420] }
 0x44a   :  { %2901 = vrot.lane.b32.xlu1 %v2900_v31, %s4257_s24  ;;  %2904 = vst [vmem:[#allocation1] ss:$2 sm:$0xff] %v4730_v27 }
 0x44c   :  { %v2749_v56 = vpop.permute.xlu1 %2748  ;;  %v2786_v13 = vpop.permute.xlu2 %2785 }
 0x44d   :  { %v2752_v25 = vsel %vm2550_vm5, %v2749_v56, %v2751_v54 }
 0x44e   :  { %v2763_v19 = vmul.f32 %v2752_v25, %v4870_v3 }
 0x450   :  { %v2765_v21 = vadd.f32 %v2763_v19, %v2761_v44 }
 0x451   :  { %v2906_v46 = vld.sshfl [vmem:[#allocation1 + $0x8] sm:$0xff pattern:$0x75316420]  ;;  %v2905_v20 = vld.sshfl [vmem:[#allocation1] sm:$0xff pattern:$0x75316420] }
 0x452   :  { %v2767_v57 = vadd.f32 %v2765_v21, %v2724_v9  ;;  %2909 = vrot.lane.b32.xlu0 %v2906_v46, %s4257_s24  ;;  %2907 = vrot.lane.b32.xlu2 %v2905_v20, %s4257_s24  ;;  %2925 = vst [vmem:[#allocation1] ss:$2 sm:$0xff] %v4732_v14 }
 0x454   :  { %v2758_v55 = vpop.permute.xlu0 %2757 }
 0x455   :  { %v2760_v27 = vsel %vm2550_vm5, %v2751_v54, %v2758_v55  ;;  %vm3072_vm5 = vcmask 261120  }
 0x456   :  { %v2764_v26 = vmul.f32 %v2760_v27, %v4881_v42 }
 0x458   :  { %v2766_v5 = vadd.f32 %v2764_v26, %v2762_v10 }
 0x459   :  { %v2926_v53 = vld.sshfl [vmem:[#allocation1 + $0x8] sm:$0xff pattern:$0x75316420] }
 0x45a   :  { %v2768_v61 = vadd.f32 %v2766_v5, %v2725_v41  ;;  %2927 = vrot.lane.b32.xlu1 %v2926_v53, %s4276_s14  ;;  %2930 = vst [vmem:[#allocation1] ss:$2 sm:$0xff] %v4732_v14 }
 0x45c   :  { %v2780_v63 = vpop.permute.xlu1 %2779  ;;  %v2802_v36 = vpop.permute.xlu2 %2801 }
 0x45d   :  { %v2792_v60 = vsel %vm2620_vm2, %v2780_v63, %v2786_v13 }
 0x45e   :  { %v2810_v62 = vmul.f32 %v2792_v60, %v4770_v7 }
 0x461   :  { %v2932_v0 = vld.sshfl [vmem:[#allocation1 + $0x8] sm:$0xff pattern:$0x75316420]  ;;  %v2931_v34 = vld.sshfl [vmem:[#allocation1] sm:$0xff pattern:$0x75316420] }
 0x462   :  { %2935 = vrot.lane.b32.xlu0 %v2932_v0, %s4276_s14  ;;  %2933 = vrot.lane.b32.xlu2 %v2931_v34, %s4276_s14  ;;  %2942 = vst [vmem:[#allocation1] ss:$2 sm:$0xff] %v4732_v14 }
 0x464   :  { %v2788_v22 = vpop.permute.xlu0 %2787 }
 0x465   :  { %v2789_v18 = vsel %vm2620_vm2, %v2786_v13, %v2788_v22 }
 0x466   :  { %v2811_v12 = vmul.f32 %v2789_v18, %v4781_v45 }
 0x469   :  { %v2943_v35 = vld.sshfl [vmem:[#allocation1 + $0x8] sm:$0xff pattern:$0x75316420] }
 0x46a   :  { %2944 = vrot.lane.b32.xlu1 %v2943_v35, %s4273_s11  ;;  %2947 = vst [vmem:[#allocation1] ss:$2 sm:$0xff] %v4732_v14 }
 0x46c   :  { %v2796_v9 = vpop.permute.xlu1 %2795  ;;  %v2829_v47 = vpop.permute.xlu2 %2828 }
 0x46d   :  { %v2809_v2 = vsel %vm2805_vm8, %v2796_v9, %v2802_v36 }
 0x46e   :  { %v2812_v38 = vmul.f32 %v2809_v2, %v4774_v8 }
 0x470   :  { %v2814_v51 = vadd.f32 %v2812_v38, %v2810_v62 }
 0x471   :  { %v2949_v28 = vld.sshfl [vmem:[#allocation1 + $0x8] sm:$0xff pattern:$0x75316420]  ;;  %v2948_v6 = vld.sshfl [vmem:[#allocation1] sm:$0xff pattern:$0x75316420] }
 0x472   :  { %2952 = vrot.lane.b32.xlu0 %v2949_v28, %s4273_s11  ;;  %2950 = vrot.lane.b32.xlu2 %v2948_v6, %s4273_s11  ;;  %2974 = vst [vmem:[#allocation1] ss:$2 sm:$0xff] %v4734_v4  ;;  %v2816_v37 = vadd.f32 %v2814_v51, %v2767_v57 }
 0x474   :  { %v2804_v14 = vpop.permute.xlu0 %2803 }
 0x475   :  { %v2806_v41 = vsel %vm2805_vm8, %v2802_v36, %v2804_v14 }
 0x476   :  { %v2813_v1 = vmul.f32 %v2806_v41, %v4785_v50 }
 0x478   :  { %v2815_v11 = vadd.f32 %v2813_v1, %v2811_v12 }
 0x479   :  { %v2975_v58 = vld.sshfl [vmem:[#allocation1 + $0x8] sm:$0xff pattern:$0x75316420] }
 0x47a   :  { %2976 = vrot.lane.b32.xlu1 %v2975_v58, %s4274_s12  ;;  %2979 = vst [vmem:[#allocation1] ss:$2 sm:$0xff] %v4734_v4  ;;  %v2817_v30 = vadd.f32 %v2815_v11, %v2768_v61 }
 0x47c   :  { %v2823_v43 = vpop.permute.xlu1 %2822  ;;  %v2845_v21 = vpop.permute.xlu2 %2844 }
 0x47d   :  { %v2835_v31 = vsel %vm1858_vm7, %v2823_v43, %v2829_v47 }
 0x47e   :  { %v2853_v57 = vmul.f32 %v2835_v31, %v4797_v16 }
 0x481   :  { %v2981_v54 = vld.sshfl [vmem:[#allocation1 + $0x8] sm:$0xff pattern:$0x75316420]  ;;  %v2980_v56 = vld.sshfl [vmem:[#allocation1] sm:$0xff pattern:$0x75316420] }
 0x482   :  { %2984 = vrot.lane.b32.xlu0 %v2981_v54, %s4274_s12  ;;  %2982 = vrot.lane.b32.xlu2 %v2980_v56, %s4274_s12  ;;  %2990 = vst [vmem:[#allocation1] ss:$2 sm:$0xff] %v4734_v4 }
 0x484   :  { %v2831_v25 = vpop.permute.xlu0 %2830 }
 0x485   :  { %v2832_v44 = vsel %vm1858_vm7, %v2829_v47, %v2831_v25  ;;  %vm5204_vm7 = vcmask 138240  }
 0x486   :  { %v2854_v61 = vmul.f32 %v2832_v44, %v4810_v48  ;;  %vm5205_vm4 = vmmov %vm5204_vm7 }
 0x487   :  { %vm5206_vm3 = vmmov %vm5205_vm4 }
 0x488   :  { %vm5207_vm2 = vmmov %vm5206_vm3 }
 0x489   :  { %v2991_v19 = vld.sshfl [vmem:[#allocation1 + $0x8] sm:$0xff pattern:$0x75316420] }
 0x48a   :  { %2992 = vrot.lane.b32.xlu1 %v2991_v19, %s4277_s15  ;;  %2995 = vst [vmem:[#allocation1] ss:$2 sm:$0xff] %v4734_v4 }
 0x48c   :  { %v2839_v46 = vpop.permute.xlu1 %2838  ;;  %v2872_v34 = vpop.permute.xlu2 %2871 }
 0x48d   :  { %v2852_v20 = vsel %vm2848_vm9, %v2839_v46, %v2845_v21 }
 0x48e   :  { %v2855_v55 = vmul.f32 %v2852_v20, %v4803_v29 }
 0x490   :  { %v2857_v27 = vadd.f32 %v2855_v55, %v2853_v57 }
 0x491   :  { %v2997_v10 = vld.sshfl [vmem:[#allocation1 + $0x8] sm:$0xff pattern:$0x75316420]  ;;  %v2996_v26 = vld.sshfl [vmem:[#allocation1] sm:$0xff pattern:$0x75316420] }
 0x492   :  { %3000 = vrot.lane.b32.xlu0 %v2997_v10, %s4277_s15  ;;  %2998 = vrot.lane.b32.xlu2 %v2996_v26, %s4277_s15  ;;  %3017 = vst [vmem:[#allocation1] ss:$2 sm:$0xff] %v4736_v15  ;;  %v2859_v5 = vadd.f32 %v2857_v27, %v2816_v37 }
 0x494   :  { %v2847_v53 = vpop.permute.xlu0 %2846 }
 0x495   :  { %v2849_v4 = vsel %vm2848_vm9, %v2845_v21, %v2847_v53 }
 0x496   :  { %v2856_v13 = vmul.f32 %v2849_v4, %v4815_v59 }
 0x498   :  { %v2858_v63 = vadd.f32 %v2856_v13, %v2854_v61 }
 0x499   :  { %v3018_v60 = vld.sshfl [vmem:[#allocation1 + $0x8] sm:$0xff pattern:$0x75316420] }
 0x49a   :  { %3019 = vrot.lane.b32.xlu1 %v3018_v60, %s4275_s13  ;;  %3022 = vst [vmem:[#allocation1] ss:$2 sm:$0xff] %v4736_v15  ;;  %v2860_v0 = vadd.f32 %v2858_v63, %v2817_v30 }
 0x49c   :  { %v2866_v22 = vpop.permute.xlu1 %2865  ;;  %v2892_v28 = vpop.permute.xlu2 %2891 }
 0x49d   :  { %v2878_v18 = vsel %vm1846_vm15, %v2866_v22, %v2872_v34 }
 0x49e   :  { %v2879_v35 = vadd.f32 %v2878_v18, %v2859_v5 }
 0x4a1   :  { %v3024_v36 = vld.sshfl [vmem:[#allocation1 + $0x8] sm:$0xff pattern:$0x75316420]  ;;  %v3023_v9 = vld.sshfl [vmem:[#allocation1] sm:$0xff pattern:$0x75316420] }
 0x4a2   :  { %3027 = vrot.lane.b32.xlu0 %v3024_v36, %s4275_s13  ;;  %3025 = vrot.lane.b32.xlu2 %v3023_v9, %s4275_s13  ;;  %3033 = vst [vmem:[#allocation1] ss:$2 sm:$0xff] %v4736_v15 }
 0x4a4   :  { %v2874_v2 = vpop.permute.xlu0 %2873 }
 0x4a5   :  { %v2875_v62 = vsel %vm1846_vm15, %v2872_v34, %v2874_v2  ;;  %vm2937_vm15 = vcmask 146432  }
 0x4a6   :  { %v2880_v38 = vadd.f32 %v2875_v62, %v2860_v0 }
 0x4a9   :  { %v3034_v51 = vld.sshfl [vmem:[#allocation1 + $0x8] sm:$0xff pattern:$0x75316420] }
 0x4aa   :  { %3035 = vrot.lane.b32.xlu0 %v3034_v51, %s4278_s0  ;;  %3038 = vst [vmem:[#allocation1] ss:$2 sm:$0xff] %v4736_v15 }
 0x4ac   :  { %v2886_v6 = vpop.permute.xlu1 %2885  ;;  %v2908_v58 = vpop.permute.xlu2 %2907 }
 0x4ad   :  { %v2898_v37 = vsel %vm5204_vm7, %v2886_v6, %v2892_v28 }
 0x4ae   :  { %v2915_v47 = vmul.f32 %v2898_v37, %v4834_v24 }
 0x4b1   :  { %v3040_v14 = vld.sshfl [vmem:[#allocation1 + $0x8] sm:$0xff pattern:$0x75316420]  ;;  %v3039_v41 = vld.sshfl [vmem:[#allocation1] sm:$0xff pattern:$0x75316420] }
 0x4b2   :  { %3043 = vrot.lane.b32.xlu2 %v3040_v14, %s4278_s0  ;;  %3041 = vrot.lane.b32.xlu1 %v3039_v41, %s4278_s0  ;;  %3060 = vst [vmem:[#allocation1] ss:$2 sm:$0xff] %v4738_v17 }
 0x4b4   :  { %v2894_v12 = vpop.permute.xlu0 %2893 }
 0x4b5   :  { %v2895_v1 = vsel %vm5205_vm4, %v2892_v28, %v2894_v12 }
 0x4b6   :  { %v2916_v19 = vmul.f32 %v2895_v1, %v4846_v32 }
 0x4b9   :  { %v5087_v11 = vld.sshfl [vmem:[#allocation1 + $0x8] sm:$0xff pattern:$0x75316420] }
 0x4ba   :  { %3065 = vst [vmem:[#allocation1] ss:$2 sm:$0xff] %v4738_v17 }
 0x4bc   :  { %v2902_v30 = vpop.permute.xlu1 %2901  ;;  %v2934_v55 = vpop.permute.xlu2 %2933 }
 0x4bd   :  { %v2914_v15 = vsel %vm1870_vm11, %v2902_v30, %v2908_v58 }
 0x4be   :  { %v2917_v43 = vmul.f32 %v2914_v15, %v4840_v33 }
 0x4c0   :  { %v2919_v31 = vadd.f32 %v2917_v43, %v2915_v47 }
 0x4c1   :  { %v3067_v54 = vld.sshfl [vmem:[#allocation1 + $0x8] sm:$0xff pattern:$0x75316420]  ;;  %v3066_v56 = vld.sshfl [vmem:[#allocation1] sm:$0xff pattern:$0x75316420] }
 0x4c2   :  { %v2921_v25 = vadd.f32 %v2919_v31, %v2879_v35  ;;  %3070 = vrot.lane.b32.xlu0 %v3067_v54, %s4279_s16  ;;  %3068 = vrot.lane.b32.xlu2 %v3066_v56, %s4279_s16  ;;  %3081 = vst [vmem:[#allocation1] ss:$2 sm:$0xff] %v4740_v52 }
 0x4c4   :  { %v2910_v17 = vpop.permute.xlu0 %2909 }
 0x4c5   :  { %v2911_v44 = vsel %vm1870_vm11, %v2908_v58, %v2910_v17  ;;  %vm3002_vm11 = vcmask 375808  }
 0x4c6   :  { %v2918_v21 = vmul.f32 %v2911_v44, %v4851_v40 }
 0x4c8   :  { %v2920_v46 = vadd.f32 %v2918_v21, %v2916_v19 }
 0x4c9   :  { %v3082_v20 = vld.sshfl [vmem:[#allocation1 + $0x8] sm:$0xff pattern:$0x75316420] }
 0x4ca   :  { %v2922_v57 = vadd.f32 %v2920_v46, %v2880_v38  ;;  %3083 = vrot.lane.b32.xlu1 %v3082_v20, %s4280_s17  ;;  %3086 = vst [vmem:[#allocation1] ss:$2 sm:$0xff] %v4740_v52 }
 0x4cc   :  { %v2928_v27 = vpop.permute.xlu1 %2927  ;;  %v2951_v13 = vpop.permute.xlu2 %2950 }
 0x4cd   :  { %v2941_v10 = vsel %vm2937_vm15, %v2928_v27, %v2934_v55 }
 0x4ce   :  { %v2958_v0 = vmul.f32 %v2941_v10, %v4864_v23 }
 0x4d1   :  { %v3088_v26 = vld.sshfl [vmem:[#allocation1 + $0x8] sm:$0xff pattern:$0x75316420]  ;;  %v3087_v5 = vld.sshfl [vmem:[#allocation1] sm:$0xff pattern:$0x75316420] }
 0x4d2   :  { %3091 = vrot.lane.b32.xlu2 %v3088_v26, %s4280_s17  ;;  %3089 = vrot.lane.b32.xlu1 %v3087_v5, %s4280_s17  ;;  %3098 = vst [vmem:[#allocation1] ss:$2 sm:$0xff] %v4740_v52 }
 0x4d4   :  { %v2936_v53 = vpop.permute.xlu0 %2935 }
 0x4d5   :  { %v2938_v4 = vsel %vm2937_vm15, %v2934_v55, %v2936_v53 }
 0x4d6   :  { %v2959_v2 = vmul.f32 %v2938_v4, %v4876_v49 }
 0x4d9   :  { %v3099_v61 = vld.sshfl [vmem:[#allocation1 + $0x8] sm:$0xff pattern:$0x75316420] }
 0x4da   :  { %3100 = vrot.lane.b32.xlu2 %v3099_v61, %s4253_s20  ;;  %3103 = vst [vmem:[#allocation1] ss:$2 sm:$0xff] %v4740_v52 }
 0x4dc   :  { %v2945_v63 = vpop.permute.xlu1 %2944  ;;  %v2983_v58 = vpop.permute.xlu2 %2982 }
 0x4dd   :  { %v2957_v60 = vsel %vm2740_vm12, %v2945_v63, %v2951_v13 }
 0x4de   :  { %v2960_v34 = vmul.f32 %v2957_v60, %v4870_v3 }
 0x4e0   :  { %v2962_v22 = vadd.f32 %v2960_v34, %v2958_v0 }
 0x4e1   :  { %v3105_v18 = vld.sshfl [vmem:[#allocation1 + $0x8] sm:$0xff pattern:$0x75316420]  ;;  %v3104_v35 = vld.sshfl [vmem:[#allocation1] sm:$0xff pattern:$0x75316420] }
 0x4e2   :  { %v5108_v36 = vadd.f32 %v2962_v22, %v2921_v25  ;;  %3108 = vrot.lane.b32.xlu1 %v3105_v18, %s4253_s20  ;;  %3106 = vrot.lane.b32.xlu0 %v3104_v35, %s4253_s20  ;;  %3124 = vst [vmem:[#allocation1] ss:$2 sm:$0xff] %v4742_v39 }
 0x4e4   :  { %v2953_v52 = vpop.permute.xlu0 %2952 }
 0x4e5   :  { %v2954_v9 = vsel %vm2740_vm12, %v2951_v13, %v2953_v52 }
 0x4e6   :  { %v2961_v62 = vmul.f32 %v2954_v9, %v4881_v42 }
 0x4e8   :  { %v2963_v38 = vadd.f32 %v2961_v62, %v2959_v2 }
 0x4e9   :  { %v3125_v51 = vld.sshfl [vmem:[#allocation1 + $0x8] sm:$0xff pattern:$0x75316420] }
 0x4ea   :  { %v5116_v28 = vadd.f32 %v2963_v38, %v2922_v57  ;;  %3129 = vst [vmem:[#allocation1] ss:$2 sm:$0xff] %v4742_v39 }
 0x4ec   :  { %v2977_v1 = vpop.permute.xlu1 %2976  ;;  %v2999_v47 = vpop.permute.xlu2 %2998 }
 0x4ed   :  { %v2989_v22 = vsel %vm2805_vm8, %v2977_v1, %v2983_v58 }
 0x4f1   :  { %v3131_v6 = vld.sshfl [vmem:[#allocation1 + $0x8] sm:$0xff pattern:$0x75316420]  ;;  %v3130_v37 = vld.sshfl [vmem:[#allocation1] sm:$0xff pattern:$0x75316420] }
 0x4f2   :  { %3134 = vrot.lane.b32.xlu1 %v3131_v6, %s4281_s18  ;;  %3132 = vrot.lane.b32.xlu0 %v3130_v37, %s4281_s18  ;;  %3141 = vst [vmem:[#allocation1] ss:$2 sm:$0xff] %v4742_v39 }
 0x4f4   :  { %v2985_v30 = vpop.permute.xlu0 %2984 }
 0x4f5   :  { %v2986_v10 = vsel %vm2805_vm8, %v2983_v58, %v2985_v30 }
 0x4f6   :  { %v3008_v63 = vmul.f32 %v2986_v10, %v4781_v45 }
 0x4f9   :  { %v3142_v14 = vld.sshfl [vmem:[#allocation1 + $0x8] sm:$0xff pattern:$0x75316420] }
 0x4fa   :  { %3062 = vrot.lane.b32.xlu1 %v5087_v11, %s4279_s16  ;;  %3146 = vst [vmem:[#allocation1] ss:$2 sm:$0xff] %v4742_v39 }
 0x4fc   :  { %v2993_v15 = vpop.permute.xlu1 %2992  ;;  %v3026_v54 = vpop.permute.xlu2 %3025 }
 0x4fd   :  { %v3006_v5 = vsel %vm3002_vm11, %v2993_v15, %v2999_v47 }
 0x4fe   :  { %v3009_v18 = vmul.f32 %v3006_v5, %v4774_v8 }
 0x501   :  { %v3148_v41 = vld.sshfl [vmem:[#allocation1 + $0x8] sm:$0xff pattern:$0x75316420]  ;;  %v3147_v12 = vld.sshfl [vmem:[#allocation1] sm:$0xff pattern:$0x75316420] }
 0x502   :  { %3151 = vrot.lane.b32.xlu0 %v3148_v41, %s4276_s14  ;;  %3149 = vrot.lane.b32.xlu2 %v3147_v12, %s4276_s14 }
 0x504   :  { %v3001_v43 = vpop.permute.xlu0 %3000 }
 0x505   :  { %v3003_v27 = vsel %vm3002_vm11, %v2999_v47, %v3001_v43 }
 0x506   :  { %v3010_v53 = vmul.f32 %v3003_v27, %v4785_v50 }
 0x508   :  { %v3012_v52 = vadd.f32 %v3010_v53, %v3008_v63 }
 0x50a   :  { %3143 = vrot.lane.b32.xlu0 %v3142_v14, %s4276_s14  ;;  %3126 = vrot.lane.b32.xlu2 %v3125_v51, %s4281_s18  ;;  %v3014_v37 = vadd.f32 %v3012_v52, %v5116_v28 }
 0x50c   :  { %v3020_v31 = vpop.permute.xlu1 %3019  ;;  %v3044_v39 = vpop.permute.xlu2 %3043 }
 0x50d   :  { %v3032_v50 = vsel %vm2848_vm9, %v3020_v31, %v3026_v54 }
 0x50e   :  { %v3050_v8 = vmul.f32 %v3032_v50, %v4797_v16 }
 0x514   :  { %v3028_v11 = vpop.permute.xlu0 %3027 }
 0x515   :  { %v3029_v13 = vsel %vm2848_vm9, %v3026_v54, %v3028_v11 }
 0x516   :  { %v3051_v9 = vmul.f32 %v3029_v13, %v4810_v48 }
 0x51c   :  { %v3069_v17 = vpop.permute.xlu2 %3068  ;;  %v3036_v44 = vpop.permute.xlu0 %3035 }
 0x524   :  { %v3042_v56 = vpop.permute.xlu1 %3041 }
 0x525   :  { %v3046_v26 = vsel %vm3045_vm0, %v3042_v56, %v3044_v39  ;;  %v3049_v60 = vsel %vm3045_vm0, %v3036_v44, %v3042_v56 }
 0x526   :  { %v3053_v0 = vmul.f32 %v3046_v26, %v4815_v59  ;;  %v3052_v2 = vmul.f32 %v3049_v60, %v4803_v29  ;;  %v3007_v59 = vmul.f32 %v2989_v22, %v4770_v7 }
 0x528   :  { %v3055_v62 = vadd.f32 %v3053_v0, %v3051_v9  ;;  %v3011_v6 = vadd.f32 %v3009_v18, %v3007_v59  ;;  %v3054_v41 = vadd.f32 %v3052_v2, %v3050_v8 }
 0x52a   :  { %v3057_v7 = vadd.f32 %v3055_v62, %v3014_v37  ;;  %v3013_v28 = vadd.f32 %v3011_v6, %v5108_v36 }
 0x52c   :  { %v3092_v19 = vpop.permute.xlu2 %3091  ;;  %v3056_v56 = vadd.f32 %v3054_v41, %v3013_v28 }
 0x534   :  { %v3071_v21 = vpop.permute.xlu0 %3070  ;;  %v3101_v55 = vpop.permute.xlu2 %3100 }
 0x535   :  { %v3073_v29 = vsel %vm3072_vm5, %v3069_v17, %v3071_v21 }
 0x536   :  { %v3078_v15 = vadd.f32 %v3073_v29, %v3057_v7 }
 0x53c   :  { %v3084_v25 = vpop.permute.xlu1 %3083 }
 0x544   :  { %v3090_v46 = vpop.permute.xlu1 %3089 }
 0x545   :  { %v3094_v45 = vsel %vm3093_vm14, %v3090_v46, %v3092_v19  ;;  %v3097_v43 = vsel %vm3093_vm14, %v3084_v25, %v3090_v46 }
 0x546   :  { %v3115_v48 = vmul.f32 %v3094_v45, %v4846_v32  ;;  %v3114_v39 = vmul.f32 %v3097_v43, %v4834_v24 }
 0x554   :  { %v3109_v20 = vpop.permute.xlu1 %3108  ;;  %v3107_v57 = vpop.permute.xlu0 %3106 }
 0x555   :  { %v3110_v35 = vsel %vm5206_vm3, %v3107_v57, %v3109_v20  ;;  %v3113_v30 = vsel %vm5207_vm2, %v3101_v55, %v3107_v57 }
 0x556   :  { %v3117_v38 = vmul.f32 %v3110_v35, %v4851_v40  ;;  %v3116_v54 = vmul.f32 %v3113_v30, %v4840_v33 }
 0x558   :  { %v3119_v1 = vadd.f32 %v3117_v38, %v3115_v48  ;;  %v3118_v20 = vadd.f32 %v3116_v54, %v3114_v39 }
 0x55a   :  { %v3121_v11 = vadd.f32 %v3119_v1, %v3078_v15 }
 0x55c   :  { %v3150_v34 = vpop.permute.xlu2 %3149 }
 0x564   :  { %v3135_v4 = vpop.permute.xlu1 %3134  ;;  %v3133_v61 = vpop.permute.xlu0 %3132 }
 0x565   :  { %v3137_v51 = vsel %vm3136_vm1, %v3133_v61, %v3135_v4  ;;  %v3127_v47 = vpop.permute.xlu2 %3126 }
 0x566   :  { %v3158_v58 = vmul.f32 %v3137_v51, %v4876_v49  ;;  %v3140_v49 = vsel %vm3136_vm1, %v3127_v47, %v3133_v61 }
 0x567   :  { %v3157_v36 = vmul.f32 %v3140_v49, %v4864_v23 }
 0x56c   :  { %v3063_v40 = vpop.permute.xlu1 %3062 }
 0x56d   :  { %v3076_v31 = vsel %vm3072_vm5, %v3063_v40, %v3069_v17 }
 0x574   :  { %v3152_v14 = vpop.permute.xlu0 %3151 }
 0x575   :  { %v3153_v12 = vsel %vm2937_vm15, %v3150_v34, %v3152_v14 }
 0x576   :  { %v3160_v16 = vmul.f32 %v3153_v12, %v4881_v42  ;;  %v3077_v42 = vadd.f32 %v3076_v31, %v3056_v56 }
 0x578   :  { %v3162_v32 = vadd.f32 %v3160_v16, %v3158_v58  ;;  %v3120_v46 = vadd.f32 %v3118_v20, %v3077_v42 }
 0x57a   :  { %v3164_v44 = vadd.f32 %v3162_v32, %v3121_v11 }
 0x57c   :  { %v3144_v19 = vpop.permute.xlu0 %3143  ;;  %v3166_v17 = vmul.f32 0.27700832, %v3164_v44 }
 0x57d   :  { %v3156_v21 = vsel %vm2937_vm15, %v3144_v19, %v3150_v34 }
 0x57e   :  { %v3159_v25 = vmul.f32 %v3156_v21, %v4870_v3  ;;  %v3169_v55 = vrot.slane %v3166_v17, 4 }
 0x580   :  { %v3161_v57 = vadd.f32 %v3159_v25, %v3157_v36 }
 0x582   :  { %v3163_v33 = vadd.f32 %v3161_v57, %v3120_v46 }
 0x584   :  { %v3165_v27 = vmul.f32 0.27700832, %v3163_v33 }
 0x586   :  { %v3170_v10 = vsel %vm2163_vm6, %v3165_v27, %v3169_v55 }
 0x587   :  { %3172 = vst [vmem:[%s5164_s2] sm:$0x77] %v3170_v10 }
 0x588   :  { %3177 = vsyncpa [#allocation3], 1 }

</bundles_post_ra>
